<compile_context>
chip_gen: v6e
topology: v6e:2x2x1
jax: 0.10.0
libtpu: 0.0.40
codegen_flags: <defaults>
</compile_context>

<pallas_src>
import numpy as np
import jax
import jax.numpy as jnp
from jax.experimental import pallas as pl
from jax.experimental.pallas import tpu as pltpu


# ----------------------------- Pallas kernel -------------------------------

def encoder_pool_kernel(x_ref, sel_ref, count_ref, w_ref, b_ref, o_ref):
    """Fused synthetic-encoder projection + masked mean-pool + L2 normalize.

    Per grid step (one tile of `spt` stacked sequences):
      x:     [spt*S, H]   bf16  gathered token embeddings (nl + code stacked)
      sel:   [spt, spt*S] f32   masked block-diagonal pooling matrix
                                (pad mask already folded in by the wrapper)
      count: [spt, 1]     f32   number of non-pad tokens per sequence
      w:     [H, H]       bf16  encoder projection weight (resident across grid)
      b:     [1, H]       f32   encoder projection bias (resident across grid)
      o:     [spt, H]     f32   L2-normalized masked-mean sentence vectors
    """
    # bf16 x bf16 MXU matmul with f32 accumulation; epilogue stays f32
    # (v5e has no bf16 VPU/EUP path, and the test needs ~1e-5 accuracy).
    h = jnp.dot(x_ref[...], w_ref[...], preferred_element_type=jnp.float32)
    h = jnp.tanh(h + b_ref[...])                              # [rows, H] f32

    # Masked per-sequence sum as one tiny MXU matmul; the pad mask lives in
    # sel, so there is no h*mask VALU pass and no in-kernel iota/select.
    summed = jnp.dot(sel_ref[...], h, preferred_element_type=jnp.float32)

    # Masked mean via EUP reciprocal (the per-sequence scalar cancels exactly
    # in the normalization below).  All-pad sequence -> inf/NaN, faithful to
    # the PyTorch module.
    pooled = summed * pl.reciprocal(count_ref[...], approx=True)   # [spt, H]

    # torch.nn.functional.normalize(p=2, dim=1): x / max(||x||_2, 1e-12)
    #   == x * min(rsqrt(||x||^2), 1e12)   -- rsqrt goes to the EUP slot.
    sq = jnp.sum(pooled * pooled, axis=1, keepdims=True)
    o_ref[...] = pooled * jnp.minimum(jax.lax.rsqrt(sq), 1e12)


# ------------------------------ JAX wrappers --------------------------------

def _choose_tile(n_seq, seq_len, target_rows=256):
    """Sequences-per-tile: target matmul M <= 256 (v6e/v7x MXU fill) while
    keeping >= 2 grid steps when possible (v7x megacore).  Falls back to the
    full extent if no sublane-aligned divisor exists."""
    divisors = [d for d in range(1, n_seq + 1) if n_seq % d == 0]
    multi = [d for d in divisors if n_seq // d >= 2] or divisors
    fit = [d for d in multi if d * seq_len <= target_rows]
    d = max(fit) if fit else min(multi)
    # Block-shape sublane constraint: spt and spt*S must be multiples of 8
    # unless the block spans the full array extent.
    if d != n_seq and (d % 8 != 0 or (d * seq_len) % 8 != 0):
        d = n_seq
    return d


def encode_and_pool(tokens, params):
    """Both towers stacked: XLA embedding gather -> fused Pallas projection +
    masked mean pool + L2 normalize.  Returns [n_seq, H] f32."""
    n_seq, seq_len = tokens.shape
    H = params["embed"].shape[1]

    mask = (tokens != 1).astype(jnp.float32)                  # [n_seq, S]
    counts = jnp.sum(mask, axis=1, keepdims=True)             # [n_seq, 1]

    spt = _choose_tile(n_seq, seq_len)
    grid = (n_seq // spt,)

    # Gathered token embeddings as a lane-dense bf16 MXU operand.
    x = params["embed"][tokens].astype(jnp.bfloat16).reshape(n_seq * seq_len, H)

    # Masked pooling matrix, block-diagonal-compressed to [n_seq, spt*S]:
    #   sel[p, j] = mask[p, j mod S]  iff column j lies in sequence p's local
    #   row range within its grid tile, else 0.
    # Folding the mask here removes the per-step VALU mask multiply and the
    # iota/compare construction from the kernel.
    within = jnp.arange(spt * seq_len) // seq_len                     # [spt*S]
    belongs = within[None, :] == (jnp.arange(n_seq) % spt)[:, None]   # [n_seq, spt*S]
    sel = jnp.where(belongs, jnp.tile(mask, (1, spt)), 0.0).astype(jnp.float32)

    return pl.pallas_call(
        encoder_pool_kernel,
        out_shape=jax.ShapeDtypeStruct((n_seq, H), jnp.float32),
        grid_spec=pltpu.PrefetchScalarGridSpec(
            num_scalar_prefetch=0,
            grid=grid,
            in_specs=[
                pl.BlockSpec((spt * seq_len, H), lambda i: (i, 0)),     # activations
                pl.BlockSpec((spt, spt * seq_len), lambda i: (i, 0)),   # masked pool matrix
                pl.BlockSpec((spt, 1), lambda i: (i, 0)),               # token counts
                pl.BlockSpec((H, H), lambda i: (0, 0)),                 # weight (resident)
                pl.BlockSpec((1, H), lambda i: (0, 0)),                 # bias (resident)
            ],
            out_specs=pl.BlockSpec((spt, H), lambda i: (i, 0)),
        ),
        compiler_params=pltpu.CompilerParams(
            dimension_semantics=("parallel",),      # megacore sharding on v7x
            # Per-step footprint here is ~3 MiB (double-buffered x tile +
            # resident bf16 weight + f32 h temp); 48 MiB keeps headroom for
            # larger tiles while staying under v7x's 64 MiB physical VMEM.
            vmem_limit_bytes=48 * 1024 * 1024,
        ),
    )(x, sel, counts, params["enc_w"], params["enc_b"].reshape(1, H))


def model_forward(code_inputs, nl_inputs, params):
    """Equivalent of Model.forward(code_inputs, nl_inputs) -> logits [B, 2]."""
    B = code_inputs.shape[0]

    # Single encoder+pool call for both towers: rows [0:B] = nl, [B:2B] = code.
    tokens = jnp.concatenate([nl_inputs, code_inputs], axis=0)
    pooled = encode_and_pool(tokens, params)                      # [2B, H] f32

    # fc1 head (2 outputs) in plain jnp: a dedicated pallas_call would cost
    # more in launch/DMA/masked-store overhead than its ~50 KFLOP of compute.
    feat = jnp.concatenate([pooled[:B], pooled[B:]], axis=1)      # [B, 2H]
    logits = (jnp.dot(feat, params["fc1_w"].T,
                      precision=jax.lax.Precision.HIGHEST)
              + params["fc1_b"][None, :])
    return logits                                                  # Dropout -> identity


# ------------------------------ Reference (jnp) ------------------------------

def reference_forward(code_inputs, nl_inputs, params):
    H = params["embed"].shape[1]

    def encode_pool(tok):
        bsz, slen = tok.shape
        x = params["embed"][tok].astype(jnp.bfloat16).reshape(bsz * slen, H)
        h = jnp.tanh(
            jnp.dot(x, params["enc_w"], preferred_element_type=jnp.float32)
            + params["enc_b"][None, :]).reshape(bsz, slen, H)
        mask = (tok != 1).astype(jnp.float32)
        pooled = (h * mask[:, :, None]).sum(1) / mask.sum(-1)[:, None]
        norm = jnp.sqrt((pooled * pooled).sum(-1, keepdims=True))
        return pooled / jnp.maximum(norm, 1e-12)

    code = encode_pool(code_inputs)
    nl = encode_pool(nl_inputs)
    feat = jnp.concatenate([nl, code], axis=1)                    # [B, 2H]
    return (jnp.dot(feat, params["fc1_w"].T,
                    precision=jax.lax.Precision.HIGHEST)
            + params["fc1_b"][None, :])


# ----------------------------------- main ------------------------------------

if __name__ == "__main__":
    B, S, H, V = 8, 16, 768, 512   # hidden=768 implied by fc1 = Linear(768*2, 2)

    key = jax.random.PRNGKey(0)
    k_emb, k_encw, k_encb, k_fcw, k_fcb, k_code, k_nl = jax.random.split(key, 7)

    params = {
        "embed": jax.random.normal(k_emb, (V, H), jnp.float32) * 0.02,
        # bf16 MXU operand (f32 accumulation happens inside the kernel)
        "enc_w": (jax.random.normal(k_encw, (H, H), jnp.float32) * 0.02
                  ).astype(jnp.bfloat16),
        "enc_b": jax.random.normal(k_encb, (H,), jnp.float32) * 0.02,
        # fc1 kept in PyTorch's lane-dense [out, in] = [2, 2H] layout
        "fc1_w": jax.random.normal(k_fcw, (2, 2 * H), jnp.float32) * 0.02,
        "fc1_b": jax.random.normal(k_fcb, (2,), jnp.float32) * 0.02,
    }

    # token ids in [2, V); id 1 is the padding token (matches .ne(1) masking)
    code_inputs = jax.random.randint(k_code, (B, S), 2, V, dtype=jnp.int32)
    nl_inputs = jax.random.randint(k_nl, (B, S), 2, V, dtype=jnp.int32)
    # exercise the mask: pad the tail of every sequence with id 1
    code_inputs = code_inputs.at[:, -3:].set(1)
    nl_inputs = nl_inputs.at[:, -5:].set(1)

    logits = jax.block_until_ready(model_forward(code_inputs, nl_inputs, params))
    ref = jax.block_until_ready(reference_forward(code_inputs, nl_inputs, params))

    assert logits.shape == (B, 2) and logits.dtype == jnp.float32
    np.testing.assert_allclose(np.asarray(logits), np.asarray(ref),
                               rtol=1e-5, atol=1e-5)
    print("KERNEL_OK")
</pallas_src>

<mosaic_0001>
module attributes {stable_mosaic.version = 11 : i64} {
  func.func @encoder_pool_kernel(%arg0: i32, %arg1: memref<128x768xbf16, #tpu.memory_space<vmem>>, %arg2: memref<8x128xf32, #tpu.memory_space<vmem>>, %arg3: memref<8x1xf32, #tpu.memory_space<vmem>>, %arg4: memref<768x768xbf16, #tpu.memory_space<vmem>>, %arg5: memref<1x768xf32, #tpu.memory_space<vmem>>, %arg6: memref<8x768xf32, #tpu.memory_space<vmem>>) attributes {dimension_semantics = [#tpu.dimension_semantics<parallel>], iteration_bounds = array<i64: 2>, scalar_prefetch = 0 : i64, scratch_operands = 0 : i64, tpu.core_type = #tpu.core_type<tc>, window_params = [{transform_indices = @transform_0, window_bounds = array<i64: 128, 768>}, {transform_indices = @transform_1, window_bounds = array<i64: 8, 128>}, {transform_indices = @transform_2, window_bounds = array<i64: 8, 1>}, {pipeline_mode = #tpu.pipeline_mode<synchronous>, transform_indices = @transform_3, window_bounds = array<i64: 768, 768>}, {pipeline_mode = #tpu.pipeline_mode<synchronous>, transform_indices = @transform_4, window_bounds = array<i64: 1, 768>}, {transform_indices = @transform_5, window_bounds = array<i64: 8, 768>}]} {
    %c0 = arith.constant 0 : index
    %c0_0 = arith.constant 0 : index
    %0 = vector.load %arg1[%c0, %c0_0] : memref<128x768xbf16, #tpu.memory_space<vmem>>, vector<128x768xbf16>
    %c0_1 = arith.constant 0 : index
    %c0_2 = arith.constant 0 : index
    %1 = vector.load %arg4[%c0_1, %c0_2] : memref<768x768xbf16, #tpu.memory_space<vmem>>, vector<768x768xbf16>
    %cst = arith.constant dense<0.000000e+00> : vector<128x768xf32>
    %2 = tpu.matmul %0, %1, %cst {dimension_numbers = #tpu.dot_dimension_numbers<[1], [0], [0], [1], [0, 0, 1, 1], [], []>} : vector<128x768xbf16>, vector<768x768xbf16>, vector<128x768xf32> -> vector<128x768xf32>
    %c0_3 = arith.constant 0 : index
    %c0_4 = arith.constant 0 : index
    %3 = vector.load %arg5[%c0_3, %c0_4] : memref<1x768xf32, #tpu.memory_space<vmem>>, vector<1x768xf32>
    %4 = vector.broadcast %3 : vector<1x768xf32> to vector<128x768xf32>
    %5 = arith.addf %2, %4 : vector<128x768xf32>
    %6 = math.tanh %5 : vector<128x768xf32>
    %c0_5 = arith.constant 0 : index
    %c0_6 = arith.constant 0 : index
    %7 = vector.load %arg2[%c0_5, %c0_6] : memref<8x128xf32, #tpu.memory_space<vmem>>, vector<8x128xf32>
    %cst_7 = arith.constant dense<0.000000e+00> : vector<8x768xf32>
    %8 = tpu.matmul %7, %6, %cst_7 {dimension_numbers = #tpu.dot_dimension_numbers<[1], [0], [0], [1], [0, 0, 1, 1], [], []>} : vector<8x128xf32>, vector<128x768xf32>, vector<8x768xf32> -> vector<8x768xf32>
    %c0_8 = arith.constant 0 : index
    %c0_9 = arith.constant 0 : index
    %9 = vector.load %arg3[%c0_8, %c0_9] : memref<8x1xf32, #tpu.memory_space<vmem>>, vector<8x1xf32>
    %10 = tpu.reciprocal %9 {approx = true} : vector<8x1xf32> -> vector<8x1xf32>
    %11 = vector.broadcast %10 : vector<8x1xf32> to vector<8x768xf32>
    %12 = arith.mulf %8, %11 : vector<8x768xf32>
    %13 = arith.mulf %12, %12 : vector<8x768xf32>
    %cst_10 = arith.constant dense<0.000000e+00> : vector<8xf32>
    %14 = vector.multi_reduction <add>, %13, %cst_10 [1] : vector<8x768xf32> to vector<8xf32>
    %15 = vector.shape_cast %14 : vector<8xf32> to vector<8x1xf32>
    %16 = math.rsqrt %15 : vector<8x1xf32>
    %cst_11 = arith.constant 9.99999995E+11 : f32
    %17 = vector.broadcast %cst_11 : f32 to vector<8x1xf32>
    %18 = arith.minimumf %16, %17 : vector<8x1xf32>
    %19 = vector.broadcast %18 : vector<8x1xf32> to vector<8x768xf32>
    %20 = arith.mulf %12, %19 : vector<8x768xf32>
    %c0_12 = arith.constant 0 : index
    %c0_13 = arith.constant 0 : index
    %21 = vector.load %arg6[%c0_12, %c0_13] : memref<8x768xf32, #tpu.memory_space<vmem>>, vector<8x768xf32>
    tpu.vector_store %arg6[%c0_12, %c0_13], %20 {strides = array<i32>} : memref<8x768xf32, #tpu.memory_space<vmem>>, vector<8x768xf32>,
    return
  }
  func.func @transform_0(%arg0: i32) -> (i32, i32) {
    %c0_i32 = arith.constant 0 : i32
    %c0_i32_0 = arith.constant 0 : i32
    return %arg0, %c0_i32 : i32, i32
  }
  func.func @transform_1(%arg0: i32) -> (i32, i32) {
    %c0_i32 = arith.constant 0 : i32
    %c0_i32_0 = arith.constant 0 : i32
    return %arg0, %c0_i32 : i32, i32
  }
  func.func @transform_2(%arg0: i32) -> (i32, i32) {
    %c0_i32 = arith.constant 0 : i32
    %c0_i32_0 = arith.constant 0 : i32
    return %arg0, %c0_i32 : i32, i32
  }
  func.func @transform_3(%arg0: i32) -> (i32, i32) {
    %c0_i32 = arith.constant 0 : i32
    %c0_i32_0 = arith.constant 0 : i32
    %c0_i32_1 = arith.constant 0 : i32
    return %c0_i32, %c0_i32_0 : i32, i32
  }
  func.func @transform_4(%arg0: i32) -> (i32, i32) {
    %c0_i32 = arith.constant 0 : i32
    %c0_i32_0 = arith.constant 0 : i32
    %c0_i32_1 = arith.constant 0 : i32
    return %c0_i32, %c0_i32_0 : i32, i32
  }
  func.func @transform_5(%arg0: i32) -> (i32, i32) {
    %c0_i32 = arith.constant 0 : i32
    %c0_i32_0 = arith.constant 0 : i32
    return %arg0, %c0_i32 : i32, i32
  }
}

</mosaic_0001>

<bundles_post_ra>
// kernel: tpu_custom_call.1
= control target key start
LH: loop header
LB: loop body
LE: loop exit
PB: predicated region body
PF: predicated region fallthrough
CT: control target
= control target key end

     0   :  { %s6558_s0 = inlined_call_operand.hbm [shape: bf16[256,768], index: 0, kind: input, shape index: {}]   ;;  %s6559_s1 = inlined_call_operand.hbm [shape: f32[16,128], index: 1, kind: input, shape index: {}]   ;;  %s6560_s2 = inlined_call_operand.vmem [shape: f32[16,1], index: 2, kind: input, shape index: {}]   ;;  %s6561_s3 = inlined_call_operand.hbm [shape: bf16[768,768], index: 3, kind: input, shape index: {}]   ;;  %s6562_s4 = inlined_call_operand.hbm [shape: f32[1,768], index: 4, kind: input, shape index: {}]   ;;  %s6563_s5 = inlined_call_operand.hbm [shape: f32[16,768], index: 5, kind: output, shape index: {}]  }
   0x1   :  { %6575 = sst [smem:[#allocation61_spill]] %s6558_s0 }
   0x2   :  { %6576 = sst [smem:[#allocation62_spill]] %s6561_s3 }
   0x3   :  { %6577 = sst [smem:[#allocation63_spill]] %s6562_s4 }
   0x4   :  { %10 = vsyncpa [#allocation3], 0 }
   0x5   :  { %12 = vsyncpa [#allocation3 + $0x1], 0 }
   0x6   :  { %13 = vsyncpa [#allocation6], 0 }
   0x7   :  { %15 = vsyncpa [#allocation6 + $0x1], 0 }
   0x8   :  { %16 = vsyncpa [#allocation9], 0 }
   0x9   :  { %17 = vsyncpa [#allocation4], 0 }
   0xa   :  { %19 = vsyncpa [#allocation4 + $0x1], 0  ;;  %s5290_s18 = smov 0   ;;  %s5292_s19 = smov 0  }
   0xb   :  { %s5294_s20 = smov 0   ;;  %s5296_s21 = smov 0  }
   0xc LB: > { %s5311_s22 = sadd.s32 4294967295, %s5249_s21   ;;  %s3880_s23 = sadd.s32 4294967294, %s5249_s21   ;;  %s5249_s21 = sphi %s5296_s21, %s6786_s21   ;;  %s5245_s20 = sphi %s5294_s20, %s6785_s20   ;;  %s5241_s19 = sphi %s5292_s19, %s6784_s19   ;;  %s5237_s18 = sphi %s5290_s18, %s6783_s18  }
   0xd   : > { %p45_p0 = scmp.ne.s32.totalorder %s5241_s19, %s5237_s18  ;;  %p6565_p1 = scmp.eq.s32.totalorder %s5311_s22, 0 }
   0xe   : > { %p163_p2 = scmp.eq.s32.totalorder %s5311_s22, 1  ;;  %p169_p3 = scmp.eq.s32.totalorder %s3880_s23, 1 }
   0xf   : > { %p5320_p4 = por %p6565_p1, %p45_p0  ;;  %p3881_p5 = scmp.ge.s32.totalorder %s5249_s21, 1 }
  0x10   : > { %p5325_p6 = por %p169_p3, %p45_p0  ;;  %p176_p7 = scmp.lt.s32.totalorder %s5249_s21, 3 }
  0x11   : > { %s6578_s24 = scalar_select %p5320_p4, 1, 0 }
  0x12   : > { %s6579_s25 = scalar_select %p5325_p6, 1, 0 }
  0x13   : > { %p5330_p8 = pnand %p3881_p5, %p176_p7  ;;  %s5251_s27 = smov [#allocation7]  }
  0x14   : > { %s188_s28 = sshll.u32 %s5251_s27, 4  ;;  %s5252_s30 = smov [#allocation8]   ;;  %s189_s28 = int_to_ptr.vmem [resolvable:$true] %s188_s28 }
  0x15   : > { %s6580_s26 = scalar_select %p5330_p8, 1, 0 }
  0x16   : > { %p4253_p9 = pneg %p5330_p8  ;;  %s202_s6 = sshll.u32 %s5252_s30, 4  ;;  %s203_s6 = int_to_ptr.vmem [resolvable:$true] %s202_s6 }
  0x17   : > { %s5076_s7 = scalar_lea.vmem %s189_s28, 36864  ;;  %p5084_p5 = scmp.lt.s32.totalorder %s189_s28, %s189_s28 }
  0x18   : > { %p5339_p11 = pnand %p4253_p9, %p6565_p1  ;;  %p5077_p13 = scmp.ne.s32.totalorder %s189_s28, %s5076_s7 }
  0x19   : > { %p5085_p7 = scmp.lt.s32.totalorder %s5076_s7, %s5076_s7 }
  0x1a   : > { %p5067_p12 = pneg %p5339_p11 }
  0x1b   : > { %p5086_p10 = por %p5085_p7, %p5084_p5 }
  0x1c   : > { %p5079_p0 = pnand %p5077_p13, %p5067_p12 }
  0x1e   : > { %p5080_p3 = pneg %p5079_p0 }
  0x20   : > { %p5087_p9 = pnand %p5086_p10, %p5080_p3 }
  0x22   : > { %5090 = shalt.err (!%p5087_p9)
}
  0x23   : > { %s6564_s8 = smov 384   ;;  %s5254_s9 = smov 24  }
  0x24   : > { %s6582_s3 = sld [smem:[#allocation62_spill]]  ;;  %s5102_s12 = scalar_lea.vmem %s203_s6, 96 }
  0x25   : > { %p5103_p13 = scmp.ne.s32.totalorder %s203_s6, %s5102_s12  ;;  %p5110_p10 = scmp.lt.s32.totalorder %s203_s6, %s203_s6 }
  0x26   : > { %p5111_p3 = scmp.lt.s32.totalorder %s5102_s12, %s5102_s12 }
  0x27   : > { %p5105_p0 = pnand %p5103_p13, %p5067_p12 }
  0x28   : > { %p5112_p7 = por %p5111_p3, %p5110_p10 }
  0x29   : > { %p5106_p5 = pneg %p5105_p0 }
  0x2a   : > { %4256 = dma.hbm_to_vmem [thread:$0]  (!%p5339_p11), %s6582_s3, 36864, %s189_s28, [#allocation6], %s6564_s8, %s6564_s8, %s5254_s9  }
  0x2b   : > { %p5113_p9 = pnand %p5112_p7, %p5106_p5 }
  0x2d   : > { %5116 = shalt.err (!%p5113_p9)
}
  0x2e   : > { %s6583_s4 = sld [smem:[#allocation63_spill]]  ;;  %s5365_s15 = sadd.s32 1, %s5249_s21  }
  0x2f   : > { %s32_s16 = sadd.s32 1, %s5245_s20  ;;  %s29_s17 = ssub.s32 %s5249_s21, %s5365_s15 }
  0x30   : > { %p39_p12 = scmp.ne.s32.totalorder %s5245_s20, %s5241_s19  ;;  %p30_p13 = scmp.eq.s32.totalorder %s29_s17, 0 }
  0x31   : > { %p40_p0 = scmp.eq.s32.totalorder %s5249_s21, 0  ;;  %p4273_p10 = scmp.lt.s32.totalorder %s5249_s21, 2 }
  0x32   : > { %p5375_p5 = por %p163_p2, %p39_p12  ;;  %s5384_s28 = sand.u32 1, %s5245_s20  }
  0x33   : > { %s5381_s27 = scalar_select %p30_p13, %s5245_s20, %s32_s16  }
  0x34   : > { %4259 = dma.hbm_to_vmem [thread:$0]  (!%p5339_p11), %s6583_s4, 96, %s203_s6, [#allocation9]  }
  0x35   : > { %s6584_s23 = scalar_select %p5375_p5, 1, 0 }
  0x36   : > { %p41_p3 = por %p40_p0, %p39_p12  ;;  %s4234_s29 = smul.u32 384, %s5384_s28 }
  0x37   : > { %s4235_s30 = smul.u32 6144, %s5249_s21  ;;  %s6586_s0 = sld [smem:[#allocation61_spill]] }
  0x38   : > { %p5388_p11 = pnand %p4273_p10, %p41_p3  ;;  %s217_s13 = scalar_lea.vmem [#allocation2], %s4234_s29 }
  0x39   : > { %s225_s14 = sshll.u32 %s217_s13, 4  ;;  %s214_s16 = scalar_lea.sflag [#allocation3], %s5384_s28  ;;  %s5398_s14 = int_to_ptr.vmem [resolvable:$true] %s225_s14 }
  0x3a   : > { %p5119_p7 = pneg %p5388_p11 }
  0x3d   : > { %s5396_s12 = scalar_lea.hbm %s6586_s0, %s4235_s30  ;;  %s5122_s30 = scalar_lea.hbm %s6586_s0, 12288 }
  0x3e   : > { %s5117_s17 = scalar_lea.hbm %s5396_s12, 6144  ;;  %p5123_p13 = scmp.lt.s32.totalorder %s5396_s12, %s6586_s0 }
  0x3f   : > { %p5118_p2 = scmp.ne.s32.totalorder %s5396_s12, %s5117_s17  ;;  %p5124_p0 = scmp.lt.s32.totalorder %s5122_s30, %s5117_s17 }
  0x41   : > { %p5120_p9 = pnand %p5119_p7, %p5118_p2  ;;  %p5125_p10 = por %p5124_p0, %p5123_p13 }
  0x43   : > { %p5121_p12 = pneg %p5120_p9 }
  0x45   : > { %p5126_p3 = pnand %p5125_p10, %p5121_p12 }
  0x47   : > { %5129 = shalt.err (!%p5126_p3)
}
  0x48   : > { %s5130_s29 = scalar_lea.vmem %s5398_s14, 6144  ;;  %s5255_s7 = smov [#allocation2]  }
  0x49   : > { %p5131_p1 = scmp.ne.s32.totalorder %s5398_s14, %s5130_s29  ;;  %s5135_s13 = sshll.u32 %s5255_s7, 4  ;;  %s5136_s13 = int_to_ptr.vmem [resolvable:$false] %s5135_s13 }
  0x4a   : > { %s5137_s10 = scalar_lea.vmem %s5136_s13, 12288  ;;  %p5138_p6 = scmp.lt.s32.totalorder %s5398_s14, %s5136_s13 }
  0x4b   : > { %p5133_p2 = pnand %p5131_p1, %p5119_p7  ;;  %p5139_p5 = scmp.lt.s32.totalorder %s5137_s10, %s5130_s29 }
  0x4d   : > { %p5134_p9 = pneg %p5133_p2  ;;  %p5140_p4 = por %p5139_p5, %p5138_p6 }
  0x4f   : > { %p5141_p13 = pnand %p5140_p4, %p5134_p9 }
  0x51   : > { %5144 = shalt.err (!%p5141_p13)
}
  0x52   : > { %s6587_s8 = smov 384   ;;  %s3888_s17 = sshll.u32 %s5384_s28, 3 }
  0x53   : > { %4263 = dma.hbm_to_vmem [thread:$0]  (!%p5388_p11), %s5396_s12, 6144, %s5398_s14, %s214_s16, %s6587_s8, %s6587_s8, %s5254_s9  }
  0x54   : > { %s3889_s30 = sshll.u32 %s5249_s21, 7  ;;  %s239_s13 = scalar_lea.vmem [#allocation5], %s3888_s17 }
  0x55   : > { %s5435_s7 = scalar_lea.hbm %s6559_s1, %s3889_s30  ;;  %s246_s10 = sshll.u32 %s239_s13, 4  ;;  %s247_s10 = int_to_ptr.vmem [resolvable:$true] %s246_s10 }
  0x56   : > { %s6588_s0 = sand.u32 1, %s5249_s21   ;;  %s5145_s4 = scalar_lea.hbm %s5435_s7, 128 }
  0x57   : > { %s236_s3 = scalar_lea.sflag [#allocation6], %s6588_s0  ;;  %p5146_p1 = scmp.ne.s32.totalorder %s5435_s7, %s5145_s4 }
  0x58   : > { %s5150_s12 = scalar_lea.hbm %s6559_s1, 256  ;;  %p5151_p5 = scmp.lt.s32.totalorder %s5435_s7, %s6559_s1 }
  0x59   : > { %p5148_p4 = pnand %p5146_p1, %p5119_p7  ;;  %p5152_p12 = scmp.lt.s32.totalorder %s5150_s12, %s5145_s4 }
  0x5b   : > { %p5149_p6 = pneg %p5148_p4  ;;  %p5153_p0 = por %p5152_p12, %p5151_p5 }
  0x5d   : > { %p5154_p10 = pnand %p5153_p0, %p5149_p6 }
  0x5f   : > { %5157 = shalt.err (!%p5154_p10)
}
  0x60   : > { %s5158_s8 = scalar_lea.vmem %s247_s10, 128  ;;  %s5256_s0 = smov [#allocation5]  }
  0x61   : > { %p5159_p3 = scmp.ne.s32.totalorder %s247_s10, %s5158_s8  ;;  %s5163_s17 = sshll.u32 %s5256_s0, 4  ;;  %s5164_s17 = int_to_ptr.vmem [resolvable:$false] %s5163_s17 }
  0x62   : > { %s5165_s30 = scalar_lea.vmem %s5164_s17, 256  ;;  %p5166_p13 = scmp.lt.s32.totalorder %s247_s10, %s5164_s17 }
  0x63   : > { %p5161_p2 = pnand %p5159_p3, %p5119_p7  ;;  %p5167_p1 = scmp.lt.s32.totalorder %s5165_s30, %s5158_s8 }
  0x65   : > { %p5162_p9 = pneg %p5161_p2  ;;  %p5168_p4 = por %p5167_p1, %p5166_p13 }
  0x67   : > { %p5169_p8 = pnand %p5168_p4, %p5162_p9 }
  0x69   : > { %5172 = shalt.err (!%p5169_p8)
}
  0x6a   : > { %4266 = dma.hbm_to_vmem [thread:$0]  (!%p5388_p11), %s5435_s7, 128, %s247_s10, %s236_s3  }
  0x6b   : > { %p6589_p6 = scmp.ne.s32.totalorder %s6580_s26, 0 }
  0x6d   : > { %262 = sbr.rel (%p6589_p6) target bundleno = 1124 (0x464), region = 40 }
  0x72   : > { %s5460_s4 = sand.u32 1, %s5241_s19   ;;  %p6590_p7 = scmp.ne.s32.totalorder %s6578_s24, 0 }
  0x73   : > { %s4236_s11 = smul.u32 384, %s5460_s4  ;;  %s265_s29 = scalar_lea.sflag [#allocation3], %s5460_s4 }
  0x75   : > { %s5464_s13 = scalar_lea.vmem [#allocation2], %s4236_s11 }
  0x76   : > { %5216 = dma.done.wait (%p6590_p7), %s265_s29, 6144  }
  0x77   : > { %5218 = vsyncadd (%p6590_p7), %s265_s29, 4294961152  ;;  %s273_s3 = sand.u32 1, %s5311_s22   ;;  %s3891_s26 = sshll.u32 %s5460_s4, 3 }
  0x78   : > { %s274_s6 = scalar_lea.sflag [#allocation6], %s273_s3  ;;  %s5472_s7 = scalar_lea.vmem [#allocation5], %s3891_s26 }
  0x79   : > { %5220 = dma.done.wait (%p6590_p7), %s274_s6, 128  }
  0x7a   : > { %5222 = vsyncadd (%p6590_p7), %s274_s6, 4294967168  ;;  %p6591_p8 = scmp.eq.s32.totalorder %s5311_s22, 0 }
  0x7c   : > { %5224 = dma.done.wait (%p6591_p8), [#allocation6], 36864   ;;  %p6592_p11 = pmov %p6591_p8 }
  0x7d   : > { %p6593_p5 = pmov %p6591_p8 }
  0x7e   : > { %5226 = vsyncadd (%p6592_p11), [#allocation6], 4294930432 }
  0x7f   : > { %5228 = dma.done.wait (%p6593_p5), [#allocation9], 96   ;;  %p6594_p12 = pmov %p6593_p5 }
  0x80   : > { %v4316_v0 = vld [vmem:[#allocation7 + $0x154] ss:$24 sps:$4 sm:$0xff]   ;;  %v4318_v1 = vld [vmem:[#allocation7 + $0x150] ss:$24 sps:$4 sm:$0xff]   ;;  %v4322_v4 = vld [vmem:[#allocation7 + $0x124] ss:$24 sps:$4 sm:$0xff]  }
  0x81   : > { %5230 = vsyncadd (%p6594_p12), [#allocation9], 4294967200  ;;  %2374 = vmatprep.subr.bf16.mxu0 %v4316_v0  ;;  %v4319_v2 = vld [vmem:[#allocation7 + $0x454] ss:$24 sps:$4 sm:$0xff]   ;;  %v4321_v3 = vld [vmem:[#allocation7 + $0x450] ss:$24 sps:$4 sm:$0xff]  }
  0x82   : > { %2375 = vmatpush1.bf16.msra.mxu0 %v4318_v1  ;;  %v4324_v5 = vld [vmem:[#allocation7 + $0x120] ss:$24 sps:$4 sm:$0xff]   ;;  %2487 = vmatprep.subr.bf16.mxu1 %v4319_v2  ;;  %v4325_v6 = vld [vmem:[#allocation7 + $0x424] ss:$24 sps:$4 sm:$0xff]   ;;  %v4328_v8 = vld [vmem:[#allocation7 + $0xf4] ss:$24 sps:$4 sm:$0xff]  }
  0x83   : > { %2488 = vmatpush1.bf16.msra.mxu1 %v4321_v3  ;;  %2376 = vmatprep.subr.bf16.mxu0 %v4322_v4  ;;  %v4327_v7 = vld [vmem:[#allocation7 + $0x420] ss:$24 sps:$4 sm:$0xff]   ;;  %v4330_v9 = vld [vmem:[#allocation7 + $0xf0] ss:$24 sps:$4 sm:$0xff]   ;;  %v4331_v10 = vld [vmem:[#allocation7 + $0x3f4] ss:$24 sps:$4 sm:$0xff]  }
  0x84   : > { %2489 = vmatprep.subr.bf16.mxu1 %v4325_v6  ;;  %v4334_v11 = vld [vmem:[#allocation7 + $0xc4] ss:$24 sps:$4 sm:$0xff]   ;;  %v4333_v12 = vld [vmem:[#allocation7 + $0x3f0] ss:$24 sps:$4 sm:$0xff]   ;;  %v4336_v14 = vld [vmem:[#allocation7 + $0xc0] ss:$24 sps:$4 sm:$0xff]  }
  0x85   : > { %v4337_v13 = vld [vmem:[#allocation7 + $0x3c4] ss:$24 sps:$4 sm:$0xff]   ;;  %v4340_v15 = vld [vmem:[#allocation7 + $0x94] ss:$24 sps:$4 sm:$0xff]   ;;  %v4339_v16 = vld [vmem:[#allocation7 + $0x3c0] ss:$24 sps:$4 sm:$0xff]  }
  0x86   : > { %2377 = vmatpush1.bf16.msra.mxu0 %v4324_v5  ;;  %v4343_v17 = vld [vmem:[#allocation7 + $0x394] ss:$24 sps:$4 sm:$0xff]   ;;  %v4342_v18 = vld [vmem:[#allocation7 + $0x90] ss:$24 sps:$4 sm:$0xff]   ;;  %v4346_v19 = vld [vmem:[#allocation7 + $0x64] ss:$24 sps:$4 sm:$0xff]  }
  0x87   : > { %2378 = vmatprep.subr.bf16.mxu0 %v4328_v8  ;;  %2490 = vmatpush1.bf16.msra.mxu1 %v4327_v7  ;;  %v4345_v20 = vld [vmem:[#allocation7 + $0x390] ss:$24 sps:$4 sm:$0xff]   ;;  %v4349_v21 = vld [vmem:[#allocation7 + $0x364] ss:$24 sps:$4 sm:$0xff]   ;;  %v4348_v22 = vld [vmem:[#allocation7 + $0x60] ss:$24 sps:$4 sm:$0xff]  }
  0x88   : > { %2491 = vmatprep.subr.bf16.mxu1 %v4331_v10  ;;  %v4352_v23 = vld [vmem:[#allocation7 + $0x34] ss:$24 sps:$4 sm:$0xff]   ;;  %v4351_v24 = vld [vmem:[#allocation7 + $0x360] ss:$24 sps:$4 sm:$0xff]   ;;  %v4354_v26 = vld [vmem:[#allocation7 + $0x30] ss:$24 sps:$4 sm:$0xff]  }
  0x89   : > { %v4355_v25 = vld [vmem:[#allocation7 + $0x334] ss:$24 sps:$4 sm:$0xff]   ;;  %v4358_v27 = vld [vmem:[#allocation7 + $0x4] ss:$24 sps:$4 sm:$0xff]   ;;  %v4357_v28 = vld [vmem:[#allocation7 + $0x330] ss:$24 sps:$4 sm:$0xff]  }
  0x8a   : > { %2379 = vmatpush1.bf16.msra.mxu0 %v4330_v9  ;;  %v4361_v29 = vld [vmem:[#allocation7 + $0x304] ss:$24 sps:$4 sm:$0xff]   ;;  %v4360_v30 = vld [vmem:[#allocation7] ss:$24 sps:$4 sm:$0xff]   ;;  %v4364_v31 = vld [vmem:[#allocation7 + $0x2d4] ss:$24 sps:$4 sm:$0xff]  }
  0x8b   : > { %2380 = vmatprep.subr.bf16.mxu0 %v4334_v11  ;;  %2492 = vmatpush1.bf16.msra.mxu1 %v4333_v12  ;;  %v4363_v32 = vld [vmem:[#allocation7 + $0x300] ss:$24 sps:$4 sm:$0xff]   ;;  %v4367_v33 = vld [vmem:[#allocation7 + $0x5d4] ss:$24 sps:$4 sm:$0xff]   ;;  %v4366_v34 = vld [vmem:[#allocation7 + $0x2d0] ss:$24 sps:$4 sm:$0xff]  }
  0x8c   : > { %2493 = vmatprep.subr.bf16.mxu1 %v4337_v13  ;;  %v4370_v35 = vld [vmem:[#allocation7 + $0x2a4] ss:$24 sps:$4 sm:$0xff]   ;;  %v4369_v36 = vld [vmem:[#allocation7 + $0x5d0] ss:$24 sps:$4 sm:$0xff]   ;;  %v4372_v38 = vld [vmem:[#allocation7 + $0x2a0] ss:$24 sps:$4 sm:$0xff]  }
  0x8d   : > { %v4373_v37 = vld [vmem:[#allocation7 + $0x5a4] ss:$24 sps:$4 sm:$0xff]   ;;  %v4376_v39 = vld [vmem:[#allocation7 + $0x274] ss:$24 sps:$4 sm:$0xff]   ;;  %v4375_v40 = vld [vmem:[#allocation7 + $0x5a0] ss:$24 sps:$4 sm:$0xff]  }
  0x8e   : > { %2381 = vmatpush1.bf16.msra.mxu0 %v4336_v14  ;;  %v4379_v41 = vld [vmem:[#allocation7 + $0x574] ss:$24 sps:$4 sm:$0xff]   ;;  %v4378_v42 = vld [vmem:[#allocation7 + $0x270] ss:$24 sps:$4 sm:$0xff]   ;;  %v4382_v43 = vld [vmem:[#allocation7 + $0x244] ss:$24 sps:$4 sm:$0xff]  }
  0x8f   : > { %2382 = vmatprep.subr.bf16.mxu0 %v4340_v15  ;;  %2494 = vmatpush1.bf16.msra.mxu1 %v4339_v16  ;;  %v4381_v44 = vld [vmem:[#allocation7 + $0x570] ss:$24 sps:$4 sm:$0xff]   ;;  %v4385_v45 = vld [vmem:[#allocation7 + $0x544] ss:$24 sps:$4 sm:$0xff]   ;;  %v4384_v46 = vld [vmem:[#allocation7 + $0x240] ss:$24 sps:$4 sm:$0xff]  }
  0x90   : > { %2495 = vmatprep.subr.bf16.mxu1 %v4343_v17  ;;  %v5487_v47 = vld [vmem:[%s5464_s13 + $0x4] ss:$24 sps:$4 sm:$0xff]   ;;  %v4387_v49 = vld [vmem:[#allocation7 + $0x540] ss:$24 sps:$4 sm:$0xff]   ;;  %v4390_v52 = vld [vmem:[#allocation7 + $0x210] ss:$24 sps:$4 sm:$0xff]  }
  0x91   : > { %v4388_v48 = vld [vmem:[#allocation7 + $0x214] ss:$24 sps:$4 sm:$0xff]   ;;  %2406 = vmatprep.mubr.bf16.mxu0 %v5487_v47  ;;  %v4394_v53 = vld [vmem:[#allocation7 + $0x1e4] ss:$24 sps:$4 sm:$0xff]   ;;  %v4393_v54 = vld [vmem:[#allocation7 + $0x510] ss:$24 sps:$4 sm:$0xff]  }
  0x92   : > { %2383 = vmatpush1.bf16.msra.mxu0 %v4342_v18  ;;  %v4391_v50 = vld [vmem:[#allocation7 + $0x514] ss:$24 sps:$4 sm:$0xff]   ;;  %v4397_v55 = vld [vmem:[#allocation7 + $0x4e4] ss:$24 sps:$4 sm:$0xff]   ;;  %v4396_v56 = vld [vmem:[#allocation7 + $0x1e0] ss:$24 sps:$4 sm:$0xff]  }
  0x93   : > { %2384 = vmatprep.subr.bf16.mxu0 %v4346_v19  ;;  %2496 = vmatpush1.bf16.msra.mxu1 %v4345_v20  ;;  %v4418_v51 = vld [vmem:[%s5464_s13 + $0xc] ss:$24 sps:$4 sm:$0xff]   ;;  %v4399_v58 = vld [vmem:[#allocation7 + $0x4e0] ss:$24 sps:$4 sm:$0xff]   ;;  %v4402_v60 = vld [vmem:[#allocation7 + $0x1b0] ss:$24 sps:$4 sm:$0xff]  }
  0x94   : > { %2497 = vmatprep.subr.bf16.mxu1 %v4349_v21  ;;  %2519 = vmatprep.mubr.bf16.mxu1 %v4418_v51  ;;  %v4400_v57 = vld [vmem:[#allocation7 + $0x1b4] ss:$24 sps:$4 sm:$0xff]   ;;  %v4406_v61 = vld [vmem:[#allocation7 + $0x184] ss:$24 sps:$4 sm:$0xff]   ;;  %v4405_v62 = vld [vmem:[#allocation7 + $0x4b0] ss:$24 sps:$4 sm:$0xff]  }
  0x95   : > { %v4403_v59 = vld [vmem:[#allocation7 + $0x4b4] ss:$24 sps:$4 sm:$0xff]   ;;  %v4409_v63 = vld [vmem:[#allocation7 + $0x484] ss:$24 sps:$4 sm:$0xff]   ;;  %v4408_v0 = vld [vmem:[#allocation7 + $0x180] ss:$24 sps:$4 sm:$0xff]  }
  0x96   : > { %2385 = vmatpush1.bf16.msra.mxu0 %v4348_v22  ;;  %v4413_v1 = vld [vmem:[#allocation7 + $0x480] ss:$24 sps:$4 sm:$0xff]   ;;  %v5492_v2 = vld [vmem:[%s5464_s13] ss:$24 sps:$4 sm:$0xff]   ;;  %v4417_v3 = vld [vmem:[#allocation7 + $0x754] ss:$24 sps:$4 sm:$0xff]  }
  0x97   : > { %2386 = vmatprep.subr.bf16.mxu0 %v4352_v23  ;;  %2498 = vmatpush1.bf16.msra.mxu1 %v4351_v24  ;;  %v4415_v4 = vld [vmem:[#allocation7 + $0x750] ss:$24 sps:$4 sm:$0xff]   ;;  %v4423_v6 = vld [vmem:[#allocation7 + $0x15c] ss:$24 sps:$4 sm:$0xff]   ;;  %v4436_v10 = vld [vmem:[%s5464_s13 + $0x3c] ss:$24 sps:$4 sm:$0xff]  }
  0x98   : > { %2499 = vmatprep.subr.bf16.mxu1 %v4355_v25  ;;  %v4420_v5 = vld [vmem:[%s5464_s13 + $0x8] ss:$24 sps:$4 sm:$0xff]   ;;  %v5496_v8 = vld [vmem:[%s5464_s13 + $0x34] ss:$24 sps:$4 sm:$0xff]   ;;  %v4427_v13 = vld [vmem:[#allocation7 + $0x128] ss:$24 sps:$4 sm:$0xff]  }
  0x99   : > { %v4421_v7 = vld [vmem:[#allocation7 + $0x158] ss:$24 sps:$4 sm:$0xff]   ;;  %v4426_v9 = vld [vmem:[#allocation7 + $0x724] ss:$24 sps:$4 sm:$0xff]   ;;  %v4435_v15 = vld [vmem:[#allocation7 + $0x6f4] ss:$24 sps:$4 sm:$0xff]  }
  0x9a   : > { %2387 = vmatpush1.bf16.msra.mxu0 %v4354_v26  ;;  %v4429_v11 = vld [vmem:[#allocation7 + $0x12c] ss:$24 sps:$4 sm:$0xff]   ;;  %v4424_v12 = vld [vmem:[#allocation7 + $0x720] ss:$24 sps:$4 sm:$0xff]   ;;  %v4433_v16 = vld [vmem:[#allocation7 + $0x6f0] ss:$24 sps:$4 sm:$0xff]  }
  0x9b   : > { %2388 = vmatprep.subr.bf16.mxu0 %v4358_v27  ;;  %2500 = vmatpush1.bf16.msra.mxu1 %v4357_v28  ;;  %v5502_v14 = vld [vmem:[%s5464_s13 + $0x30] ss:$24 sps:$4 sm:$0xff]   ;;  %v4441_v18 = vld [vmem:[#allocation7 + $0xfc] ss:$24 sps:$4 sm:$0xff]   ;;  %v4447_v23 = vld [vmem:[#allocation7 + $0xcc] ss:$24 sps:$4 sm:$0xff]  }
  0x9c   : > { %2501 = vmatprep.subr.bf16.mxu1 %v4361_v29  ;;  %v4438_v17 = vld [vmem:[%s5464_s13 + $0x38] ss:$24 sps:$4 sm:$0xff]   ;;  %v4439_v19 = vld [vmem:[#allocation7 + $0xf8] ss:$24 sps:$4 sm:$0xff]   ;;  %v5506_v20 = vld [vmem:[%s5464_s13 + $0x64] ss:$24 sps:$4 sm:$0xff]  }
  0x9d   : > { %v4444_v21 = vld [vmem:[#allocation7 + $0x6c4] ss:$24 sps:$4 sm:$0xff]   ;;  %v4442_v24 = vld [vmem:[#allocation7 + $0x6c0] ss:$24 sps:$4 sm:$0xff]   ;;  %v5512_v26 = vld [vmem:[%s5464_s13 + $0x60] ss:$24 sps:$4 sm:$0xff]  }
  0x9e   : > { %2389 = vmatpush1.bf16.msra.mxu0 %v4360_v30  ;;  %v4454_v22 = vld [vmem:[%s5464_s13 + $0x6c] ss:$24 sps:$4 sm:$0xff]   ;;  %v4445_v25 = vld [vmem:[#allocation7 + $0xc8] ss:$24 sps:$4 sm:$0xff]   ;;  %v4456_v29 = vld [vmem:[%s5464_s13 + $0x68] ss:$24 sps:$4 sm:$0xff]  }
  0x9f   : > { %2390 = vmatprep.subr.bf16.mxu0 %v4364_v31  ;;  %2502 = vmatpush1.bf16.msra.mxu1 %v4363_v32  ;;  %v4453_v27 = vld [vmem:[#allocation7 + $0x694] ss:$24 sps:$4 sm:$0xff]   ;;  %v4451_v28 = vld [vmem:[#allocation7 + $0x690] ss:$24 sps:$4 sm:$0xff]   ;;  %v5516_v32 = vld [vmem:[%s5464_s13 + $0x94] ss:$24 sps:$4 sm:$0xff]  }
  0xa0   : > { %2503 = vmatprep.subr.bf16.mxu1 %v4367_v33  ;;  %v4459_v30 = vld [vmem:[#allocation7 + $0x9c] ss:$24 sps:$4 sm:$0xff]   ;;  %v4457_v31 = vld [vmem:[#allocation7 + $0x98] ss:$24 sps:$4 sm:$0xff]   ;;  %p322_p0 = scmp.lt.s32.totalorder %s5311_s22, 1  ;;  %s4237_s14 = smul.u32 48, %s5460_s4 }
  0xa1   : > { %v4462_v33 = vld [vmem:[#allocation7 + $0x664] ss:$24 sps:$4 sm:$0xff]   ;;  %v5532_v51 = vld [vmem:[%s5464_s13 + $0xc0] ss:$24 sps:$4 sm:$0xff]   ;;  %s4238_s16 = smul.u32 768, %s5311_s22  ;;  %p6780_p3 = scmp.ne.s32.totalorder %s6584_s23, 0 }
  0xa2   : > { %2391 = vmatpush2.bf16.msra.mxu0 %v4366_v34  ;;  %v4472_v34 = vld [vmem:[%s5464_s13 + $0x9c] ss:$24 sps:$4 sm:$0xff]   ;;  %s323_s24 = scalar_select %p322_p0, %s5311_s22, 1 }
  0xa3   : > { %2392 = vmatprep.subr.bf16.mxu0 %v4370_v35  ;;  %2504 = vmatpush2.bf16.msra.mxu1 %v4369_v36  ;;  %v4465_v35 = vld [vmem:[#allocation7 + $0x6c] ss:$24 sps:$4 sm:$0xff]   ;;  %v4460_v36 = vld [vmem:[#allocation7 + $0x660] ss:$24 sps:$4 sm:$0xff]   ;;  %s320_s8 = scalar_lea.vmem [#allocation10], %s4237_s14  ;;  %s6515_s11 = scalar_lea.hbm %s6563_s5, %s4238_s16 }
  0xa4   : > { %2505 = vmatprep.subr.bf16.mxu1 %v4373_v37  ;;  %v4463_v37 = vld [vmem:[#allocation7 + $0x68] ss:$24 sps:$4 sm:$0xff]   ;;  %s3894_s10 = sshll.u32 %s323_s24, 3  ;;  %s3756_s0 = sshll.u32 %s320_s8, 4  ;;  %s6517_s0 = int_to_ptr.vmem [resolvable:$true] %s3756_s0 }
  0xa5   : > { %s325_s12 = scalar_lea.vmem %s6560_s2, %s3894_s10  ;;  %s3742_s22 = scalar_lea.sflag [#allocation4], %s5460_s4 }
  0xa6   : > { %2393 = vmatpush2.bf16.msra.mxu0 %v4372_v38  ;;  %v5522_v38 = vld [vmem:[%s5464_s13 + $0x90] ss:$24 sps:$4 sm:$0xff]   ;;  %s5173_s29 = scalar_lea.vmem %s6517_s0, 768 }
  0xa7   : > { %2394 = vmatprep.subr.bf16.mxu0 %v4376_v39  ;;  %2506 = vmatpush2.bf16.msra.mxu1 %v4375_v40  ;;  %v4471_v39 = vld [vmem:[#allocation7 + $0x634] ss:$24 sps:$4 sm:$0xff]   ;;  %v4469_v40 = vld [vmem:[#allocation7 + $0x630] ss:$24 sps:$4 sm:$0xff]   ;;  %p5174_p10 = scmp.ne.s32.totalorder %s6517_s0, %s5173_s29 }
  0xa8   : > { %2507 = vmatprep.subr.bf16.mxu1 %v4379_v41  ;;  %v4474_v41 = vld [vmem:[%s5464_s13 + $0x98] ss:$24 sps:$4 sm:$0xff]  }
  0xa9   : > { %p5175_p2 = pnand %p5174_p10, %p6780_p3 }
  0xaa   : > { %2395 = vmatpush2.bf16.msra.mxu0 %v4378_v42  ;;  %v4477_v42 = vld [vmem:[#allocation7 + $0x3c] ss:$24 sps:$4 sm:$0xff]  }
  0xab   : > { %2396 = vmatprep.subr.bf16.mxu0 %v4382_v43  ;;  %2508 = vmatpush2.bf16.msra.mxu1 %v4381_v44  ;;  %v4475_v43 = vld [vmem:[#allocation7 + $0x38] ss:$24 sps:$4 sm:$0xff]   ;;  %v5526_v44 = vld [vmem:[%s5464_s13 + $0xc4] ss:$24 sps:$4 sm:$0xff]   ;;  %p5176_p9 = pneg %p5175_p2 }
  0xac   : > { %2509 = vmatprep.subr.bf16.mxu1 %v4385_v45  ;;  %v4480_v45 = vld [vmem:[#allocation7 + $0x604] ss:$24 sps:$4 sm:$0xff]  }
  0xae   : > { %2397 = vmatpush2.bf16.msra.mxu0 %v4384_v46  ;;  %v4490_v46 = vld [vmem:[%s5464_s13 + $0xcc] ss:$24 sps:$4 sm:$0xff]  }
  0xaf   : > { %2398 = vmatprep.subr.bf16.mxu0 %v4388_v48  ;;  %2510 = vmatpush2.bf16.msra.mxu1 %v4387_v49  ;;  %v4483_v48 = vld [vmem:[#allocation7 + $0xc] ss:$24 sps:$4 sm:$0xff]   ;;  %v4478_v49 = vld [vmem:[#allocation7 + $0x600] ss:$24 sps:$4 sm:$0xff]  }
  0xb0   : > { %2511 = vmatprep.subr.bf16.mxu1 %v4391_v50  ;;  %v4481_v50 = vld [vmem:[#allocation7 + $0x8] ss:$24 sps:$4 sm:$0xff]  }
  0xb2   : > { %2399 = vmatpush2.bf16.msra.mxu0 %v4390_v52  ;;  %v4489_v52 = vld [vmem:[#allocation7 + $0x8d4] ss:$24 sps:$4 sm:$0xff]  }
  0xb3   : > { %2400 = vmatprep.subr.bf16.mxu0 %v4394_v53  ;;  %2512 = vmatpush2.bf16.msra.mxu1 %v4393_v54  ;;  %v4487_v53 = vld [vmem:[#allocation7 + $0x8d0] ss:$24 sps:$4 sm:$0xff]  }
  0xb4   : > { %2513 = vmatprep.subr.bf16.mxu1 %v4397_v55  ;;  %v4492_v54 = vld [vmem:[%s5464_s13 + $0xc8] ss:$24 sps:$4 sm:$0xff]   ;;  %v4495_v55 = vld [vmem:[#allocation7 + $0x2dc] ss:$24 sps:$4 sm:$0xff]  }
  0xb6   : > { %2401 = vmatpush2.bf16.msra.mxu0 %v4396_v56  ;;  %v4493_v56 = vld [vmem:[#allocation7 + $0x2d8] ss:$24 sps:$4 sm:$0xff]  }
  0xb7   : > { %2402 = vmatprep.subr.bf16.mxu0 %v4400_v57  ;;  %2514 = vmatpush2.bf16.msra.mxu1 %v4399_v58  ;;  %v5536_v57 = vld [vmem:[%s5464_s13 + $0xf4] ss:$24 sps:$4 sm:$0xff]  }
  0xb8   : > { %2515 = vmatprep.subr.bf16.mxu1 %v4403_v59  ;;  %v4498_v58 = vld [vmem:[#allocation7 + $0x8a4] ss:$24 sps:$4 sm:$0xff]  }
  0xb9   : > { %v4508_v59 = vld [vmem:[%s5464_s13 + $0xfc] ss:$24 sps:$4 sm:$0xff]  }
  0xba   : > { %2403 = vmatpush2.bf16.msra.mxu0 %v4402_v60  ;;  %v4501_v60 = vld [vmem:[#allocation7 + $0x2ac] ss:$24 sps:$4 sm:$0xff]  }
  0xbb   : > { %2404 = vmatprep.subr.bf16.mxu0 %v4406_v61  ;;  %2516 = vmatpush2.bf16.msra.mxu1 %v4405_v62  ;;  %v4496_v61 = vld [vmem:[#allocation7 + $0x8a0] ss:$24 sps:$4 sm:$0xff]  }
  0xbc   : > { %2517 = vmatprep.subr.bf16.mxu1 %v4409_v63  ;;  %v4499_v62 = vld [vmem:[#allocation7 + $0x2a8] ss:$24 sps:$4 sm:$0xff]  }
  0xbd   : > { %v5542_v63 = vld [vmem:[%s5464_s13 + $0xf0] ss:$24 sps:$4 sm:$0xff]  }
  0xbe   : > { %2405 = vmatpush2.bf16.msra.mxu0 %v4408_v0  ;;  %v4507_v0 = vld [vmem:[#allocation7 + $0x874] ss:$24 sps:$4 sm:$0xff]  }
  0xbf   : > { %2600 = vmatprep.subr.bf16.mxu0 %v4417_v3  ;;  %2518 = vmatpush2.bf16.msra.mxu1 %v4413_v1  ;;  %v4505_v1 = vld [vmem:[#allocation7 + $0x870] ss:$24 sps:$4 sm:$0xff]  }
  0xc0   : > { %2713 = vmatprep.subr.bf16.mxu1 %v4423_v6  ;;  %v4510_v3 = vld [vmem:[%s5464_s13 + $0xf8] ss:$24 sps:$4 sm:$0xff]   ;;  %v5546_v6 = vld [vmem:[%s5464_s13 + $0x124] ss:$24 sps:$4 sm:$0xff]  }
  0xc1   : > { %2407 = vmatmul.mubr.bf16.vlgmr.msra.gmra.mxu0 %v5492_v2 }
  0xc2   : > { %2601 = vmatpush1.bf16.msra.mxu0 %v4415_v4  ;;  %2416 = vmatprep.mubr.bf16.mxu0 %v5496_v8  ;;  %v4513_v4 = vld [vmem:[#allocation7 + $0x27c] ss:$24 sps:$4 sm:$0xff]  }
  0xc3   : > { %2520 = vmatmul.mubr.bf16.vlgmr.msra.gmra.mxu1 %v4420_v5  ;;  %2602 = vmatprep.subr.bf16.mxu0 %v4426_v9  ;;  %v4511_v5 = vld [vmem:[#allocation7 + $0x278] ss:$24 sps:$4 sm:$0xff]   ;;  %v4526_v9 = vld [vmem:[%s5464_s13 + $0x12c] ss:$24 sps:$4 sm:$0xff]  }
  0xc4   : > { %2714 = vmatpush1.bf16.msra.mxu1 %v4421_v7  ;;  %2529 = vmatprep.mubr.bf16.mxu1 %v4436_v10  ;;  %v4516_v7 = vld [vmem:[#allocation7 + $0x844] ss:$24 sps:$4 sm:$0xff]  }
  0xc5   : > { %2715 = vmatprep.subr.bf16.mxu1 %v4429_v11  ;;  %v4519_v10 = vld [vmem:[#allocation7 + $0x24c] ss:$24 sps:$4 sm:$0xff]   ;;  %v4514_v11 = vld [vmem:[#allocation7 + $0x840] ss:$24 sps:$4 sm:$0xff]  }
  0xc6   : > { %2603 = vmatpush1.bf16.msra.mxu0 %v4424_v12  ;;  %v4517_v12 = vld [vmem:[#allocation7 + $0x248] ss:$24 sps:$4 sm:$0xff]  }
  0xc7   : > { %2604 = vmatprep.subr.bf16.mxu0 %v4435_v15  ;;  %v4525_v15 = vld [vmem:[#allocation7 + $0x814] ss:$24 sps:$4 sm:$0xff]  }
  0xc8   : > { %2716 = vmatpush1.bf16.msra.mxu1 %v4427_v13  ;;  %v5552_v13 = vld [vmem:[%s5464_s13 + $0x120] ss:$24 sps:$4 sm:$0xff]  }
  0xc9   : > { %2417 = vmatmul.mubr.bf16.gmra.mxu0 %v5502_v14  ;;  %2717 = vmatprep.subr.bf16.mxu1 %v4441_v18  ;;  %v4531_v18 = vld [vmem:[#allocation7 + $0x21c] ss:$24 sps:$4 sm:$0xff]  }
  0xca   : > { %2605 = vmatpush1.bf16.msra.mxu0 %v4433_v16  ;;  %2426 = vmatprep.mubr.bf16.mxu0 %v5506_v20  ;;  %v4523_v16 = vld [vmem:[#allocation7 + $0x810] ss:$24 sps:$4 sm:$0xff]  }
  0xcb   : > { %2530 = vmatmul.mubr.bf16.gmra.mxu1 %v4438_v17  ;;  %2606 = vmatprep.subr.bf16.mxu0 %v4444_v21  ;;  %v4528_v17 = vld [vmem:[%s5464_s13 + $0x128] ss:$24 sps:$4 sm:$0xff]   ;;  %v5556_v21 = vld [vmem:[%s5464_s13 + $0x154] ss:$24 sps:$4 sm:$0xff]  }
  0xcc   : > { %2718 = vmatpush1.bf16.msra.mxu1 %v4439_v19  ;;  %2539 = vmatprep.mubr.bf16.mxu1 %v4454_v22  ;;  %v4529_v19 = vld [vmem:[#allocation7 + $0x218] ss:$24 sps:$4 sm:$0xff]   ;;  %v4534_v22 = vld [vmem:[#allocation7 + $0x7e4] ss:$24 sps:$4 sm:$0xff]  }
  0xcd   : > { %2719 = vmatprep.subr.bf16.mxu1 %v4447_v23  ;;  %v5559_v23 = vld [vmem:[%s5464_s13 + $0x15c] ss:$24 sps:$4 sm:$0xff]  }
  0xce   : > { %2607 = vmatpush1.bf16.msra.mxu0 %v4442_v24  ;;  %v4537_v24 = vld [vmem:[#allocation7 + $0x1ec] ss:$24 sps:$4 sm:$0xff]  }
  0xcf   : > { %2608 = vmatprep.subr.bf16.mxu0 %v4453_v27  ;;  %v4535_v27 = vld [vmem:[#allocation7 + $0x1e8] ss:$24 sps:$4 sm:$0xff]  }
  0xd0   : > { %2720 = vmatpush1.bf16.msra.mxu1 %v4445_v25  ;;  %v4532_v25 = vld [vmem:[#allocation7 + $0x7e0] ss:$24 sps:$4 sm:$0xff]  }
  0xd1   : > { %2427 = vmatmul.mubr.bf16.gmra.mxu0 %v5512_v26  ;;  %2721 = vmatprep.subr.bf16.mxu1 %v4459_v30  ;;  %v4541_v30 = vld [vmem:[#allocation7 + $0x7b0] ss:$24 sps:$4 sm:$0xff]  }
  0xd2   : > { %2609 = vmatpush1.bf16.msra.mxu0 %v4451_v28  ;;  %2436 = vmatprep.mubr.bf16.mxu0 %v5516_v32  ;;  %v4543_v28 = vld [vmem:[#allocation7 + $0x7b4] ss:$24 sps:$4 sm:$0xff]  }
  0xd3   : > { %2540 = vmatmul.mubr.bf16.gmra.mxu1 %v4456_v29  ;;  %2610 = vmatprep.subr.bf16.mxu0 %v4462_v33  ;;  %v5564_v29 = vld [vmem:[%s5464_s13 + $0x150] ss:$24 sps:$4 sm:$0xff]  }
  0xd4   : > { %2722 = vmatpush1.bf16.msra.mxu1 %v4457_v31  ;;  %2549 = vmatprep.mubr.bf16.mxu1 %v4472_v34  ;;  %v4549_v31 = vld [vmem:[#allocation7 + $0x1bc] ss:$24 sps:$4 sm:$0xff]   ;;  %v5568_v33 = vld [vmem:[%s5464_s13 + $0x158] ss:$24 sps:$4 sm:$0xff]  }
  0xd5   : > { %2723 = vmatprep.subr.bf16.mxu1 %v4465_v35  ;;  %v5571_v34 = vld [vmem:[%s5464_s13 + $0x14] ss:$24 sps:$4 sm:$0xff]  }
  0xd6   : > { %2611 = vmatpush1.bf16.msra.mxu0 %v4460_v36  ;;  %v4552_v35 = vld [vmem:[#allocation7 + $0x784] ss:$24 sps:$4 sm:$0xff]   ;;  %v4547_v36 = vld [vmem:[#allocation7 + $0x1b8] ss:$24 sps:$4 sm:$0xff]  }
  0xd7   : > { %2612 = vmatprep.subr.bf16.mxu0 %v4471_v39  ;;  %v4550_v39 = vld [vmem:[#allocation7 + $0x780] ss:$24 sps:$4 sm:$0xff]  }
  0xd8   : > { %2724 = vmatpush1.bf16.msra.mxu1 %v4463_v37  ;;  %v4555_v37 = vld [vmem:[#allocation7 + $0x18c] ss:$24 sps:$4 sm:$0xff]  }
  0xd9   : > { %2437 = vmatmul.mubr.bf16.gmra.mxu0 %v5522_v38  ;;  %2725 = vmatprep.subr.bf16.mxu1 %v4477_v42  ;;  %v5578_v42 = vld [vmem:[%s5464_s13 + $0x10] ss:$24 sps:$4 sm:$0xff]  }
  0xda   : > { %2613 = vmatpush1.bf16.msra.mxu0 %v4469_v40  ;;  %2446 = vmatprep.mubr.bf16.mxu0 %v5526_v44  ;;  %v4561_v40 = vld [vmem:[#allocation7 + $0x45c] ss:$24 sps:$4 sm:$0xff]  }
  0xdb   : > { %2550 = vmatmul.mubr.bf16.gmra.mxu1 %v4474_v41  ;;  %2614 = vmatprep.subr.bf16.mxu0 %v4480_v45  ;;  %v4553_v41 = vld [vmem:[#allocation7 + $0x188] ss:$24 sps:$4 sm:$0xff]   ;;  %v4559_v45 = vld [vmem:[#allocation7 + $0x458] ss:$24 sps:$4 sm:$0xff]  }
  0xdc   : > { %2726 = vmatpush1.bf16.msra.mxu1 %v4475_v43  ;;  %2559 = vmatprep.mubr.bf16.mxu1 %v4490_v46  ;;  %v4564_v43 = vld [vmem:[#allocation7 + $0x75c] ss:$24 sps:$4 sm:$0xff]  }
  0xdd   : > { %2727 = vmatprep.subr.bf16.mxu1 %v4483_v48  ;;  %v5581_v46 = vld [vmem:[%s5464_s13 + $0x44] ss:$24 sps:$4 sm:$0xff]  }
  0xde   : > { %2615 = vmatpush1.bf16.msra.mxu0 %v4478_v49  ;;  %v4567_v48 = vld [vmem:[#allocation7 + $0x42c] ss:$24 sps:$4 sm:$0xff]   ;;  %v4562_v49 = vld [vmem:[#allocation7 + $0x758] ss:$24 sps:$4 sm:$0xff]  }
  0xdf   : > { %2616 = vmatprep.subr.bf16.mxu0 %v4489_v52  ;;  %v4576_v52 = vld [vmem:[#allocation7 + $0x3fc] ss:$24 sps:$4 sm:$0xff]  }
  0xe0   : > { %2728 = vmatpush1.bf16.msra.mxu1 %v4481_v50  ;;  %v4570_v50 = vld [vmem:[#allocation7 + $0x72c] ss:$24 sps:$4 sm:$0xff]  }
  0xe1   : > { %2447 = vmatmul.mubr.bf16.gmra.mxu0 %v5532_v51  ;;  %2729 = vmatprep.subr.bf16.mxu1 %v4495_v55  ;;  %v4579_v55 = vld [vmem:[#allocation7 + $0x6fc] ss:$24 sps:$4 sm:$0xff]  }
  0xe2   : > { %2617 = vmatpush2.bf16.msra.mxu0 %v4487_v53  ;;  %2456 = vmatprep.mubr.bf16.mxu0 %v5536_v57  ;;  %v4568_v53 = vld [vmem:[#allocation7 + $0x728] ss:$24 sps:$4 sm:$0xff]  }
  0xe3   : > { %2560 = vmatmul.mubr.bf16.gmra.mxu1 %v4492_v54  ;;  %2618 = vmatprep.subr.bf16.mxu0 %v4498_v58  ;;  %v5588_v54 = vld [vmem:[%s5464_s13 + $0x40] ss:$24 sps:$4 sm:$0xff]   ;;  %v5591_v58 = vld [vmem:[%s5464_s13 + $0x74] ss:$24 sps:$4 sm:$0xff]  }
  0xe4   : > { %2730 = vmatpush2.bf16.msra.mxu1 %v4493_v56  ;;  %2569 = vmatprep.mubr.bf16.mxu1 %v4508_v59  ;;  %v4574_v56 = vld [vmem:[#allocation7 + $0x3f8] ss:$24 sps:$4 sm:$0xff]   ;;  %v4582_v59 = vld [vmem:[#allocation7 + $0x3cc] ss:$24 sps:$4 sm:$0xff]  }
  0xe5   : > { %2731 = vmatprep.subr.bf16.mxu1 %v4501_v60  ;;  %v4577_v60 = vld [vmem:[#allocation7 + $0x6f8] ss:$24 sps:$4 sm:$0xff]  }
  0xe6   : > { %2619 = vmatpush2.bf16.msra.mxu0 %v4496_v61  ;;  %v4591_v61 = vld [vmem:[#allocation7 + $0x39c] ss:$24 sps:$4 sm:$0xff]  }
  0xe7   : > { %2620 = vmatprep.subr.bf16.mxu0 %v4507_v0  ;;  %v5598_v0 = vld [vmem:[%s5464_s13 + $0x70] ss:$24 sps:$4 sm:$0xff]  }
  0xe8   : > { %2732 = vmatpush2.bf16.msra.mxu1 %v4499_v62  ;;  %v4583_v62 = vld [vmem:[#allocation7 + $0x6c8] ss:$24 sps:$4 sm:$0xff]  }
  0xe9   : > { %2457 = vmatmul.mubr.bf16.gmra.mxu0 %v5542_v63  ;;  %2733 = vmatprep.subr.bf16.mxu1 %v4513_v4  ;;  %v5601_v4 = vld [vmem:[%s5464_s13 + $0xa4] ss:$24 sps:$4 sm:$0xff]  }
  0xea   : > { %2621 = vmatpush2.bf16.msra.mxu0 %v4505_v1  ;;  %2466 = vmatprep.mubr.bf16.mxu0 %v5546_v6  ;;  %v4594_v1 = vld [vmem:[#allocation7 + $0x69c] ss:$24 sps:$4 sm:$0xff]  }
  0xeb   : > { %2570 = vmatmul.mubr.bf16.gmra.mxu1 %v4510_v3  ;;  %2622 = vmatprep.subr.bf16.mxu0 %v4516_v7  ;;  %v4589_v3 = vld [vmem:[#allocation7 + $0x398] ss:$24 sps:$4 sm:$0xff]  }
  0xec   : > { %2734 = vmatpush2.bf16.msra.mxu1 %v4511_v5  ;;  %2579 = vmatprep.mubr.bf16.mxu1 %v4526_v9  ;;  %v4597_v5 = vld [vmem:[#allocation7 + $0x36c] ss:$24 sps:$4 sm:$0xff]   ;;  %v4592_v7 = vld [vmem:[#allocation7 + $0x698] ss:$24 sps:$4 sm:$0xff]   ;;  %v4606_v9 = vld [vmem:[#allocation7 + $0x33c] ss:$24 sps:$4 sm:$0xff]  }
  0xed   : > { %2735 = vmatprep.subr.bf16.mxu1 %v4519_v10  ;;  %v4598_v10 = vld [vmem:[#allocation7 + $0x668] ss:$24 sps:$4 sm:$0xff]  }
  0xee   : > { %2623 = vmatpush2.bf16.msra.mxu0 %v4514_v11  ;;  %v5608_v11 = vld [vmem:[%s5464_s13 + $0xa0] ss:$24 sps:$4 sm:$0xff]  }
  0xef   : > { %2624 = vmatprep.subr.bf16.mxu0 %v4525_v15  ;;  %v4604_v15 = vld [vmem:[#allocation7 + $0x338] ss:$24 sps:$4 sm:$0xff]  }
  0xf0   : > { %2736 = vmatpush2.bf16.msra.mxu1 %v4517_v12  ;;  %v4609_v12 = vld [vmem:[#allocation7 + $0x63c] ss:$24 sps:$4 sm:$0xff]  }
  0xf1   : > { %2467 = vmatmul.mubr.bf16.gmra.mxu0 %v5552_v13  ;;  %2737 = vmatprep.subr.bf16.mxu1 %v4531_v18  ;;  %v4607_v18 = vld [vmem:[#allocation7 + $0x638] ss:$24 sps:$4 sm:$0xff]  }
  0xf2   : > { %2625 = vmatpush2.bf16.msra.mxu0 %v4523_v16  ;;  %2476 = vmatprep.mubr.bf16.mxu0 %v5556_v21  ;;  %v5611_v16 = vld [vmem:[%s5464_s13 + $0xd4] ss:$24 sps:$4 sm:$0xff]  }
  0xf3   : > { %2580 = vmatmul.mubr.bf16.gmra.mxu1 %v4528_v17  ;;  %2626 = vmatprep.subr.bf16.mxu0 %v4534_v22  ;;  %v4612_v17 = vld [vmem:[#allocation7 + $0x30c] ss:$24 sps:$4 sm:$0xff]   ;;  %v4613_v22 = vld [vmem:[#allocation7 + $0x608] ss:$24 sps:$4 sm:$0xff]  }
  0xf4   : > { %2738 = vmatpush2.bf16.msra.mxu1 %v4529_v19  ;;  %2589 = vmatprep.mubr.bf16.mxu1 %v5559_v23  ;;  %v4621_v19 = vld [vmem:[#allocation7 + $0x5dc] ss:$24 sps:$4 sm:$0xff]  }
  0xf5   : > { %2739 = vmatprep.subr.bf16.mxu1 %v4537_v24  ;;  %v5618_v24 = vld [vmem:[%s5464_s13 + $0xd0] ss:$24 sps:$4 sm:$0xff]  }
  0xf6   : > { %2627 = vmatpush2.bf16.msra.mxu0 %v4532_v25  ;;  %v4624_v25 = vld [vmem:[#allocation7 + $0x8dc] ss:$24 sps:$4 sm:$0xff]  }
  0xf7   : > { %2628 = vmatprep.subr.bf16.mxu0 %v4543_v28  ;;  %v5621_v28 = vld [vmem:[%s5464_s13 + $0x104] ss:$24 sps:$4 sm:$0xff]  }
  0xf8   : > { %2740 = vmatpush2.bf16.msra.mxu1 %v4535_v27  ;;  %v4619_v27 = vld [vmem:[#allocation7 + $0x5d8] ss:$24 sps:$4 sm:$0xff]  }
  0xf9   : > { %2477 = vmatmul.mubr.bf16.gmra.mxu0 %v5564_v29  ;;  %2741 = vmatprep.subr.bf16.mxu1 %v4549_v31  ;;  %v4622_v31 = vld [vmem:[#allocation7 + $0x8d8] ss:$24 sps:$4 sm:$0xff]  }
  0xfa   : > { %2629 = vmatpush2.bf16.msra.mxu0 %v4541_v30  ;;  %2632 = vmatprep.mubr.bf16.mxu0 %v5571_v34  ;;  %v4627_v30 = vld [vmem:[#allocation7 + $0x5ac] ss:$24 sps:$4 sm:$0xff]  }
  0xfb   : > { %2590 = vmatmul.mubr.bf16.gmra.mxu1 %v5568_v33  ;;  %2630 = vmatprep.subr.bf16.mxu0 %v4552_v35  ;;  %v4636_v35 = vld [vmem:[#allocation7 + $0x57c] ss:$24 sps:$4 sm:$0xff]  }
  0xfc   : > { %2742 = vmatpush2.bf16.msra.mxu1 %v4547_v36  ;;  %2745 = vmatprep.mubr.bf16.mxu1 %v5487_v47  ;;  %v4565_v47 = vld [vmem:[#allocation7 + $0x428] ss:$24 sps:$4 sm:$0xff]  }
  0xfd   : > { %2743 = vmatprep.subr.bf16.mxu1 %v4555_v37  ;;  %v4628_v36 = vld [vmem:[#allocation7 + $0x8a8] ss:$24 sps:$4 sm:$0xff]  }
  0xfe   : > { %2631 = vmatpush2.bf16.msra.mxu0 %v4550_v39  ;;  %v5628_v37 = vld [vmem:[%s5464_s13 + $0x100] ss:$24 sps:$4 sm:$0xff]   ;;  %v4639_v39 = vld [vmem:[#allocation7 + $0x87c] ss:$24 sps:$4 sm:$0xff]  }
  0xff   : > { %2826 = vmatprep.subr.bf16.mxu0 %v4561_v40  ;;  %v4634_v40 = vld [vmem:[#allocation7 + $0x578] ss:$24 sps:$4 sm:$0xff]  }
 0x100   : > { %2744 = vmatpush2.bf16.msra.mxu1 %v4553_v41  ;;  %v5631_v41 = vld [vmem:[%s5464_s13 + $0x134] ss:$24 sps:$4 sm:$0xff]  }
 0x101   : > { %2633 = vmatmul.mubr.bf16.vlgmr.msra.gmra.mxu0 %v5578_v42  ;;  %2939 = vmatprep.subr.bf16.mxu1 %v4564_v43  ;;  %v4642_v43 = vld [vmem:[#allocation7 + $0x54c] ss:$24 sps:$4 sm:$0xff]  }
 0x102   : > { %2827 = vmatpush1.bf16.msra.mxu0 %v4559_v45  ;;  %2642 = vmatprep.mubr.bf16.mxu0 %v5581_v46  ;;  %v4637_v45 = vld [vmem:[#allocation7 + $0x878] ss:$24 sps:$4 sm:$0xff]  }
 0x103   : > { %2746 = vmatmul.mubr.bf16.vlgmr.msra.gmra.mxu1 %v5492_v2  ;;  %2828 = vmatprep.subr.bf16.mxu0 %v4567_v48  ;;  %v4585_v2 = vld [vmem:[#allocation7 + $0x6cc] ss:$24 sps:$4 sm:$0xff]   ;;  %v4651_v48 = vld [vmem:[#allocation7 + $0x51c] ss:$24 sps:$4 sm:$0xff]  }
 0x104   : > { %2940 = vmatpush1.bf16.msra.mxu1 %v4562_v49  ;;  %2755 = vmatprep.mubr.bf16.mxu1 %v5496_v8  ;;  %v4580_v8 = vld [vmem:[#allocation7 + $0x3c8] ss:$24 sps:$4 sm:$0xff]  }
 0x105   : > { %2941 = vmatprep.subr.bf16.mxu1 %v4570_v50  ;;  %v4643_v49 = vld [vmem:[#allocation7 + $0x848] ss:$24 sps:$4 sm:$0xff]  }
 0x106   : > { %2829 = vmatpush1.bf16.msra.mxu0 %v4565_v47  ;;  %v5638_v50 = vld [vmem:[%s5464_s13 + $0x130] ss:$24 sps:$4 sm:$0xff]   ;;  %v4654_v47 = vld [vmem:[#allocation7 + $0x81c] ss:$24 sps:$4 sm:$0xff]  }
 0x107   : > { %2830 = vmatprep.subr.bf16.mxu0 %v4576_v52  ;;  %v4649_v52 = vld [vmem:[#allocation7 + $0x518] ss:$24 sps:$4 sm:$0xff]  }
 0x108   : > { %2942 = vmatpush1.bf16.msra.mxu1 %v4568_v53  ;;  %v5641_v53 = vld [vmem:[%s5464_s13 + $0x164] ss:$24 sps:$4 sm:$0xff]  }
 0x109   : > { %2643 = vmatmul.mubr.bf16.gmra.mxu0 %v5588_v54  ;;  %2943 = vmatprep.subr.bf16.mxu1 %v4579_v55  ;;  %v4657_v55 = vld [vmem:[#allocation7 + $0x4ec] ss:$24 sps:$4 sm:$0xff]  }
 0x10a   : > { %2831 = vmatpush1.bf16.msra.mxu0 %v4574_v56  ;;  %2652 = vmatprep.mubr.bf16.mxu0 %v5591_v58  ;;  %v4652_v56 = vld [vmem:[#allocation7 + $0x818] ss:$24 sps:$4 sm:$0xff]  }
 0x10b   : > { %2756 = vmatmul.mubr.bf16.gmra.mxu1 %v5502_v14  ;;  %2832 = vmatprep.subr.bf16.mxu0 %v4582_v59  ;;  %v4600_v14 = vld [vmem:[#allocation7 + $0x66c] ss:$24 sps:$4 sm:$0xff]   ;;  %v4655_v59 = vld [vmem:[#allocation7 + $0x4e8] ss:$24 sps:$4 sm:$0xff]  }
 0x10c   : > { %2944 = vmatpush1.bf16.msra.mxu1 %v4577_v60  ;;  %2765 = vmatprep.mubr.bf16.mxu1 %v5506_v20  ;;  %v4595_v20 = vld [vmem:[#allocation7 + $0x368] ss:$24 sps:$4 sm:$0xff]  }
 0x10d   : > { %2945 = vmatprep.subr.bf16.mxu1 %v4585_v2  ;;  %v4658_v60 = vld [vmem:[#allocation7 + $0x7e8] ss:$24 sps:$4 sm:$0xff]  }
 0x10e   : > { %2833 = vmatpush1.bf16.msra.mxu0 %v4580_v8  ;;  %v5648_v2 = vld [vmem:[%s5464_s13 + $0x160] ss:$24 sps:$4 sm:$0xff]   ;;  %v4669_v8 = vld [vmem:[#allocation7 + $0x7bc] ss:$24 sps:$4 sm:$0xff]  }
 0x10f   : > { %2834 = vmatprep.subr.bf16.mxu0 %v4591_v61  ;;  %v4664_v61 = vld [vmem:[#allocation7 + $0x4b8] ss:$24 sps:$4 sm:$0xff]  }
 0x110   : > { %2946 = vmatpush1.bf16.msra.mxu1 %v4583_v62  ;;  %v4672_v62 = vld [vmem:[#allocation7 + $0x48c] ss:$24 sps:$4 sm:$0xff]  }
 0x111   : > { %2653 = vmatmul.mubr.bf16.gmra.mxu0 %v5598_v0  ;;  %2947 = vmatprep.subr.bf16.mxu1 %v4594_v1  ;;  %v4667_v1 = vld [vmem:[#allocation7 + $0x7b8] ss:$24 sps:$4 sm:$0xff]  }
 0x112   : > { %2835 = vmatpush1.bf16.msra.mxu0 %v4589_v3  ;;  %2662 = vmatprep.mubr.bf16.mxu0 %v5601_v4  ;;  %v4670_v3 = vld [vmem:[#allocation7 + $0x488] ss:$24 sps:$4 sm:$0xff]  }
 0x113   : > { %2766 = vmatmul.mubr.bf16.gmra.mxu1 %v5512_v26  ;;  %2836 = vmatprep.subr.bf16.mxu0 %v4597_v5  ;;  %v4615_v26 = vld [vmem:[#allocation7 + $0x60c] ss:$24 sps:$4 sm:$0xff]   ;;  %v5652_v5 = vld [vmem:[%s5464_s13 + $0xc] ss:$24 sps:$4 sm:$0xff]  }
 0x114   : > { %2948 = vmatpush1.bf16.msra.mxu1 %v4592_v7  ;;  %2775 = vmatprep.mubr.bf16.mxu1 %v5516_v32  ;;  %v4610_v32 = vld [vmem:[#allocation7 + $0x308] ss:$24 sps:$4 sm:$0xff]  }
 0x115   : > { %2949 = vmatprep.subr.bf16.mxu1 %v4600_v14  ;;  %v4673_v7 = vld [vmem:[#allocation7 + $0x788] ss:$24 sps:$4 sm:$0xff]   ;;  %v4681_v14 = vld [vmem:[#allocation7 + $0x464] ss:$24 sps:$4 sm:$0xff]  }
 0x116   : > { %2837 = vmatpush1.bf16.msra.mxu0 %v4595_v20  ;;  %v4676_v20 = vld [vmem:[#allocation7 + $0x160] ss:$24 sps:$4 sm:$0xff]  }
 0x117   : > { %2838 = vmatprep.subr.bf16.mxu0 %v4606_v9  ;;  %v4684_v9 = vld [vmem:[#allocation7 + $0x134] ss:$24 sps:$4 sm:$0xff]  }
 0x118   : > { %2950 = vmatpush1.bf16.msra.mxu1 %v4598_v10  ;;  %v4679_v10 = vld [vmem:[#allocation7 + $0x460] ss:$24 sps:$4 sm:$0xff]  }
 0x119   : > { %2663 = vmatmul.mubr.bf16.gmra.mxu0 %v5608_v11  ;;  %2951 = vmatprep.subr.bf16.mxu1 %v4609_v12  ;;  %v5658_v12 = vld [vmem:[%s5464_s13 + $0x8] ss:$24 sps:$4 sm:$0xff]  }
 0x11a   : > { %2839 = vmatpush1.bf16.msra.mxu0 %v4604_v15  ;;  %2672 = vmatprep.mubr.bf16.mxu0 %v5611_v16  ;;  %v4682_v15 = vld [vmem:[#allocation7 + $0x130] ss:$24 sps:$4 sm:$0xff]  }
 0x11b   : > { %2776 = vmatmul.mubr.bf16.gmra.mxu1 %v5522_v38  ;;  %2840 = vmatprep.subr.bf16.mxu0 %v4612_v17  ;;  %v4630_v38 = vld [vmem:[#allocation7 + $0x8ac] ss:$24 sps:$4 sm:$0xff]  }
 0x11c   : > { %2952 = vmatpush1.bf16.msra.mxu1 %v4607_v18  ;;  %2785 = vmatprep.mubr.bf16.mxu1 %v5526_v44  ;;  %v4625_v44 = vld [vmem:[#allocation7 + $0x5a8] ss:$24 sps:$4 sm:$0xff]   ;;  %v5662_v17 = vld [vmem:[%s5464_s13 + $0x3c] ss:$24 sps:$4 sm:$0xff]  }
 0x11d   : > { %2953 = vmatprep.subr.bf16.mxu1 %v4615_v26  ;;  %v4685_v18 = vld [vmem:[#allocation7 + $0x430] ss:$24 sps:$4 sm:$0xff]   ;;  %v4693_v26 = vld [vmem:[#allocation7 + $0x404] ss:$24 sps:$4 sm:$0xff]  }
 0x11e   : > { %2841 = vmatpush1.bf16.msra.mxu0 %v4610_v32  ;;  %v4688_v32 = vld [vmem:[#allocation7 + $0x100] ss:$24 sps:$4 sm:$0xff]  }
 0x11f   : > { %2842 = vmatprep.subr.bf16.mxu0 %v4621_v19  ;;  %v4696_v19 = vld [vmem:[#allocation7 + $0xd4] ss:$24 sps:$4 sm:$0xff]  }
 0x120   : > { %2954 = vmatpush1.bf16.msra.mxu1 %v4613_v22  ;;  %v4691_v22 = vld [vmem:[#allocation7 + $0x400] ss:$24 sps:$4 sm:$0xff]  }
 0x121   : > { %2673 = vmatmul.mubr.bf16.gmra.mxu0 %v5618_v24  ;;  %2955 = vmatprep.subr.bf16.mxu1 %v4624_v25  ;;  %v5668_v25 = vld [vmem:[%s5464_s13 + $0x38] ss:$24 sps:$4 sm:$0xff]  }
 0x122   : > { %2843 = vmatpush2.bf16.msra.mxu0 %v4619_v27  ;;  %2682 = vmatprep.mubr.bf16.mxu0 %v5621_v28  ;;  %v4694_v27 = vld [vmem:[#allocation7 + $0xd0] ss:$24 sps:$4 sm:$0xff]  }
 0x123   : > { %2786 = vmatmul.mubr.bf16.gmra.mxu1 %v5532_v51  ;;  %2844 = vmatprep.subr.bf16.mxu0 %v4627_v30  ;;  %v4645_v51 = vld [vmem:[#allocation7 + $0x84c] ss:$24 sps:$4 sm:$0xff]   ;;  %v5672_v30 = vld [vmem:[%s5464_s13 + $0x6c] ss:$24 sps:$4 sm:$0xff]  }
 0x124   : > { %2956 = vmatpush2.bf16.msra.mxu1 %v4622_v31  ;;  %2795 = vmatprep.mubr.bf16.mxu1 %v5536_v57  ;;  %v4640_v57 = vld [vmem:[#allocation7 + $0x548] ss:$24 sps:$4 sm:$0xff]  }
 0x125   : > { %2957 = vmatprep.subr.bf16.mxu1 %v4630_v38  ;;  %v4697_v31 = vld [vmem:[#allocation7 + $0x3d0] ss:$24 sps:$4 sm:$0xff]   ;;  %v4705_v38 = vld [vmem:[#allocation7 + $0x3a4] ss:$24 sps:$4 sm:$0xff]  }
 0x126   : > { %2845 = vmatpush2.bf16.msra.mxu0 %v4625_v44  ;;  %v4700_v44 = vld [vmem:[#allocation7 + $0xa0] ss:$24 sps:$4 sm:$0xff]  }
 0x127   : > { %2846 = vmatprep.subr.bf16.mxu0 %v4636_v35  ;;  %v4708_v35 = vld [vmem:[#allocation7 + $0x74] ss:$24 sps:$4 sm:$0xff]  }
 0x128   : > { %2958 = vmatpush2.bf16.msra.mxu1 %v4628_v36  ;;  %v4703_v36 = vld [vmem:[#allocation7 + $0x3a0] ss:$24 sps:$4 sm:$0xff]  }
 0x129   : > { %2683 = vmatmul.mubr.bf16.gmra.mxu0 %v5628_v37  ;;  %2959 = vmatprep.subr.bf16.mxu1 %v4639_v39  ;;  %v5678_v39 = vld [vmem:[%s5464_s13 + $0x68] ss:$24 sps:$4 sm:$0xff]  }
 0x12a   : > { %2847 = vmatpush2.bf16.msra.mxu0 %v4634_v40  ;;  %2692 = vmatprep.mubr.bf16.mxu0 %v5631_v41  ;;  %v4706_v40 = vld [vmem:[#allocation7 + $0x70] ss:$24 sps:$4 sm:$0xff]  }
 0x12b   : > { %2796 = vmatmul.mubr.bf16.gmra.mxu1 %v5542_v63  ;;  %2848 = vmatprep.subr.bf16.mxu0 %v4642_v43  ;;  %v4660_v63 = vld [vmem:[#allocation7 + $0x7ec] ss:$24 sps:$4 sm:$0xff]  }
 0x12c   : > { %2960 = vmatpush2.bf16.msra.mxu1 %v4637_v45  ;;  %2805 = vmatprep.mubr.bf16.mxu1 %v5546_v6  ;;  %v4666_v6 = vld [vmem:[#allocation7 + $0x4bc] ss:$24 sps:$4 sm:$0xff]   ;;  %v5682_v43 = vld [vmem:[%s5464_s13 + $0x9c] ss:$24 sps:$4 sm:$0xff]   ;;  %v4709_v45 = vld [vmem:[#allocation7 + $0x370] ss:$24 sps:$4 sm:$0xff]  }
 0x12d   : > { %2961 = vmatprep.subr.bf16.mxu1 %v4645_v51  ;;  %v4717_v51 = vld [vmem:[#allocation7 + $0x344] ss:$24 sps:$4 sm:$0xff]  }
 0x12e   : > { %2849 = vmatpush2.bf16.msra.mxu0 %v4640_v57  ;;  %v4712_v57 = vld [vmem:[#allocation7 + $0x40] ss:$24 sps:$4 sm:$0xff]  }
 0x12f   : > { %2850 = vmatprep.subr.bf16.mxu0 %v4651_v48  ;;  %v4720_v48 = vld [vmem:[#allocation7 + $0x14] ss:$24 sps:$4 sm:$0xff]  }
 0x130   : > { %2962 = vmatpush2.bf16.msra.mxu1 %v4643_v49  ;;  %v4715_v49 = vld [vmem:[#allocation7 + $0x340] ss:$24 sps:$4 sm:$0xff]  }
 0x131   : > { %2693 = vmatmul.mubr.bf16.gmra.mxu0 %v5638_v50  ;;  %2963 = vmatprep.subr.bf16.mxu1 %v4654_v47  ;;  %v5688_v47 = vld [vmem:[%s5464_s13 + $0x98] ss:$24 sps:$4 sm:$0xff]  }
 0x132   : > { %2851 = vmatpush2.bf16.msra.mxu0 %v4649_v52  ;;  %2702 = vmatprep.mubr.bf16.mxu0 %v5641_v53  ;;  %v4718_v52 = vld [vmem:[#allocation7 + $0x10] ss:$24 sps:$4 sm:$0xff]  }
 0x133   : > { %2806 = vmatmul.mubr.bf16.gmra.mxu1 %v5552_v13  ;;  %2852 = vmatprep.subr.bf16.mxu0 %v4657_v55  ;;  %v4675_v13 = vld [vmem:[#allocation7 + $0x78c] ss:$24 sps:$4 sm:$0xff]   ;;  %v5692_v55 = vld [vmem:[%s5464_s13 + $0xcc] ss:$24 sps:$4 sm:$0xff]  }
 0x134   : > { %2964 = vmatpush2.bf16.msra.mxu1 %v4652_v56  ;;  %2815 = vmatprep.mubr.bf16.mxu1 %v5556_v21  ;;  %v4678_v21 = vld [vmem:[#allocation7 + $0x164] ss:$24 sps:$4 sm:$0xff]   ;;  %v4721_v56 = vld [vmem:[#allocation7 + $0x310] ss:$24 sps:$4 sm:$0xff]  }
 0x135   : > { %2965 = vmatprep.subr.bf16.mxu1 %v4660_v63  ;;  %v4729_v63 = vld [vmem:[#allocation7 + $0x5e4] ss:$24 sps:$4 sm:$0xff]  }
 0x136   : > { %2853 = vmatpush2.bf16.msra.mxu0 %v4655_v59  ;;  %v4724_v59 = vld [vmem:[#allocation7 + $0x2e0] ss:$24 sps:$4 sm:$0xff]  }
 0x137   : > { %2854 = vmatprep.subr.bf16.mxu0 %v4666_v6  ;;  %v4732_v6 = vld [vmem:[#allocation7 + $0x2b4] ss:$24 sps:$4 sm:$0xff]  }
 0x138   : > { %2966 = vmatpush2.bf16.msra.mxu1 %v4658_v60  ;;  %v4727_v60 = vld [vmem:[#allocation7 + $0x5e0] ss:$24 sps:$4 sm:$0xff]  }
 0x139   : > { %2703 = vmatmul.mubr.bf16.gmra.mxu0 %v5648_v2  ;;  %2967 = vmatprep.subr.bf16.mxu1 %v4669_v8  ;;  %v5698_v8 = vld [vmem:[%s5464_s13 + $0xc8] ss:$24 sps:$4 sm:$0xff]  }
 0x13a   : > { %2855 = vmatpush2.bf16.msra.mxu0 %v4664_v61  ;;  %2858 = vmatprep.mubr.bf16.mxu0 %v5652_v5  ;;  %v4730_v61 = vld [vmem:[#allocation7 + $0x2b0] ss:$24 sps:$4 sm:$0xff]  }
 0x13b   : > { %2816 = vmatmul.mubr.bf16.gmra.mxu1 %v5564_v29  ;;  %2856 = vmatprep.subr.bf16.mxu0 %v4672_v62  ;;  %v4687_v29 = vld [vmem:[#allocation7 + $0x434] ss:$24 sps:$4 sm:$0xff]  }
 0x13c   : > { %2968 = vmatpush2.bf16.msra.mxu1 %v4667_v1  ;;  %2971 = vmatprep.mubr.bf16.mxu1 %v5571_v34  ;;  %v4690_v34 = vld [vmem:[#allocation7 + $0x104] ss:$24 sps:$4 sm:$0xff]   ;;  %v4733_v1 = vld [vmem:[#allocation7 + $0x5b0] ss:$24 sps:$4 sm:$0xff]  }
 0x13d   : > { %2969 = vmatprep.subr.bf16.mxu1 %v4675_v13  ;;  %v5702_v62 = vld [vmem:[%s5464_s13 + $0xfc] ss:$24 sps:$4 sm:$0xff]  }
 0x13e   : > { %2857 = vmatpush2.bf16.msra.mxu0 %v4670_v3  ;;  %v4741_v13 = vld [vmem:[#allocation7 + $0x584] ss:$24 sps:$4 sm:$0xff]   ;;  %v4736_v3 = vld [vmem:[#allocation7 + $0x280] ss:$24 sps:$4 sm:$0xff]  }
 0x13f   : > { %3052 = vmatprep.subr.bf16.mxu0 %v4678_v21  ;;  %v4744_v21 = vld [vmem:[#allocation7 + $0x254] ss:$24 sps:$4 sm:$0xff]  }
 0x140   : > { %2970 = vmatpush2.bf16.msra.mxu1 %v4673_v7  ;;  %v4739_v7 = vld [vmem:[#allocation7 + $0x580] ss:$24 sps:$4 sm:$0xff]  }
 0x141   : > { %2859 = vmatmul.mubr.bf16.vlgmr.msra.gmra.mxu0 %v5658_v12  ;;  %3165 = vmatprep.subr.bf16.mxu1 %v4681_v14  ;;  %v5708_v14 = vld [vmem:[%s5464_s13 + $0xf8] ss:$24 sps:$4 sm:$0xff]  }
 0x142   : > { %3053 = vmatpush1.bf16.msra.mxu0 %v4676_v20  ;;  %2868 = vmatprep.mubr.bf16.mxu0 %v5662_v17  ;;  %v4742_v20 = vld [vmem:[#allocation7 + $0x250] ss:$24 sps:$4 sm:$0xff]  }
 0x143   : > { %2972 = vmatmul.mubr.bf16.vlgmr.msra.gmra.mxu1 %v5578_v42  ;;  %3054 = vmatprep.subr.bf16.mxu0 %v4684_v9  ;;  %v4699_v42 = vld [vmem:[#allocation7 + $0x3d4] ss:$24 sps:$4 sm:$0xff]  }
 0x144   : > { %3166 = vmatpush1.bf16.msra.mxu1 %v4679_v10  ;;  %2981 = vmatprep.mubr.bf16.mxu1 %v5581_v46  ;;  %v4702_v46 = vld [vmem:[#allocation7 + $0xa4] ss:$24 sps:$4 sm:$0xff]   ;;  %v4745_v10 = vld [vmem:[#allocation7 + $0x550] ss:$24 sps:$4 sm:$0xff]  }
 0x145   : > { %3167 = vmatprep.subr.bf16.mxu1 %v4687_v29  ;;  %v5712_v9 = vld [vmem:[%s5464_s13 + $0x12c] ss:$24 sps:$4 sm:$0xff]  }
 0x146   : > { %3055 = vmatpush1.bf16.msra.mxu0 %v4682_v15  ;;  %v4753_v29 = vld [vmem:[#allocation7 + $0x524] ss:$24 sps:$4 sm:$0xff]   ;;  %v4748_v15 = vld [vmem:[#allocation7 + $0x220] ss:$24 sps:$4 sm:$0xff]  }
 0x147   : > { %3056 = vmatprep.subr.bf16.mxu0 %v4690_v34  ;;  %v4756_v34 = vld [vmem:[#allocation7 + $0x1f4] ss:$24 sps:$4 sm:$0xff]  }
 0x148   : > { %3168 = vmatpush1.bf16.msra.mxu1 %v4685_v18  ;;  %v4751_v18 = vld [vmem:[#allocation7 + $0x520] ss:$24 sps:$4 sm:$0xff]  }
 0x149   : > { %2869 = vmatmul.mubr.bf16.gmra.mxu0 %v5668_v25  ;;  %3169 = vmatprep.subr.bf16.mxu1 %v4693_v26  ;;  %v5718_v26 = vld [vmem:[%s5464_s13 + $0x128] ss:$24 sps:$4 sm:$0xff]  }
 0x14a   : > { %3057 = vmatpush1.bf16.msra.mxu0 %v4688_v32  ;;  %2878 = vmatprep.mubr.bf16.mxu0 %v5672_v30  ;;  %v4754_v32 = vld [vmem:[#allocation7 + $0x1f0] ss:$24 sps:$4 sm:$0xff]  }
 0x14b   : > { %2982 = vmatmul.mubr.bf16.gmra.mxu1 %v5588_v54  ;;  %3058 = vmatprep.subr.bf16.mxu0 %v4696_v19  ;;  %v4711_v54 = vld [vmem:[#allocation7 + $0x374] ss:$24 sps:$4 sm:$0xff]   ;;  %v664_v19 = vlaneseq }
 0x14c   : > { %3170 = vmatpush1.bf16.msra.mxu1 %v4691_v22  ;;  %2991 = vmatprep.mubr.bf16.mxu1 %v5591_v58  ;;  %v4714_v58 = vld [vmem:[#allocation7 + $0x44] ss:$24 sps:$4 sm:$0xff]   ;;  %v4757_v22 = vld [vmem:[#allocation7 + $0x4f0] ss:$24 sps:$4 sm:$0xff]  }
 0x14d   : > { %3171 = vmatprep.subr.bf16.mxu1 %v4699_v42  ;;  %v4765_v42 = vld [vmem:[#allocation7 + $0x4c4] ss:$24 sps:$4 sm:$0xff]  }
 0x14e   : > { %3059 = vmatpush1.bf16.msra.mxu0 %v4694_v27  ;;  %v4760_v27 = vld [vmem:[#allocation7 + $0x1c0] ss:$24 sps:$4 sm:$0xff]  }
 0x14f   : > { %3060 = vmatprep.subr.bf16.mxu0 %v4702_v46  ;;  %v5724_v46 = vshrl.u32 %v664_v19, 7 }
 0x150   : > { %3172 = vmatpush1.bf16.msra.mxu1 %v4697_v31  ;;  %v4768_v31 = vld [vmem:[#allocation7 + $0x194] ss:$24 sps:$4 sm:$0xff]  }
 0x151   : > { %2879 = vmatmul.mubr.bf16.gmra.mxu0 %v5678_v39  ;;  %3173 = vmatprep.subr.bf16.mxu1 %v4705_v38  ;;  %6595 = vst [vmem:[#allocation16_spill] sm:$0xff] %v5724_v46  ;;  %v4766_v38 = vld [vmem:[#allocation7 + $0x190] ss:$24 sps:$4 sm:$0xff]  }
 0x152   : > { %3061 = vmatpush1.bf16.msra.mxu0 %v4700_v44  ;;  %2888 = vmatprep.mubr.bf16.mxu0 %v5682_v43  ;;  %v5030_v44 = vld [vmem:[%s5464_s13 + $0x4] ss:$24 sps:$4 sm:$0xff]  }
 0x153   : > { %2992 = vmatmul.mubr.bf16.gmra.mxu1 %v5598_v0  ;;  %3062 = vmatprep.subr.bf16.mxu0 %v4708_v35  ;;  %v4723_v0 = vld [vmem:[#allocation7 + $0x314] ss:$24 sps:$4 sm:$0xff]   ;;  %v5730_v35 = vld [vmem:[#allocation8] sm:$0x3f] }
 0x154   : > { %3174 = vmatpush1.bf16.msra.mxu1 %v4703_v36  ;;  %3001 = vmatprep.mubr.bf16.mxu1 %v5601_v4  ;;  %v4726_v4 = vld [vmem:[#allocation7 + $0x2e4] ss:$24 sps:$4 sm:$0xff]  }
 0x155   : > { %3175 = vmatprep.subr.bf16.mxu1 %v4711_v54  ;;  %v4774_v36 = vld [vmem:[#allocation7 + $0x764] ss:$24 sps:$4 sm:$0xff]   ;;  %v4769_v54 = vld [vmem:[#allocation7 + $0x490] ss:$24 sps:$4 sm:$0xff]  }
 0x156   : > { %3063 = vmatpush1.bf16.msra.mxu0 %v4706_v40 }
 0x157   : > { %3064 = vmatprep.subr.bf16.mxu0 %v4714_v58  ;;  %v4772_v58 = vld [vmem:[#allocation7 + $0x760] ss:$24 sps:$4 sm:$0xff]  }
 0x158   : > { %3176 = vmatpush1.bf16.msra.mxu1 %v4709_v45 }
 0x159   : > { %2889 = vmatmul.mubr.bf16.gmra.mxu0 %v5688_v47  ;;  %3177 = vmatprep.subr.bf16.mxu1 %v4717_v51 }
 0x15a   : > { %3065 = vmatpush1.bf16.msra.mxu0 %v4712_v57  ;;  %2898 = vmatprep.mubr.bf16.mxu0 %v5692_v55  ;;  %v5031_v57 = vld [vmem:[%s5464_s13] ss:$24 sps:$4 sm:$0xff]  }
 0x15b   : > { %3002 = vmatmul.mubr.bf16.gmra.mxu1 %v5608_v11  ;;  %3066 = vmatprep.subr.bf16.mxu0 %v4720_v48  ;;  %v4735_v11 = vld [vmem:[#allocation7 + $0x5b4] ss:$24 sps:$4 sm:$0xff]   ;;  %v4775_v48 = vld [vmem:[#allocation7 + $0x730] ss:$24 sps:$4 sm:$0xff]  }
 0x15c   : > { %3178 = vmatpush1.bf16.msra.mxu1 %v4715_v49  ;;  %3011 = vmatprep.mubr.bf16.mxu1 %v5611_v16  ;;  %v4738_v16 = vld [vmem:[#allocation7 + $0x284] ss:$24 sps:$4 sm:$0xff]  }
 0x15d   : > { %3179 = vmatprep.subr.bf16.mxu1 %v4723_v0  ;;  %v5032_v49 = vld [vmem:[%s5464_s13 + $0x34] ss:$24 sps:$4 sm:$0xff]  }
 0x15e   : > { %3067 = vmatpush1.bf16.msra.mxu0 %v4718_v52 }
 0x15f   : > { %3068 = vmatprep.subr.bf16.mxu0 %v4726_v4  ;;  %v4780_v4 = vld [vmem:[#allocation7 + $0x704] ss:$24 sps:$4 sm:$0xff]  }
 0x160   : > { %3180 = vmatpush1.bf16.msra.mxu1 %v4721_v56 }
 0x161   : > { %2899 = vmatmul.mubr.bf16.gmra.mxu0 %v5698_v8  ;;  %3181 = vmatprep.subr.bf16.mxu1 %v4729_v63 }
 0x162   : > { %3069 = vmatpush2.bf16.msra.mxu0 %v4724_v59  ;;  %2908 = vmatprep.mubr.bf16.mxu0 %v5702_v62 }
 0x163   : > { %3012 = vmatmul.mubr.bf16.gmra.mxu1 %v5618_v24  ;;  %3070 = vmatprep.subr.bf16.mxu0 %v4732_v6  ;;  %v4747_v24 = vld [vmem:[#allocation7 + $0x554] ss:$24 sps:$4 sm:$0xff]  }
 0x164   : > { %3182 = vmatpush2.bf16.msra.mxu1 %v4727_v60  ;;  %3021 = vmatprep.mubr.bf16.mxu1 %v5621_v28  ;;  %v4750_v28 = vld [vmem:[#allocation7 + $0x224] ss:$24 sps:$4 sm:$0xff]  }
 0x165   : > { %3183 = vmatprep.subr.bf16.mxu1 %v4735_v11 }
 0x166   : > { %3071 = vmatpush2.bf16.msra.mxu0 %v4730_v61  ;;  %v4778_v61 = vld [vmem:[#allocation7 + $0x700] ss:$24 sps:$4 sm:$0xff]  }
 0x167   : > { %3072 = vmatprep.subr.bf16.mxu0 %v4738_v16 }
 0x168   : > { %3184 = vmatpush2.bf16.msra.mxu1 %v4733_v1  ;;  %v4783_v1 = vld [vmem:[#allocation7 + $0x6d4] ss:$24 sps:$4 sm:$0xff]  }
 0x169   : > { %2909 = vmatmul.mubr.bf16.gmra.mxu0 %v5708_v14  ;;  %3185 = vmatprep.subr.bf16.mxu1 %v4741_v13 }
 0x16a   : > { %3073 = vmatpush2.bf16.msra.mxu0 %v4736_v3  ;;  %2918 = vmatprep.mubr.bf16.mxu0 %v5712_v9 }
 0x16b   : > { %3022 = vmatmul.mubr.bf16.gmra.mxu1 %v5628_v37  ;;  %3074 = vmatprep.subr.bf16.mxu0 %v4744_v21  ;;  %v4759_v37 = vld [vmem:[#allocation7 + $0x4f4] ss:$24 sps:$4 sm:$0xff]  }
 0x16c   : > { %3186 = vmatpush2.bf16.msra.mxu1 %v4739_v7  ;;  %3031 = vmatprep.mubr.bf16.mxu1 %v5631_v41  ;;  %v4762_v41 = vld [vmem:[#allocation7 + $0x1c4] ss:$24 sps:$4 sm:$0xff]  }
 0x16d   : > { %3187 = vmatprep.subr.bf16.mxu1 %v4747_v24 }
 0x16e   : > { %3075 = vmatpush2.bf16.msra.mxu0 %v4742_v20 }
 0x16f   : > { %3076 = vmatprep.subr.bf16.mxu0 %v4750_v28  ;;  %v4781_v28 = vld [vmem:[#allocation7 + $0x6d0] ss:$24 sps:$4 sm:$0xff]  }
 0x170   : > { %3188 = vmatpush2.bf16.msra.mxu1 %v4745_v10  ;;  %v5034_v10 = vld [vmem:[%s5464_s13 + $0x64] ss:$24 sps:$4 sm:$0xff]  }
 0x171   : > { %2919 = vmatmul.mubr.bf16.gmra.mxu0 %v5718_v26  ;;  %3189 = vmatprep.subr.bf16.mxu1 %v4753_v29 }
 0x172   : > { %3077 = vmatpush2.bf16.msra.mxu0 %v4748_v15  ;;  %2928 = vmatprep.mubr.bf16.mxu0 %v5559_v23  ;;  %v4763_v23 = vld [vmem:[#allocation7 + $0x4c0] ss:$24 sps:$4 sm:$0xff]  }
 0x173   : > { %3032 = vmatmul.mubr.bf16.gmra.mxu1 %v5638_v50  ;;  %3078 = vmatprep.subr.bf16.mxu0 %v4756_v34  ;;  %v4771_v50 = vld [vmem:[#allocation7 + $0x494] ss:$24 sps:$4 sm:$0xff]   ;;  %v4786_v34 = vld [vmem:[#allocation7 + $0x6a4] ss:$24 sps:$4 sm:$0xff]  }
 0x174   : > { %3190 = vmatpush2.bf16.msra.mxu1 %v4751_v18  ;;  %3041 = vmatprep.mubr.bf16.mxu1 %v5641_v53  ;;  %v666_v53 = vsub.s32 0, %v5724_v46 }
 0x175   : > { %3191 = vmatprep.subr.bf16.mxu1 %v4759_v37 }
 0x176   : > { %3079 = vmatpush2.bf16.msra.mxu0 %v4754_v32  ;;  %v5735_v40 = vrot.slane %v5730_v35, %v666_v53 }
 0x177   : > { %3080 = vmatprep.subr.bf16.mxu0 %v4762_v41 }
 0x178   : > { %3192 = vmatpush2.bf16.msra.mxu1 %v4757_v22 }
 0x179   : > { %2929 = vmatmul.mubr.bf16.gmra.mxu0 %v5568_v33  ;;  %3193 = vmatprep.subr.bf16.mxu1 %v4765_v42  ;;  %v670_v33 = vsub.s32 1, %v5724_v46  ;;  %v4784_v42 = vld [vmem:[#allocation7 + $0x6a0] ss:$24 sps:$4 sm:$0xff]  }
 0x17a   : > { %3081 = vmatpush2.bf16.msra.mxu0 %v4760_v27  ;;  %3084 = vmatprep.mubr.bf16.mxu0 %v5030_v44 }
 0x17b   : > { %3042 = vmatmul.mubr.bf16.gmra.mxu1 %v5648_v2  ;;  %3082 = vmatprep.subr.bf16.mxu0 %v4768_v31  ;;  %v4777_v2 = vld [vmem:[#allocation7 + $0x734] ss:$24 sps:$4 sm:$0xff]   ;;  %v5738_v45 = vrot.slane %v5730_v35, %v670_v33  ;;  %v5036_v33 = vld [vmem:[%s5464_s13 + $0x94] ss:$24 sps:$4 sm:$0xff]  }
 0x17c   : > { %3194 = vmatpush2.bf16.msra.mxu1 %v4763_v23  ;;  %3197 = vmatprep.mubr.bf16.mxu1 %v5652_v5  ;;  %v4789_v31 = vld [vmem:[#allocation7 + $0x674] ss:$24 sps:$4 sm:$0xff]  }
 0x17d   : > { %3195 = vmatprep.subr.bf16.mxu1 %v4771_v50 }
 0x17e   : > { %3083 = vmatpush2.bf16.msra.mxu0 %v4766_v38 }
 0x17f   : > { %3278 = vmatprep.subr.bf16.mxu0 %v4774_v36 }
 0x180   : > { %3196 = vmatpush2.bf16.msra.mxu1 %v4769_v54  ;;  %v4787_v54 = vld [vmem:[#allocation7 + $0x670] ss:$24 sps:$4 sm:$0xff]  }
 0x181   : > { %v2408_v51 = vpop.f32.mrf.mxu0  ;;  %3085 = vmatmul.mubr.bf16.vlgmr.msra.gmra.mxu0 %v5031_v57 }
 0x182   : > { %v2409_v5 = vadd.f32 %v2408_v51, %v5735_v40  ;;  %3279 = vmatpush1.bf16.msra.mxu0 %v4772_v58  ;;  %3094 = vmatprep.mubr.bf16.mxu0 %v5032_v49  ;;  %v4792_v51 = vld [vmem:[#allocation7 + $0x644] ss:$24 sps:$4 sm:$0xff]  }
 0x183   : > { %v2410_v0 = vpop.f32.mrf.mxu0  ;;  %v2521_v52 = vpop.f32.mrf.mxu1  ;;  %3198 = vmatmul.mubr.bf16.vlgmr.msra.gmra.mxu1 %v5658_v12  ;;  %3280 = vmatprep.subr.bf16.mxu0 %v4777_v2 }
 0x184   : > { %v2411_v56 = vadd.f32 %v2410_v0, %v5738_v45  ;;  %v5745_v63 = vadd.f32 %v2521_v52, %v2409_v5  ;;  %3207 = vmatprep.mubr.bf16.mxu1 %v5662_v17  ;;  %v5033_v17 = vld [vmem:[%s5464_s13 + $0x30] ss:$24 sps:$4 sm:$0xff]  }
 0x185   : > { %v2412_v59 = vpop.f32.mrf.mxu0  ;;  %v2523_v6 = vpop.f32.mrf.mxu1 }
 0x186   : > { %v2413_v60 = vadd.f32 %v2412_v59, %v5735_v40  ;;  %v5749_v11 = vadd.f32 %v2523_v6, %v2411_v56  ;;  %3281 = vmatpush1.bf16.msra.mxu0 %v4775_v48  ;;  %v4795_v59 = vld [vmem:[#allocation7 + $0x614] ss:$24 sps:$4 sm:$0xff]  }
 0x187   : > { %v2414_v16 = vpop.f32.mrf.mxu0  ;;  %v2525_v12 = vpop.f32.mrf.mxu1  ;;  %3282 = vmatprep.subr.bf16.mxu0 %v4780_v4  ;;  %v4790_v4 = vld [vmem:[#allocation7 + $0x640] ss:$24 sps:$4 sm:$0xff]  }
 0x188   : > { %v2415_v13 = vadd.f32 %v2414_v16, %v5738_v45  ;;  %v5752_v3 = vadd.f32 %v2525_v12, %v2413_v60 }
 0x189   : > { %v2418_v21 = vpop.f32.mrf.mxu0  ;;  %v2527_v7 = vpop.f32.mrf.mxu1  ;;  %3095 = vmatmul.mubr.bf16.gmra.mxu0 %v5033_v17 }
 0x18a   : > { %v2419_v24 = vadd.f32 %v2418_v21, %v5735_v40  ;;  %v5756_v20 = vadd.f32 %v2527_v7, %v2415_v13  ;;  %3283 = vmatpush1.bf16.msra.mxu0 %v4778_v61  ;;  %3104 = vmatprep.mubr.bf16.mxu0 %v5034_v10  ;;  %v4793_v13 = vld [vmem:[#allocation7 + $0x610] ss:$24 sps:$4 sm:$0xff]   ;;  %v5038_v21 = vld [vmem:[%s5464_s13 + $0xc4] ss:$24 sps:$4 sm:$0xff]  }
 0x18b   : > { %v2420_v29 = vpop.f32.mrf.mxu0  ;;  %v2531_v15 = vpop.f32.mrf.mxu1  ;;  %3208 = vmatmul.mubr.bf16.gmra.mxu1 %v5668_v25  ;;  %3284 = vmatprep.subr.bf16.mxu0 %v4783_v1 }
 0x18c   : > { %v2421_v18 = vadd.f32 %v2420_v29, %v5738_v45  ;;  %v5761_v37 = vadd.f32 %v2531_v15, %v2419_v24  ;;  %3217 = vmatprep.mubr.bf16.mxu1 %v5672_v30  ;;  %v5035_v30 = vld [vmem:[%s5464_s13 + $0x60] ss:$24 sps:$4 sm:$0xff]   ;;  %v4798_v24 = vld [vmem:[#allocation7 + $0x8e4] ss:$24 sps:$4 sm:$0xff]  }
 0x18d   : > { %v2422_v32 = vpop.f32.mrf.mxu0  ;;  %v2533_v19 = vpop.f32.mrf.mxu1 }
 0x18e   : > { %v2423_v41 = vadd.f32 %v2422_v32, %v5735_v40  ;;  %v5765_v22 = vadd.f32 %v2533_v19, %v2421_v18  ;;  %3285 = vmatpush1.bf16.msra.mxu0 %v4781_v28  ;;  %v4796_v32 = vld [vmem:[#allocation7 + $0x8e0] ss:$24 sps:$4 sm:$0xff]  }
 0x18f   : > { %v2424_v27 = vpop.f32.mrf.mxu0  ;;  %v2535_v25 = vpop.f32.mrf.mxu1  ;;  %3286 = vmatprep.subr.bf16.mxu0 %v4786_v34 }
 0x190   : > { %v2425_v23 = vadd.f32 %v2424_v27, %v5738_v45  ;;  %v5768_v50 = vadd.f32 %v2535_v25, %v2423_v41  ;;  %v4801_v41 = vld [vmem:[#allocation7 + $0x8b4] ss:$24 sps:$4 sm:$0xff]  }
 0x191   : > { %v2428_v38 = vpop.f32.mrf.mxu0  ;;  %v2537_v44 = vpop.f32.mrf.mxu1  ;;  %3105 = vmatmul.mubr.bf16.gmra.mxu0 %v5035_v30  ;;  %v5040_v30 = vld [vmem:[%s5464_s13 + $0xf4] ss:$24 sps:$4 sm:$0xff]  }
 0x192   : > { %v2429_v53 = vadd.f32 %v2428_v38, %v5735_v40  ;;  %v5772_v36 = vadd.f32 %v2537_v44, %v2425_v23  ;;  %3287 = vmatpush1.bf16.msra.mxu0 %v4784_v42  ;;  %3114 = vmatprep.mubr.bf16.mxu0 %v5036_v33  ;;  %v4799_v44 = vld [vmem:[#allocation7 + $0x8b0] ss:$24 sps:$4 sm:$0xff]   ;;  %v4804_v33 = vld [vmem:[#allocation7 + $0x884] ss:$24 sps:$4 sm:$0xff]  }
 0x193   : > { %v2430_v58 = vpop.f32.mrf.mxu0  ;;  %v2541_v2 = vpop.f32.mrf.mxu1  ;;  %3218 = vmatmul.mubr.bf16.gmra.mxu1 %v5678_v39  ;;  %3288 = vmatprep.subr.bf16.mxu0 %v4789_v31 }
 0x194   : > { %v2431_v57 = vadd.f32 %v2430_v58, %v5738_v45  ;;  %v5777_v5 = vadd.f32 %v2541_v2, %v2429_v53  ;;  %3227 = vmatprep.mubr.bf16.mxu1 %v5682_v43  ;;  %v5037_v43 = vld [vmem:[%s5464_s13 + $0x90] ss:$24 sps:$4 sm:$0xff]  }
 0x195   : > { %v2432_v48 = vpop.f32.mrf.mxu0  ;;  %v2543_v49 = vpop.f32.mrf.mxu1 }
 0x196   : > { %v2433_v0 = vadd.f32 %v2432_v48, %v5735_v40  ;;  %v5781_v52 = vadd.f32 %v2543_v49, %v2431_v57  ;;  %3289 = vmatpush1.bf16.msra.mxu0 %v4787_v54  ;;  %v4802_v48 = vld [vmem:[#allocation7 + $0x880] ss:$24 sps:$4 sm:$0xff]  }
 0x197   : > { %v2434_v56 = vpop.f32.mrf.mxu0  ;;  %v2545_v39 = vpop.f32.mrf.mxu1  ;;  %3290 = vmatprep.subr.bf16.mxu0 %v4792_v51 }
 0x198   : > { %v2435_v6 = vadd.f32 %v2434_v56, %v5738_v45  ;;  %v5784_v60 = vadd.f32 %v2545_v39, %v2433_v0 }
 0x199   : > { %v2438_v61 = vpop.f32.mrf.mxu0  ;;  %v2547_v16 = vpop.f32.mrf.mxu1  ;;  %3115 = vmatmul.mubr.bf16.gmra.mxu0 %v5037_v43 }
 0x19a   : > { %6596 = vst [vmem:[#allocation17_spill] sm:$0xff] %v5784_v60  ;;  %v2439_v12 = vadd.f32 %v2438_v61, %v5735_v40  ;;  %v5788_v1 = vadd.f32 %v2547_v16, %v2435_v6  ;;  %3291 = vmatpush1.bf16.msra.mxu0 %v4790_v4  ;;  %3124 = vmatprep.mubr.bf16.mxu0 %v5038_v21  ;;  %v4805_v6 = vld [vmem:[#allocation7 + $0x850] ss:$24 sps:$4 sm:$0xff]   ;;  %v5042_v61 = vld [vmem:[%s5464_s13 + $0x124] ss:$24 sps:$4 sm:$0xff]  }
 0x19b   : > { %v2440_v7 = vpop.f32.mrf.mxu0  ;;  %v2551_v17 = vpop.f32.mrf.mxu1  ;;  %3228 = vmatmul.mubr.bf16.gmra.mxu1 %v5688_v47  ;;  %3292 = vmatprep.subr.bf16.mxu0 %v4795_v59  ;;  %v5041_v59 = vld [vmem:[%s5464_s13 + $0xf0] ss:$24 sps:$4 sm:$0xff]  }
 0x19c   : > { %6597 = vst [vmem:[#allocation18_spill] sm:$0xff] %v5788_v1  ;;  %v2441_v28 = vadd.f32 %v2440_v7, %v5738_v45  ;;  %v5793_v10 = vadd.f32 %v2551_v17, %v2439_v12  ;;  %3237 = vmatprep.mubr.bf16.mxu1 %v5692_v55  ;;  %v5039_v55 = vld [vmem:[%s5464_s13 + $0xc0] ss:$24 sps:$4 sm:$0xff]   ;;  %v4810_v12 = vld [vmem:[#allocation7 + $0x824] ss:$24 sps:$4 sm:$0xff]   ;;  %v6631_v1 = vmov 0.0  }
 0x19d   : > { %v2442_v29 = vpop.f32.mrf.mxu0  ;;  %v2553_v15 = vpop.f32.mrf.mxu1 }
 0x19e   : > { %6598 = vst [vmem:[#allocation19_spill] sm:$0xff] %v5793_v10  ;;  %v2443_v34 = vadd.f32 %v2442_v29, %v5735_v40  ;;  %v5797_v18 = vadd.f32 %v2553_v15, %v2441_v28  ;;  %3293 = vmatpush1.bf16.msra.mxu0 %v4793_v13  ;;  %v4808_v29 = vld [vmem:[#allocation7 + $0x820] ss:$24 sps:$4 sm:$0xff]  }
 0x19f   : > { %v2444_v19 = vpop.f32.mrf.mxu0  ;;  %v2555_v47 = vpop.f32.mrf.mxu1  ;;  %3294 = vmatprep.subr.bf16.mxu0 %v4798_v24 }
 0x1a0   : > { %v2445_v42 = vadd.f32 %v2444_v19, %v5738_v45  ;;  %v5800_v27 = vadd.f32 %v2555_v47, %v2443_v34  ;;  %v4813_v34 = vld [vmem:[#allocation7 + $0x7f4] ss:$24 sps:$4 sm:$0xff]  }
 0x1a1   : > { %v2448_v25 = vpop.f32.mrf.mxu0  ;;  %v2557_v31 = vpop.f32.mrf.mxu1  ;;  %3125 = vmatmul.mubr.bf16.gmra.mxu0 %v5039_v55  ;;  %v5044_v55 = vld [vmem:[%s5464_s13 + $0x154] ss:$24 sps:$4 sm:$0xff]  }
 0x1a2   : > { %v2449_v23 = vadd.f32 %v2448_v25, %v5735_v40  ;;  %v5804_v38 = vadd.f32 %v2557_v31, %v2445_v42  ;;  %3295 = vmatpush2.bf16.msra.mxu0 %v4796_v32  ;;  %3134 = vmatprep.mubr.bf16.mxu0 %v5040_v30  ;;  %v4811_v31 = vld [vmem:[#allocation7 + $0x7f0] ss:$24 sps:$4 sm:$0xff]   ;;  %v4816_v30 = vld [vmem:[#allocation7 + $0x7c4] ss:$24 sps:$4 sm:$0xff]  }
 0x1a3   : > { %v5807_v53 = vpop.f32.mrf.mxu0  ;;  %v2561_v54 = vpop.f32.mrf.mxu1  ;;  %3238 = vmatmul.mubr.bf16.gmra.mxu1 %v5698_v8  ;;  %3296 = vmatprep.subr.bf16.mxu0 %v4801_v41  ;;  %v4807_v8 = vld [vmem:[#allocation7 + $0x854] ss:$24 sps:$4 sm:$0xff]  }
 0x1a4   : > { %v5810_v58 = vadd.f32 %v2561_v54, %v2449_v23  ;;  %3247 = vmatprep.mubr.bf16.mxu1 %v5702_v62 }
 0x1a5   : > { %v2452_v2 = vpop.f32.mrf.mxu0  ;;  %v5813_v51 = vpop.f32.mrf.mxu1 }
 0x1a6   : > { %v2453_v57 = vadd.f32 %v2452_v2, %v5735_v40  ;;  %3297 = vmatpush2.bf16.msra.mxu0 %v4799_v44  ;;  %v5045_v2 = vld [vmem:[%s5464_s13 + $0x15c] ss:$24 sps:$4 sm:$0xff]  }
 0x1a7   : > { %v5816_v49 = vpop.f32.mrf.mxu0  ;;  %v2565_v0 = vpop.f32.mrf.mxu1  ;;  %3298 = vmatprep.subr.bf16.mxu0 %v4804_v33 }
 0x1a8   : > { %v5818_v4 = vadd.f32 %v2565_v0, %v2453_v57 }
 0x1a9   : > { %v2458_v56 = vpop.f32.mrf.mxu0  ;;  %v5820_v39 = vpop.f32.mrf.mxu1  ;;  %3135 = vmatmul.mubr.bf16.gmra.mxu0 %v5041_v59 }
 0x1aa   : > { %v2459_v62 = vadd.f32 %v2458_v56, %v5735_v40  ;;  %3299 = vmatpush2.bf16.msra.mxu0 %v4802_v48  ;;  %3144 = vmatprep.mubr.bf16.mxu0 %v5042_v61  ;;  %v4814_v56 = vld [vmem:[#allocation7 + $0x7c0] ss:$24 sps:$4 sm:$0xff]  }
 0x1ab   : > { %v2460_v16 = vpop.f32.mrf.mxu0  ;;  %v2571_v43 = vpop.f32.mrf.mxu1  ;;  %3248 = vmatmul.mubr.bf16.gmra.mxu1 %v5708_v14  ;;  %3300 = vmatprep.subr.bf16.mxu0 %v4807_v8 }
 0x1ac   : > { %v2461_v13 = vadd.f32 %v2460_v16, %v5738_v45  ;;  %v5827_v21 = vadd.f32 %v2571_v43, %v2459_v62  ;;  %3257 = vmatprep.mubr.bf16.mxu1 %v5712_v9  ;;  %v5043_v9 = vld [vmem:[%s5464_s13 + $0x120] ss:$24 sps:$4 sm:$0xff]   ;;  %v4819_v62 = vld [vmem:[#allocation7 + $0x794] ss:$24 sps:$4 sm:$0xff]  }
 0x1ad   : > { %v2462_v7 = vpop.f32.mrf.mxu0  ;;  %v2573_v17 = vpop.f32.mrf.mxu1 }
 0x1ae   : > { %v2463_v24 = vadd.f32 %v2462_v7, %v5735_v40  ;;  %v5831_v28 = vadd.f32 %v2573_v17, %v2461_v13  ;;  %3301 = vmatpush2.bf16.msra.mxu0 %v4805_v6  ;;  %v4817_v17 = vld [vmem:[#allocation7 + $0x790] ss:$24 sps:$4 sm:$0xff]  }
 0x1af   : > { %v2464_v15 = vpop.f32.mrf.mxu0  ;;  %v2575_v14 = vpop.f32.mrf.mxu1  ;;  %3302 = vmatprep.subr.bf16.mxu0 %v4810_v12  ;;  %v5046_v12 = vld [vmem:[%s5464_s13 + $0x150] ss:$24 sps:$4 sm:$0xff]  }
 0x1b0   : > { %v2465_v32 = vadd.f32 %v2464_v15, %v5738_v45  ;;  %v5834_v19 = vadd.f32 %v2575_v14, %v2463_v24  ;;  %v5047_v24 = vld [vmem:[%s5464_s13 + $0x14] ss:$24 sps:$4 sm:$0xff]   ;;  %v5048_v14 = vld [vmem:[%s5464_s13 + $0x158] ss:$24 sps:$4 sm:$0xff]  }
 0x1b1   : > { %v2468_v47 = vpop.f32.mrf.mxu0  ;;  %v2577_v41 = vpop.f32.mrf.mxu1  ;;  %3145 = vmatmul.mubr.bf16.gmra.mxu0 %v5043_v9 }
 0x1b2   : > { %v2469_v42 = vadd.f32 %v2468_v47, %v5735_v40  ;;  %v5838_v25 = vadd.f32 %v2577_v41, %v2465_v32  ;;  %3303 = vmatpush2.bf16.msra.mxu0 %v4808_v29  ;;  %3154 = vmatprep.mubr.bf16.mxu0 %v5044_v55 }
 0x1b3   : > { %v2470_v23 = vpop.f32.mrf.mxu0  ;;  %v2581_v44 = vpop.f32.mrf.mxu1  ;;  %3258 = vmatmul.mubr.bf16.gmra.mxu1 %v5718_v26  ;;  %3304 = vmatprep.subr.bf16.mxu0 %v4813_v34 }
 0x1b4   : > { %v2471_v54 = vadd.f32 %v2470_v23, %v5738_v45  ;;  %v5843_v33 = vadd.f32 %v2581_v44, %v2469_v42  ;;  %3267 = vmatprep.mubr.bf16.mxu1 %v5045_v2  ;;  %v5049_v44 = vld [vmem:[%s5464_s13 + $0x10] ss:$24 sps:$4 sm:$0xff]  }
 0x1b5   : > { %v2472_v57 = vpop.f32.mrf.mxu0  ;;  %v2583_v48 = vpop.f32.mrf.mxu1 }
 0x1b6   : > { %v2473_v0 = vadd.f32 %v2472_v57, %v5735_v40  ;;  %v5847_v8 = vadd.f32 %v2583_v48, %v2471_v54  ;;  %3305 = vmatpush2.bf16.msra.mxu0 %v4811_v31  ;;  %v5050_v54 = vld [vmem:[%s5464_s13 + $0x44] ss:$24 sps:$4 sm:$0xff]  }
 0x1b7   : > { %v2474_v59 = vpop.f32.mrf.mxu0  ;;  %v2585_v26 = vpop.f32.mrf.mxu1  ;;  %3306 = vmatprep.subr.bf16.mxu0 %v4816_v30 }
 0x1b8   : > { %v2475_v6 = vadd.f32 %v2474_v59, %v5738_v45  ;;  %v5850_v61 = vadd.f32 %v2585_v26, %v2473_v0 }
 0x1b9   : > { %v2478_v16 = vpop.f32.mrf.mxu0  ;;  %v2587_v43 = vpop.f32.mrf.mxu1  ;;  %3155 = vmatmul.mubr.bf16.gmra.mxu0 %v5046_v12  ;;  %v5052_v12 = vld [vmem:[%s5464_s13 + $0x74] ss:$24 sps:$4 sm:$0xff]  }
 0x1ba   : > { %v2479_v13 = vadd.f32 %v2478_v16, %v5735_v40  ;;  %v5854_v7 = vadd.f32 %v2587_v43, %v2475_v6  ;;  %3307 = vmatpush2.bf16.msra.mxu0 %v4814_v56  ;;  %3310 = vmatprep.mubr.bf16.mxu0 %v5047_v24  ;;  %v5051_v43 = vld [vmem:[%s5464_s13 + $0x40] ss:$24 sps:$4 sm:$0xff]  }
 0x1bb   : > { %v2480_v29 = vpop.f32.mrf.mxu0  ;;  %v2591_v15 = vpop.f32.mrf.mxu1  ;;  %3268 = vmatmul.mubr.bf16.gmra.mxu1 %v5048_v14  ;;  %3308 = vmatprep.subr.bf16.mxu0 %v4819_v62 }
 0x1bc   : > { %v2481_v34 = vadd.f32 %v2480_v29, %v5738_v45  ;;  %v5859_v32 = vadd.f32 %v2591_v15, %v2479_v13 }
 0x1bd   : > { %v5861_v47 = vpop.f32.mrf.mxu0  ;;  %v2593_v41 = vpop.f32.mrf.mxu1 }
 0x1be   : > { %v5863_v9 = vadd.f32 %v2593_v41, %v2481_v34  ;;  %3309 = vmatpush2.bf16.msra.mxu0 %v4817_v17 }
 0x1bf   : > { %v5865_v42 = vpop.f32.mrf.mxu0  ;;  %v5867_v31 = vpop.f32.mrf.mxu1 }
 0x1c1   : > { %v5869_v55 = vpop.f32.mrf.mxu1  ;;  %v2634_v23 = vpop.f32.mrf.mxu0  ;;  %3311 = vmatmul.mubr.bf16.vlgmr.msra.gmra.mxu0 %v5049_v44  ;;  %v5054_v44 = vld [vmem:[%s5464_s13 + $0xa4] ss:$24 sps:$4 sm:$0xff]  }
 0x1c2   : > { %v5873_v30 = vadd.f32 %v2634_v23, %v5745_v63  ;;  %3320 = vmatprep.mubr.bf16.mxu0 %v5050_v54  ;;  %v5053_v23 = vld [vmem:[%s5464_s13 + $0x70] ss:$24 sps:$4 sm:$0xff]  }
 0x1c3   : > { %v2636_v2 = vpop.f32.mrf.mxu0  ;;  %v5876_v57 = vpop.f32.mrf.mxu1 }
 0x1c4   : > { %6599 = vst [vmem:[#allocation20_spill] sm:$0xff] %v5873_v30  ;;  %v5879_v48 = vadd.f32 %v2636_v2, %v5749_v11 }
 0x1c5   : > { %v2638_v0 = vpop.f32.mrf.mxu0  ;;  %v5881_v56 = vpop.f32.mrf.mxu1 }
 0x1c6   : > { %6600 = vst [vmem:[#allocation21_spill] sm:$0xff] %v5879_v48  ;;  %v5884_v59 = vadd.f32 %v2638_v0, %v5752_v3 }
 0x1c7   : > { %v2640_v26 = vpop.f32.mrf.mxu0  ;;  %v5886_v62 = vpop.f32.mrf.mxu1 }
 0x1c8   : > { %6601 = vst [vmem:[#allocation22_spill] sm:$0xff] %v5884_v59  ;;  %v5889_v63 = vadd.f32 %v2640_v26, %v5756_v20 }
 0x1c9   : > { %v2644_v6 = vpop.f32.mrf.mxu0  ;;  %v5891_v16 = vpop.f32.mrf.mxu1  ;;  %3321 = vmatmul.mubr.bf16.gmra.mxu0 %v5051_v43 }
 0x1ca   : > { %6602 = vst [vmem:[#allocation23_spill] sm:$0xff] %v5889_v63  ;;  %v5895_v11 = vadd.f32 %v2644_v6, %v5761_v37  ;;  %3330 = vmatprep.mubr.bf16.mxu0 %v5052_v12 }
 0x1cb   : > { %v2646_v3 = vpop.f32.mrf.mxu0  ;;  %v5898_v13 = vpop.f32.mrf.mxu1 }
 0x1cc   : > { %6603 = vst [vmem:[#allocation24_spill] sm:$0xff] %v5895_v11  ;;  %v5901_v17 = vadd.f32 %v2646_v3, %v5765_v22  ;;  %v5055_v3 = vld [vmem:[%s5464_s13 + $0xa0] ss:$24 sps:$4 sm:$0xff]  }
 0x1cd   : > { %v2648_v20 = vpop.f32.mrf.mxu0  ;;  %v5903_v24 = vpop.f32.mrf.mxu1 }
 0x1ce   : > { %6604 = vst [vmem:[#allocation25_spill] sm:$0xff] %v5901_v17  ;;  %v5906_v29 = vadd.f32 %v2648_v20, %v5768_v50  ;;  %v6569_v50 = vmov 0.0   ;;  %v5056_v20 = vld [vmem:[%s5464_s13 + $0xd4] ss:$24 sps:$4 sm:$0xff]  }
 0x1cf   : > { %v2650_v15 = vpop.f32.mrf.mxu0  ;;  %v5908_v14 = vpop.f32.mrf.mxu1  ;;  %3552 = vmatprep.mubr.f32.mxu1 %v6569_v50 }
 0x1d0   : > { %6605 = vst [vmem:[#allocation26_spill] sm:$0xff] %v5906_v29  ;;  %v5911_v37 = vadd.f32 %v2650_v15, %v5772_v36 }
 0x1d1   : > { %v2654_v34 = vpop.f32.mrf.mxu0  ;;  %v5913_v41 = vpop.f32.mrf.mxu1  ;;  %3331 = vmatmul.mubr.bf16.gmra.mxu0 %v5053_v23 }
 0x1d2   : > { %6606 = vst [vmem:[#allocation27_spill] sm:$0xff] %v5911_v37  ;;  %v5917_v22 = vadd.f32 %v2654_v34, %v5777_v5  ;;  %3340 = vmatprep.mubr.bf16.mxu0 %v5054_v44 }
 0x1d3   : > { %v2656_v54 = vpop.f32.mrf.mxu0  ;;  %v5921_v2 = vpop.f32.mrf.mxu1 }
 0x1d4   : > { %6607 = vst [vmem:[#allocation28_spill] sm:$0xff] %v5917_v22  ;;  %v5924_v36 = vadd.f32 %v2656_v54, %v5781_v52 }
 0x1d5   : > { %v5926_v0 = vpop.f32.mrf.mxu0  ;;  %v5928_v26 = vpop.f32.mrf.mxu1 }
 0x1d6   : > { %6608 = vst [vmem:[#allocation29_spill] sm:$0xff] %v5924_v36  ;;  %6609 = vst [vmem:[#allocation30_spill] sm:$0xff] %v5926_v0  ;;  %v674_v0 = vsub.s32 2, %v5724_v46 }
 0x1d7   : > { %6610 = vst [vmem:[#allocation31_spill] sm:$0xff] %v5928_v26  ;;  %v5930_v6 = vpop.f32.mrf.mxu0  ;;  %v5932_v5 = vpop.f32.mrf.mxu1 }
 0x1d8   : > { %6611 = vst [vmem:[#allocation32_spill] sm:$0xff] %v5930_v6  ;;  %6612 = vst [vmem:[#allocation33_spill] sm:$0xff] %v5932_v5 }
 0x1d9   : > { %v5934_v43 = vpop.f32.mrf.mxu0  ;;  %v5936_v12 = vpop.f32.mrf.mxu1  ;;  %3341 = vmatmul.mubr.bf16.gmra.mxu0 %v5055_v3  ;;  %v5057_v3 = vld [vmem:[%s5464_s13 + $0xd0] ss:$24 sps:$4 sm:$0xff]  }
 0x1da   : > { %6613 = vst [vmem:[#allocation34_spill] sm:$0xff] %v5934_v43  ;;  %6614 = vst [vmem:[#allocation35_spill] sm:$0xff] %v5936_v12  ;;  %3350 = vmatprep.mubr.bf16.mxu0 %v5056_v20  ;;  %v5058_v20 = vld [vmem:[%s5464_s13 + $0x104] ss:$24 sps:$4 sm:$0xff]  }
 0x1db   : > { %v5940_v52 = vpop.f32.mrf.mxu0  ;;  %v5942_v15 = vpop.f32.mrf.mxu1 }
 0x1dc   : > { %6615 = vst [vmem:[#allocation36_spill] sm:$0xff] %v5942_v15 }
 0x1dd   : > { %v5944_v34 = vpop.f32.mrf.mxu0  ;;  %v5946_v23 = vpop.f32.mrf.mxu1 }
 0x1de   : > { %6616 = vst [vmem:[#allocation37_spill] sm:$0xff] %v5946_v23 }
 0x1df   : > { %v5948_v44 = vpop.f32.mrf.mxu0  ;;  %v5950_v54 = vpop.f32.mrf.mxu1 }
 0x1e0   : > { %6617 = vst [vmem:[#allocation38_spill] sm:$0xff] %v5950_v54 }
 0x1e1   : > { %v5952_v50 = vpop.f32.mrf.mxu0  ;;  %v5954_v12 = vpop.f32.mrf.mxu1  ;;  %3351 = vmatmul.mubr.bf16.gmra.mxu0 %v5057_v3  ;;  %v5059_v3 = vld [vmem:[%s5464_s13 + $0x100] ss:$24 sps:$4 sm:$0xff]  }
 0x1e2   : > { %6618 = vst [vmem:[#allocation39_spill] sm:$0xff] %v5954_v12  ;;  %3360 = vmatprep.mubr.bf16.mxu0 %v5058_v20  ;;  %v5060_v20 = vld [vmem:[%s5464_s13 + $0x134] ss:$24 sps:$4 sm:$0xff]  }
 0x1e3   : > { %v5958_v5 = vpop.f32.mrf.mxu0  ;;  %v5960_v15 = vpop.f32.mrf.mxu1 }
 0x1e4   : > { %6619 = vst [vmem:[#allocation40_spill] sm:$0xff] %v5960_v15 }
 0x1e5   : > { %v5962_v30 = vpop.f32.mrf.mxu0  ;;  %v5964_v23 = vpop.f32.mrf.mxu1 }
 0x1e6   : > { %6620 = vst [vmem:[#allocation41_spill] sm:$0xff] %v5964_v23 }
 0x1e7   : > { %v5966_v48 = vpop.f32.mrf.mxu0  ;;  %v5968_v54 = vpop.f32.mrf.mxu1 }
 0x1e8   : > { %6621 = vst [vmem:[#allocation42_spill] sm:$0xff] %v5968_v54 }
 0x1e9   : > { %v5970_v59 = vpop.f32.mrf.mxu0  ;;  %v5972_v12 = vpop.f32.mrf.mxu1  ;;  %3361 = vmatmul.mubr.bf16.gmra.mxu0 %v5059_v3  ;;  %v5062_v3 = vld [vmem:[%s5464_s13 + $0x164] ss:$24 sps:$4 sm:$0xff]  }
 0x1ea   : > { %6622 = vst [vmem:[#allocation43_spill] sm:$0xff] %v5972_v12  ;;  %3370 = vmatprep.mubr.bf16.mxu0 %v5060_v20  ;;  %v5061_v12 = vld [vmem:[%s5464_s13 + $0x130] ss:$24 sps:$4 sm:$0xff]  }
 0x1eb   : > { %v5976_v63 = vpop.f32.mrf.mxu0  ;;  %v5978_v15 = vpop.f32.mrf.mxu1 }
 0x1ec   : > { %6623 = vst [vmem:[#allocation44_spill] sm:$0xff] %v5978_v15 }
 0x1ed   : > { %v5980_v11 = vpop.f32.mrf.mxu0  ;;  %v5982_v23 = vpop.f32.mrf.mxu1 }
 0x1ee   : > { %6624 = vst [vmem:[#allocation45_spill] sm:$0xff] %v5982_v23 }
 0x1ef   : > { %v2690_v17 = vpop.f32.mrf.mxu0  ;;  %v5984_v29 = vpop.f32.mrf.mxu1 }
 0x1f0   : > { %6625 = vst [vmem:[#allocation46_spill] sm:$0xff] %v5984_v29  ;;  %v2483_v29 = vadd.f32 %v5861_v47, %v5735_v40 }
 0x1f1   : > { %v2694_v54 = vpop.f32.mrf.mxu0  ;;  %v5986_v37 = vpop.f32.mrf.mxu1  ;;  %3371 = vmatmul.mubr.bf16.gmra.mxu0 %v5061_v12  ;;  %v5063_v12 = vld [vmem:[%s5464_s13 + $0x160] ss:$24 sps:$4 sm:$0xff]   ;;  %s5259_s13 = smov [#allocation10]  }
 0x1f2   : > { %6626 = vst [vmem:[#allocation47_spill] sm:$0xff] %v5986_v37  ;;  %3380 = vmatprep.mubr.bf16.mxu0 %v5062_v3  ;;  %v2485_v3 = vadd.f32 %v5865_v42, %v5738_v45  ;;  %v2596_v40 = vadd.f32 %v5867_v31, %v2483_v29  ;;  %v2451_v31 = vadd.f32 %v5807_v53, %v5738_v45  ;;  %s5177_s3 = sshll.u32 %s5259_s13, 4  ;;  %s5178_s3 = int_to_ptr.vmem [resolvable:$false] %s5177_s3 }
 0x1f3   : > { %v2696_v20 = vpop.f32.mrf.mxu0  ;;  %v5990_v22 = vpop.f32.mrf.mxu1  ;;  %s5179_s26 = scalar_lea.vmem %s5178_s3, 1536  ;;  %p5180_p13 = scmp.lt.s32.totalorder %s6517_s0, %s5178_s3 }
 0x1f4   : > { %6627 = vst [vmem:[#allocation48_spill] sm:$0xff] %v5990_v22  ;;  %v6005_v22 = vrot.slane %v5730_v35, %v674_v0  ;;  %p5181_p1 = scmp.lt.s32.totalorder %s5179_s26, %s5173_s29 }
 0x1f5   : > { %v2698_v36 = vpop.f32.mrf.mxu0  ;;  %v5992_v15 = vpop.f32.mrf.mxu1 }
 0x1f6   : > { %6628 = vst [vmem:[#allocation49_spill] sm:$0xff] %v5992_v15  ;;  %v678_v15 = vsub.s32 3, %v5724_v46  ;;  %v2748_v42 = vadd.f32 %v5876_v57, %v6005_v22  ;;  %v2699_v53 = vadd.f32 %v2698_v36, %v5850_v61  ;;  %v2689_v36 = vadd.f32 %v5980_v11, %v5834_v19  ;;  %p5182_p4 = por %p5181_p1, %p5180_p13 }
 0x1f7   : > { %v2700_v23 = vpop.f32.mrf.mxu0  ;;  %v5995_v60 = vpop.f32.mrf.mxu1 }
 0x1f8   : > { %6629 = vst [vmem:[#allocation50_spill] sm:$0xff] %v5995_v60  ;;  %v6018_v0 = vrot.slane %v5730_v35, %v678_v15  ;;  %v2701_v35 = vadd.f32 %v2700_v23, %v5854_v7  ;;  %p5183_p6 = pnand %p5182_p4, %p5176_p9 }
 0x1f9   : > { %v2704_v6 = vpop.f32.mrf.mxu0  ;;  %v5999_v37 = vpop.f32.mrf.mxu1  ;;  %3381 = vmatmul.mubr.bf16.gmra.mxu0 %v5063_v12  ;;  %v2598_v12 = vadd.f32 %v5869_v55, %v2485_v3  ;;  %v2455_v3 = vadd.f32 %v5816_v49, %v5738_v45  ;;  %v2758_v45 = vadd.f32 %v5898_v13, %v6005_v22  ;;  %v2695_v49 = vadd.f32 %v2694_v54, %v5843_v33 }
 0x1fa   : > { %6630 = vst [vmem:[#allocation51_spill] sm:$0xff] %v5999_v37  ;;  %3694 = vmatprep.mubr.f32.mxu0 %v6631_v1  ;;  %v2705_v29 = vadd.f32 %v2704_v6, %v5859_v32  ;;  %v2750_v57 = vadd.f32 %v5881_v56, %v6018_v0  ;;  %v2697_v6 = vadd.f32 %v2696_v20, %v5847_v8 }
 0x1fb   : > { %v2706_v43 = vpop.f32.mrf.mxu0  ;;  %v6009_v60 = vpop.f32.mrf.mxu1  ;;  %v2687_v33 = vadd.f32 %v5976_v63, %v5831_v28  ;;  %v2762_v63 = vadd.f32 %v5908_v14, %v6005_v22  ;;  %v2675_v14 = vadd.f32 %v5952_v50, %v5810_v58  ;;  %v2667_v58 = vadd.f32 %v5940_v52, %v5797_v18 }
 0x1fc   : > { %6632 = vst [vmem:[#allocation52_spill] sm:$0xff] %v6009_v60  ;;  %v2707_v1 = vadd.f32 %v2706_v43, %v5863_v9 }
 0x1fd   : > { %v2708_v47 = vpop.f32.mrf.mxu0  ;;  %v6012_v10 = vpop.f32.mrf.mxu1 }
 0x1fe   : > { %6633 = vst [vmem:[#allocation53_spill] sm:$0xff] %v6012_v10  ;;  %v2709_v37 = vadd.f32 %v2708_v47, %v2596_v40 }
 0x1ff   : > { %v2710_v46 = vpop.f32.mrf.mxu0  ;;  %v6020_v26 = vpop.f32.mrf.mxu1 }
 0x200   : > { %v2711_v60 = vadd.f32 %v2710_v46, %v2598_v12  ;;  %v2752_v46 = vadd.f32 %v5886_v62, %v6005_v22  ;;  %v2691_v62 = vadd.f32 %v2690_v17, %v5838_v25  ;;  %v2564_v25 = vadd.f32 %v5813_v51, %v2451_v31 }
 0x201   : > { %v6026_v10 = vpop.f32.mrf.mxu1  ;;  %v2860_v55 = vpop.f32.mrf.mxu0  ;;  %v2760_v17 = vadd.f32 %v5903_v24, %v6018_v0  ;;  %v2679_v51 = vadd.f32 %v5962_v30, %v5818_v4  ;;  %v2671_v31 = vadd.f32 %v5948_v44, %v5804_v38  ;;  %v6641_v44 = vld [vmem:[#allocation31_spill] sm:$0xff] }
 0x202   : > { %4820 = vtanh.f32 %v2711_v60  ;;  %v2861_v15 = vadd.f32 %v2860_v55, %v2748_v42  ;;  %v2754_v60 = vadd.f32 %v5891_v16, %v6018_v0  ;;  %v2768_v42 = vadd.f32 %v5921_v2, %v6005_v22 }
 0x203   : > { %4822 = vtanh.f32 %v2709_v37  ;;  %v2862_v32 = vpop.f32.mrf.mxu0  ;;  %v2973_v9 = vpop.f32.mrf.mxu1 }
 0x204   : > { %4824 = vtanh.f32 %v2707_v1  ;;  %v2863_v43 = vadd.f32 %v2862_v32, %v2750_v57  ;;  %v6037_v56 = vadd.f32 %v2973_v9, %v2861_v15  ;;  %v2568_v1 = vadd.f32 %v5820_v39, %v2455_v3 }
 0x205   : > { %4826 = vtanh.f32 %v2705_v29  ;;  %v2864_v7 = vpop.f32.mrf.mxu0  ;;  %v2975_v61 = vpop.f32.mrf.mxu1  ;;  %v2685_v39 = vadd.f32 %v5970_v59, %v5827_v21  ;;  %v2677_v21 = vadd.f32 %v5958_v5, %v2564_v25  ;;  %v2770_v3 = vadd.f32 %v6641_v44, %v6018_v0 }
 0x206   : > { %6634 = vst [vmem:[#allocation54_spill] sm:$0xff] %v6037_v56  ;;  %4828 = vtanh.f32 %v2701_v35  ;;  %v2865_v37 = vadd.f32 %v2864_v7, %v2752_v46  ;;  %v6045_v8 = vadd.f32 %v2975_v61, %v2863_v43  ;;  %v2681_v20 = vadd.f32 %v5966_v48, %v2568_v1  ;;  %v6642_v46 = vld [vmem:[#allocation19_spill] sm:$0xff]  ;;  %v6645_v43 = vld [vmem:[#allocation32_spill] sm:$0xff]  ;;  %v6648_v7 = vld [vmem:[#allocation30_spill] sm:$0xff] }
 0x207   : > { %4830 = vtanh.f32 %v2699_v53  ;;  %v2866_v16 = vpop.f32.mrf.mxu0  ;;  %v2977_v23 = vpop.f32.mrf.mxu1  ;;  %v2764_v48 = vadd.f32 %v5913_v41, %v6018_v0  ;;  %v2669_v41 = vadd.f32 %v5944_v34, %v5800_v27  ;;  %v6643_v53 = vld [vmem:[#allocation34_spill] sm:$0xff] }
 0x208   : > { %6635 = vst [vmem:[#allocation55_spill] sm:$0xff] %v6045_v8  ;;  %4832 = vtanh.f32 %v2697_v6  ;;  %v2867_v13 = vadd.f32 %v2866_v16, %v2754_v60  ;;  %v6052_v54 = vadd.f32 %v2977_v23, %v2865_v37  ;;  %v2665_v32 = vadd.f32 %v6643_v53, %v6642_v46  ;;  %v6644_v6 = vld [vmem:[#allocation18_spill] sm:$0xff]  ;;  %v6668_v46 = vld [vmem:[#allocation21_spill] sm:$0xff] }
 0x209   : > { %4834 = vtanh.f32 %v2695_v49  ;;  %v2870_v19 = vpop.f32.mrf.mxu0  ;;  %v2979_v11 = vpop.f32.mrf.mxu1  ;;  %v2661_v18 = vadd.f32 %v6645_v43, %v6644_v6  ;;  %v6647_v49 = vld [vmem:[#allocation17_spill] sm:$0xff] }
 0x20a   : > { %6636 = vst [vmem:[#allocation56_spill] sm:$0xff] %v6052_v54  ;;  %4836 = vtanh.f32 %v2691_v62  ;;  %v2871_v40 = vadd.f32 %v2870_v19, %v2758_v45  ;;  %v6060_v28 = vadd.f32 %v2979_v11, %v2867_v13  ;;  %v2659_v61 = vadd.f32 %v6648_v7, %v6647_v49 }
 0x20b   : > { %4838 = vtanh.f32 %v2689_v36  ;;  %v2872_v24 = vpop.f32.mrf.mxu0  ;;  %v2983_v47 = vpop.f32.mrf.mxu1 }
 0x20c   : > { %6637 = vst [vmem:[#allocation57_spill] sm:$0xff] %v6060_v28  ;;  %4840 = vtanh.f32 %v2687_v33  ;;  %v2873_v59 = vadd.f32 %v2872_v24, %v2760_v17  ;;  %v6067_v12 = vadd.f32 %v2983_v47, %v2871_v40  ;;  %v6654_v40 = vld [vmem:[#allocation29_spill] sm:$0xff]  ;;  %v6687_v28 = vld [vmem:[#allocation39_spill] sm:$0xff] }
 0x20d   : > { %4842 = vtanh.f32 %v2685_v39  ;;  %v2874_v4 = vpop.f32.mrf.mxu0  ;;  %v2985_v30 = vpop.f32.mrf.mxu1 }
 0x20e   : > { %6638 = vst [vmem:[#allocation58_spill] sm:$0xff] %v6067_v12  ;;  %4844 = vtanh.f32 %v2681_v20  ;;  %v2875_v5 = vadd.f32 %v2874_v4, %v2762_v63  ;;  %v6077_v29 = vadd.f32 %v2985_v30, %v2873_v59  ;;  %v6658_v59 = vld [vmem:[#allocation27_spill] sm:$0xff]  ;;  %v6206_v12 = vadd.f32 %v6687_v28, %v6018_v0 }
 0x20f   : > { %v4821_v55 = vpop.eup %4820  ;;  %4846 = vtanh.f32 %v2679_v51  ;;  %v2876_v57 = vpop.f32.mrf.mxu0  ;;  %v6655_v51 = vld [vmem:[#allocation28_spill] sm:$0xff] }
 0x210   : > { %6639 = vst [vmem:[#allocation59_spill] sm:$0xff] %v6077_v29  ;;  %v2987_v2 = vpop.f32.mrf.mxu1  ;;  %v4823_v35 = vpop.eup %4822  ;;  %4848 = vtanh.f32 %v2677_v21  ;;  %v2877_v50 = vadd.f32 %v2876_v57, %v2764_v48  ;;  %3488 = vmatprep.subr.mxu1 %v4821_v55  ;;  %v6662_v55 = vld [vmem:[#allocation24_spill] sm:$0xff] }
 0x211   : > { %v6083_v15 = vadd.f32 %v2987_v2, %v2875_v5  ;;  %v4825_v38 = vpop.eup %4824  ;;  %4850 = vtanh.f32 %v2675_v14  ;;  %v2880_v27 = vpop.f32.mrf.mxu0  ;;  %3489 = vmatpush1.msra.mxu1 %v4823_v35  ;;  %v6665_v35 = vld [vmem:[#allocation23_spill] sm:$0xff] }
 0x212   : > { %v2989_v34 = vpop.f32.mrf.mxu1  ;;  %v4827_v9 = vpop.eup %4826  ;;  %4852 = vtanh.f32 %v2671_v31  ;;  %v2881_v52 = vadd.f32 %v2880_v27, %v2768_v42  ;;  %3490 = vmatprep.subr.mxu1 %v4825_v38  ;;  %v6659_v42 = vld [vmem:[#allocation26_spill] sm:$0xff]  ;;  %v6661_v31 = vld [vmem:[#allocation25_spill] sm:$0xff] }
 0x213   : > { %6640 = vst [vmem:[#allocation60_spill] sm:$0xff] %v6083_v15  ;;  %v6091_v60 = vadd.f32 %v2989_v34, %v2877_v50  ;;  %v4829_v45 = vpop.eup %4828  ;;  %4854 = vtanh.f32 %v2669_v41  ;;  %v2882_v62 = vpop.f32.mrf.mxu0  ;;  %3491 = vmatpush1.msra.mxu1 %v4827_v9  ;;  %v6666_v50 = vld [vmem:[#allocation22_spill] sm:$0xff] }
 0x214   : > { %v2993_v37 = vpop.f32.mrf.mxu1  ;;  %v4831_v1 = vpop.eup %4830  ;;  %4856 = vtanh.f32 %v2667_v58  ;;  %v2883_v36 = vadd.f32 %v2882_v62, %v2770_v3  ;;  %3492 = vmatprep.subr.mxu1 %v4829_v45 }
 0x215   : > { %6646 = vst [vmem:[#allocation31_spill] sm:$0xff] %v6091_v60  ;;  %v6095_v16 = vadd.f32 %v2993_v37, %v2881_v52  ;;  %v4833_v23 = vpop.eup %4832  ;;  %4858 = vtanh.f32 %v2665_v32  ;;  %v6097_v33 = vpop.f32.mrf.mxu0  ;;  %3493 = vmatpush1.msra.mxu1 %v4831_v1  ;;  %v6669_v32 = vld [vmem:[#allocation20_spill] sm:$0xff] }
 0x216   : > { %6650 = vst [vmem:[#allocation34_spill] sm:$0xff] %v6097_v33  ;;  %v2995_v13 = vpop.f32.mrf.mxu1  ;;  %v4835_v25 = vpop.eup %4834  ;;  %4860 = vtanh.f32 %v2661_v18  ;;  %3494 = vmatprep.subr.mxu1 %v4833_v23 }
 0x217   : > { %6649 = vst [vmem:[#allocation19_spill] sm:$0xff] %v6095_v16  ;;  %v6099_v17 = vadd.f32 %v2995_v13, %v2883_v36  ;;  %v4837_v39 = vpop.eup %4836  ;;  %4862 = vtanh.f32 %v2659_v61  ;;  %v6101_v19 = vpop.f32.mrf.mxu0  ;;  %3495 = vmatpush1.msra.mxu1 %v4835_v25 }
 0x218   : > { %6652 = vst [vmem:[#allocation32_spill] sm:$0xff] %v6101_v19  ;;  %v6103_v11 = vpop.f32.mrf.mxu1  ;;  %v4839_v20 = vpop.eup %4838  ;;  %4864 = vtanh.f32 %v6654_v40  ;;  %3496 = vmatprep.subr.mxu1 %v4837_v39 }
 0x219   : > { %6651 = vst [vmem:[#allocation18_spill] sm:$0xff] %v6099_v17  ;;  %6653 = vst [vmem:[#allocation17_spill] sm:$0xff] %v6103_v11  ;;  %v4841_v63 = vpop.eup %4840  ;;  %4866 = vtanh.f32 %v6655_v51  ;;  %v6107_v24 = vpop.f32.mrf.mxu0  ;;  %3497 = vmatpush1.msra.mxu1 %v4839_v20 }
 0x21a   : > { %6656 = vst [vmem:[#allocation30_spill] sm:$0xff] %v6107_v24  ;;  %v6109_v47 = vpop.f32.mrf.mxu1  ;;  %v4843_v21 = vpop.eup %4842  ;;  %4868 = vtanh.f32 %v6658_v59  ;;  %3498 = vmatprep.subr.mxu1 %v4841_v63  ;;  %v6696_v24 = vld [vmem:[#allocation49_spill] sm:$0xff] }
 0x21b   : > { %6657 = vst [vmem:[#allocation29_spill] sm:$0xff] %v6109_v47  ;;  %v4845_v48 = vpop.eup %4844  ;;  %4870 = vtanh.f32 %v6659_v42  ;;  %v6113_v14 = vpop.f32.mrf.mxu0  ;;  %3499 = vmatpush1.msra.mxu1 %v4843_v21  ;;  %v6160_v42 = vld [vmem:[%s5472_s7] sm:$0xff] }
 0x21c   : > { %v6115_v4 = vpop.f32.mrf.mxu1  ;;  %v4847_v30 = vpop.eup %4846  ;;  %4872 = vtanh.f32 %v6661_v31  ;;  %3500 = vmatprep.subr.mxu1 %v4845_v48  ;;  %6674 = vst [vmem:[#allocation20_spill] sm:$0xff] %v6160_v42 }
 0x21d   : > { %6660 = vst [vmem:[#allocation28_spill] sm:$0xff] %v6115_v4  ;;  %v4849_v5 = vpop.eup %4848  ;;  %4874 = vtanh.f32 %v6662_v55  ;;  %v6119_v41 = vpop.f32.mrf.mxu0  ;;  %3501 = vmatpush1.msra.mxu1 %v4847_v30  ;;  %v6692_v4 = vld [vmem:[#allocation43_spill] sm:$0xff] }
 0x21e   : > { %6663 = vst [vmem:[#allocation27_spill] sm:$0xff] %v6119_v41  ;;  %v6121_v57 = vpop.f32.mrf.mxu1  ;;  %v4851_v2 = vpop.eup %4850  ;;  %4876 = vtanh.f32 %v6665_v35  ;;  %3502 = vmatprep.subr.mxu1 %v4849_v5  ;;  %v6675_v35 = vmov 0.0  }
 0x21f   : > { %6664 = vst [vmem:[#allocation26_spill] sm:$0xff] %v6121_v57  ;;  %v4853_v58 = vpop.eup %4852  ;;  %4878 = vtanh.f32 %v6666_v50  ;;  %v6125_v38 = vpop.f32.mrf.mxu0  ;;  %3503 = vmatpush1.msra.mxu1 %v4851_v2  ;;  %v6693_v57 = vld [vmem:[#allocation48_spill] sm:$0xff] }
 0x220   : > { %v6127_v44 = vpop.f32.mrf.mxu1  ;;  %v4855_v3 = vpop.eup %4854  ;;  %4880 = vtanh.f32 %v6668_v46  ;;  %3504 = vmatprep.subr.mxu1 %v4853_v58 }
 0x221   : > { %6667 = vst [vmem:[#allocation25_spill] sm:$0xff] %v6127_v44  ;;  %v4857_v53 = vpop.eup %4856  ;;  %4882 = vtanh.f32 %v6669_v32  ;;  %v6131_v27 = vpop.f32.mrf.mxu0  ;;  %3505 = vmatpush1.msra.mxu1 %v4855_v3  ;;  %v2808_v44 = vadd.f32 %v6693_v57, %v6005_v22 }
 0x222   : > { %v6133_v34 = vpop.f32.mrf.mxu1  ;;  %v4859_v9 = vpop.eup %4858  ;;  %3506 = vmatprep.subr.mxu1 %v4857_v53  ;;  %v6676_v53 = vld [vmem:[#allocation16_spill] sm:$0xff] }
 0x223   : > { %6670 = vst [vmem:[#allocation24_spill] sm:$0xff] %v6133_v34  ;;  %v4861_v6 = vpop.eup %4860  ;;  %v6135_v43 = vpop.f32.mrf.mxu0  ;;  %3507 = vmatpush1.msra.mxu1 %v4859_v9  ;;  %v682_v32 = vsub.s32 4, %v6676_v53  ;;  %v686_v9 = vsub.s32 5, %v6676_v53  ;;  %v6683_v53 = vld [vmem:[#allocation52_spill] sm:$0xff] }
 0x224   : > { %v6137_v18 = vpop.f32.mrf.mxu1  ;;  %v4863_v52 = vpop.eup %4862  ;;  %3508 = vmatprep.subr.mxu1 %v4861_v6 }
 0x225   : > { %6671 = vst [vmem:[#allocation23_spill] sm:$0xff] %v6137_v18  ;;  %v4865_v45 = vpop.eup %4864  ;;  %v6139_v49 = vpop.f32.mrf.mxu0  ;;  %3509 = vmatpush1.msra.mxu1 %v4863_v52  ;;  %v6695_v18 = vld [vmem:[#allocation44_spill] sm:$0xff] }
 0x226   : > { %v6141_v7 = vpop.f32.mrf.mxu1  ;;  %v4867_v61 = vpop.eup %4866  ;;  %3510 = vmatprep.subr.mxu1 %v4865_v45 }
 0x227   : > { %6672 = vst [vmem:[#allocation22_spill] sm:$0xff] %v6141_v7  ;;  %v4869_v62 = vpop.eup %4868  ;;  %v6143_v37 = vpop.f32.mrf.mxu0  ;;  %3511 = vmatpush1.msra.mxu1 %v4867_v61 }
 0x228   : > { %v6145_v1 = vpop.f32.mrf.mxu1  ;;  %v4871_v36 = vpop.eup %4870  ;;  %3512 = vmatprep.subr.mxu1 %v4869_v62  ;;  %v5064_v62 = vld [vmem:[#allocation8] sm:$0x3f] }
 0x229   : > { %6673 = vst [vmem:[#allocation21_spill] sm:$0xff] %v6145_v1  ;;  %v4873_v23 = vpop.eup %4872  ;;  %v6147_v13 = vpop.f32.mrf.mxu0  ;;  %3513 = vmatpush1.msra.mxu1 %v4871_v36  ;;  %v6174_v36 = vrot.slane %v5064_v62, %v682_v32  ;;  %v6699_v1 = vld [vmem:[#allocation46_spill] sm:$0xff] }
 0x22a   : > { %v6149_v25 = vpop.f32.mrf.mxu1  ;;  %v4875_v39 = vpop.eup %4874  ;;  %3514 = vmatprep.subr.mxu1 %v4873_v23  ;;  %v6176_v23 = vrot.slane %v5064_v62, %v686_v9  ;;  %v6684_v9 = vld [vmem:[#allocation37_spill] sm:$0xff] }
 0x22b   : > { %v4877_v20 = vpop.eup %4876  ;;  %v6151_v40 = vpop.f32.mrf.mxu0  ;;  %3515 = vmatpush1.msra.mxu1 %v4875_v39  ;;  %v6677_v39 = vld [vmem:[#allocation33_spill] sm:$0xff]  ;;  %v6194_v62 = vadd.f32 %v6684_v9, %v6018_v0 }
 0x22c   : > { %v6153_v63 = vpop.f32.mrf.mxu1  ;;  %v4879_v51 = vpop.eup %4878  ;;  %3516 = vmatprep.subr.mxu1 %v4877_v20  ;;  %v6180_v20 = vadd.f32 %v6677_v39, %v6005_v22  ;;  %v6685_v39 = vld [vmem:[#allocation38_spill] sm:$0xff]  ;;  %v6689_v9 = vld [vmem:[#allocation41_spill] sm:$0xff] }
 0x22d   : > { %v4881_v21 = vpop.eup %4880  ;;  %v6155_v59 = vpop.f32.mrf.mxu0  ;;  %3517 = vmatpush1.msra.mxu1 %v4879_v51  ;;  %v6679_v51 = vld [vmem:[#allocation35_spill] sm:$0xff]  ;;  %v6198_v8 = vadd.f32 %v6685_v39, %v6005_v22  ;;  %v2790_v15 = vadd.f32 %v6689_v9, %v6018_v0  ;;  %v6690_v39 = vld [vmem:[#allocation42_spill] sm:$0xff] }
 0x22e   : > { %v6157_v48 = vpop.f32.mrf.mxu1  ;;  %v4883_v30 = vpop.eup %4882  ;;  %3518 = vmatprep.subr.mxu1 %v4881_v21  ;;  %6678 = vst [vmem:[#allocation16_spill] sm:$0xff] %v6180_v20  ;;  %v6184_v21 = vadd.f32 %v6679_v51, %v6018_v0  ;;  %v6686_v51 = vld [vmem:[#allocation53_spill] sm:$0xff]  ;;  %v2792_v60 = vadd.f32 %v6690_v39, %v6005_v22  ;;  %v6694_v9 = vld [vmem:[#allocation50_spill] sm:$0xff] }
 0x22f   : > { %v2916_v31 = vpop.f32.mrf.mxu0  ;;  %3519 = vmatpush1.msra.mxu1 %v4883_v30  ;;  %v6681_v30 = vld [vmem:[#allocation36_spill] sm:$0xff]  ;;  %v2820_v54 = vadd.f32 %v6686_v51, %v6018_v0  ;;  %v6691_v51 = vld [vmem:[#allocation51_spill] sm:$0xff]  ;;  %v2812_v33 = vadd.f32 %v6694_v9, %v6005_v22 }
 0x230   : > { %v6162_v5 = vpop.f32.mrf.mxu1  ;;  %3553 = vmatmul.mubr.f32.vlgmr.msra.gmra.mxu1 %v6160_v42  ;;  %6680 = vst [vmem:[#allocation33_spill] sm:$0xff] %v6184_v21  ;;  %v2818_v42 = vadd.f32 %v6683_v53, %v6005_v22  ;;  %v6688_v53 = vld [vmem:[#allocation40_spill] sm:$0xff]  ;;  %v2814_v11 = vadd.f32 %v6691_v51, %v6018_v0  ;;  %v2798_v51 = vadd.f32 %v6695_v18, %v6005_v22 }
 0x231   : > { %v2920_v55 = vpop.f32.mrf.mxu0  ;;  %3623 = vmatprep.mubr.f32.mxu1 %v6675_v35  ;;  %v6188_v35 = vadd.f32 %v6681_v30, %v6005_v22  ;;  %v2822_v30 = vadd.f32 %v6020_v26, %v6005_v22  ;;  %v6210_v29 = vadd.f32 %v6688_v53, %v6005_v22  ;;  %v2824_v26 = vadd.f32 %v6026_v10, %v6018_v0 }
 0x232   : > { %v6165_v2 = vpop.f32.mrf.mxu1  ;;  %v2794_v53 = vadd.f32 %v6692_v4, %v6018_v0  ;;  %v2810_v10 = vadd.f32 %v6696_v24, %v6018_v0  ;;  %v2802_v24 = vadd.f32 %v6699_v1, %v6005_v22 }
 0x233   : > { %v2922_v58 = vpop.f32.mrf.mxu0  ;;  %6682 = vst [vmem:[#allocation35_spill] sm:$0xff] %v6188_v35 }
 0x234   : > { %v6168_v50 = vpop.f32.mrf.mxu1 }
 0x235   : > { %v2924_v3 = vpop.f32.mrf.mxu0 }
 0x236   : > { %v6170_v46 = vpop.f32.mrf.mxu1  ;;  %v2925_v35 = vadd.f32 %v2924_v3, %v2812_v33 }
 0x237   : > { %v2926_v6 = vpop.f32.mrf.mxu0 }
 0x238   : > { %v3037_v52 = vpop.f32.mrf.mxu1 }
 0x239   : > { %v2930_v45 = vpop.f32.mrf.mxu0 }
 0x23a   : > { %v3039_v61 = vpop.f32.mrf.mxu1  ;;  %v2931_v39 = vadd.f32 %v2930_v45, %v2818_v42  ;;  %v2923_v45 = vadd.f32 %v2922_v58, %v2810_v10 }
 0x23b   : > { %v2932_v56 = vpop.f32.mrf.mxu0 }
 0x23c   : > { %v3043_v32 = vpop.f32.mrf.mxu1  ;;  %v2933_v28 = vadd.f32 %v2932_v56, %v2820_v54  ;;  %v2927_v56 = vadd.f32 %v2926_v6, %v2814_v11  ;;  %v2921_v6 = vadd.f32 %v2920_v55, %v2808_v44  ;;  %v3036_v22 = vadd.f32 %v6170_v46, %v2923_v45 }
 0x23d   : > { %v2934_v16 = vpop.f32.mrf.mxu0 }
 0x23e   : > { %v3045_v17 = vpop.f32.mrf.mxu1  ;;  %v2935_v47 = vadd.f32 %v2934_v16, %v2822_v30  ;;  %v6697_v16 = vld [vmem:[#allocation45_spill] sm:$0xff]  ;;  %v6698_v30 = vld [vmem:[#allocation47_spill] sm:$0xff]  ;;  %v3040_v41 = vadd.f32 %v3039_v61, %v2927_v56  ;;  %v3034_v55 = vadd.f32 %v6168_v50, %v2921_v6  ;;  %v2903_v61 = vadd.f32 %v6135_v43, %v2790_v15 }
 0x23f   : > { %v2936_v20 = vpop.f32.mrf.mxu0  ;;  %v2800_v4 = vadd.f32 %v6697_v16, %v6018_v0  ;;  %v2804_v57 = vadd.f32 %v6698_v30, %v6018_v0  ;;  %v3046_v21 = vadd.f32 %v3045_v17, %v2933_v28  ;;  %v2915_v17 = vadd.f32 %v6155_v59, %v2802_v24 }
 0x240   : > { %v3047_v34 = vpop.f32.mrf.mxu1  ;;  %v2937_v54 = vadd.f32 %v2936_v20, %v2824_v26  ;;  %v3044_v20 = vadd.f32 %v3043_v32, %v2931_v39  ;;  %v2901_v15 = vadd.f32 %v6131_v27, %v6210_v29  ;;  %v6701_v39 = vld [vmem:[#allocation21_spill] sm:$0xff] }
 0x241   : > { %v3048_v19 = vadd.f32 %v3047_v34, %v2935_v47  ;;  %v3086_v42 = vpop.f32.mrf.mxu0  ;;  %v2917_v11 = vadd.f32 %v2916_v31, %v2804_v57  ;;  %v2913_v47 = vadd.f32 %v6151_v40, %v2800_v4  ;;  %v3038_v34 = vadd.f32 %v3037_v52, %v2925_v35  ;;  %v6704_v4 = vld [vmem:[#allocation32_spill] sm:$0xff]  ;;  %v6705_v57 = vld [vmem:[#allocation35_spill] sm:$0xff] }
 0x242   : > { %v3049_v9 = vpop.f32.mrf.mxu1  ;;  %v3087_v18 = vadd.f32 %v3086_v42, %v6174_v36  ;;  %v2911_v31 = vadd.f32 %v6147_v13, %v2798_v51  ;;  %v6702_v51 = vld [vmem:[#allocation22_spill] sm:$0xff] }
 0x243   : > { %v3050_v7 = vadd.f32 %v3049_v9, %v2937_v54  ;;  %v3088_v26 = vpop.f32.mrf.mxu0  ;;  %v3026_v50 = vadd.f32 %v6157_v48, %v2913_v47  ;;  %v3016_v10 = vadd.f32 %v6702_v51, %v2903_v61  ;;  %v6703_v54 = vld [vmem:[#allocation33_spill] sm:$0xff]  ;;  %v6707_v9 = vld [vmem:[#allocation23_spill] sm:$0xff] }
 0x244   : > { %v3199_v16 = vpop.f32.mrf.mxu1  ;;  %v3089_v0 = vadd.f32 %v3088_v26, %v6176_v23  ;;  %v2887_v30 = vadd.f32 %v6704_v4, %v6703_v54  ;;  %v6709_v26 = vld [vmem:[#allocation16_spill] sm:$0xff]  ;;  %v6711_v47 = vld [vmem:[#allocation25_spill] sm:$0xff] }
 0x245   : > { %4884 = vtanh.f32 %v3050_v7  ;;  %v6238_v33 = vadd.f32 %v3199_v16, %v3087_v18  ;;  %v3090_v58 = vpop.f32.mrf.mxu0  ;;  %v2907_v7 = vadd.f32 %v6143_v37, %v2794_v53  ;;  %v3028_v37 = vadd.f32 %v6162_v5, %v2915_v17  ;;  %v6708_v18 = vld [vmem:[#allocation24_spill] sm:$0xff]  ;;  %v6710_v16 = vld [vmem:[#allocation34_spill] sm:$0xff] }
 0x246   : > { %4886 = vtanh.f32 %v3048_v19  ;;  %v3201_v3 = vpop.f32.mrf.mxu1  ;;  %v3091_v44 = vadd.f32 %v3090_v58, %v6174_v36  ;;  %v3030_v19 = vadd.f32 %v6165_v2, %v2917_v11  ;;  %v2893_v53 = vadd.f32 %v6113_v14, %v6194_v62  ;;  %v6706_v14 = vld [vmem:[#allocation30_spill] sm:$0xff]  ;;  %v6721_v4 = vld [vmem:[#allocation60_spill] sm:$0xff] }
 0x247   : > { %4888 = vtanh.f32 %v3046_v21  ;;  %v6244_v1 = vadd.f32 %v3201_v3, %v3089_v0  ;;  %v3092_v40 = vpop.f32.mrf.mxu0  ;;  %v2905_v21 = vadd.f32 %v6139_v49, %v2792_v60  ;;  %v3024_v60 = vadd.f32 %v6153_v63, %v2911_v31 }
 0x248   : > { %4890 = vtanh.f32 %v3044_v20  ;;  %v3203_v59 = vpop.f32.mrf.mxu1  ;;  %v3093_v52 = vadd.f32 %v3092_v40, %v6176_v23  ;;  %v3020_v5 = vadd.f32 %v6149_v25, %v2907_v7  ;;  %v2891_v62 = vadd.f32 %v6706_v14, %v6705_v57  ;;  %v6713_v40 = vld [vmem:[#allocation28_spill] sm:$0xff]  ;;  %v6722_v14 = vld [vmem:[#allocation59_spill] sm:$0xff] }
 0x249   : > { %4892 = vtanh.f32 %v3040_v41  ;;  %v6251_v46 = vadd.f32 %v3203_v59, %v3091_v44  ;;  %v3096_v13 = vpop.f32.mrf.mxu0  ;;  %v2897_v41 = vadd.f32 %v6125_v38, %v6206_v12  ;;  %v6700_v12 = vld [vmem:[#allocation27_spill] sm:$0xff]  ;;  %v3018_v29 = vadd.f32 %v6701_v39, %v2905_v21  ;;  %v6714_v21 = vld [vmem:[#allocation29_spill] sm:$0xff] }
 0x24a   : > { %4894 = vtanh.f32 %v3038_v34  ;;  %v3205_v35 = vpop.f32.mrf.mxu1  ;;  %v3097_v32 = vadd.f32 %v3096_v13, %v6174_v36  ;;  %v2895_v38 = vadd.f32 %v6700_v12, %v6198_v8  ;;  %v3014_v8 = vadd.f32 %v6707_v9, %v2901_v15  ;;  %v6723_v9 = vld [vmem:[#allocation58_spill] sm:$0xff] }
 0x24b   : > { %4896 = vtanh.f32 %v3036_v22  ;;  %v6258_v2 = vadd.f32 %v3205_v35, %v3093_v52  ;;  %v3098_v43 = vpop.f32.mrf.mxu0  ;;  %v3010_v24 = vadd.f32 %v6708_v18, %v2897_v41  ;;  %v2885_v0 = vadd.f32 %v6710_v16, %v6709_v26  ;;  %v6712_v22 = vld [vmem:[#allocation26_spill] sm:$0xff]  ;;  %v6726_v26 = vld [vmem:[#allocation55_spill] sm:$0xff] }
 0x24c   : > { %4898 = vtanh.f32 %v3034_v55  ;;  %v3209_v49 = vpop.f32.mrf.mxu1  ;;  %v3099_v48 = vadd.f32 %v3098_v43, %v6176_v23  ;;  %v3008_v17 = vadd.f32 %v6711_v47, %v2895_v38  ;;  %v3006_v44 = vadd.f32 %v6712_v22, %v2893_v53 }
 0x24d   : > { %4900 = vtanh.f32 %v3030_v19  ;;  %v6267_v28 = vadd.f32 %v3209_v49, %v3097_v32  ;;  %v3100_v27 = vpop.f32.mrf.mxu0  ;;  %v3004_v59 = vadd.f32 %v6713_v40, %v2891_v62  ;;  %v6715_v32 = vld [vmem:[#allocation17_spill] sm:$0xff] }
 0x24e   : > { %4902 = vtanh.f32 %v3028_v37  ;;  %v3211_v63 = vpop.f32.mrf.mxu1  ;;  %v3101_v25 = vadd.f32 %v3100_v27, %v6174_v36  ;;  %v3000_v37 = vadd.f32 %v6714_v21, %v2887_v30  ;;  %v2998_v41 = vadd.f32 %v6715_v32, %v2885_v0  ;;  %v6727_v0 = vld [vmem:[#allocation54_spill] sm:$0xff] }
 0x24f   : > { %4904 = vtanh.f32 %v3026_v50  ;;  %v6276_v56 = vadd.f32 %v3211_v63, %v3099_v48  ;;  %v3102_v42 = vpop.f32.mrf.mxu0  ;;  %v6719_v63 = vld [vmem:[#allocation19_spill] sm:$0xff] }
 0x250   : > { %4906 = vtanh.f32 %v3024_v60  ;;  %v3213_v45 = vpop.f32.mrf.mxu1  ;;  %v3103_v11 = vadd.f32 %v3102_v42, %v6176_v23 }
 0x251   : > { %4908 = vtanh.f32 %v3020_v5  ;;  %v6285_v6 = vadd.f32 %v3213_v45, %v3101_v25  ;;  %v3106_v34 = vpop.f32.mrf.mxu0  ;;  %v6720_v25 = vld [vmem:[#allocation31_spill] sm:$0xff]  ;;  %v6724_v45 = vld [vmem:[#allocation57_spill] sm:$0xff] }
 0x252   : > { %v4885_v20 = vpop.eup %4884  ;;  %4910 = vtanh.f32 %v3018_v29  ;;  %v3215_v58 = vpop.f32.mrf.mxu1  ;;  %v3107_v7 = vadd.f32 %v3106_v34, %v6174_v36  ;;  %v6718_v29 = vld [vmem:[#allocation18_spill] sm:$0xff] }
 0x253   : > { %v4887_v3 = vpop.eup %4886  ;;  %4912 = vtanh.f32 %v3016_v10  ;;  %v6292_v31 = vadd.f32 %v3215_v58, %v3103_v11  ;;  %3559 = vmatprep.subr.mxu1 %v4885_v20  ;;  %v3108_v19 = vpop.f32.mrf.mxu0 }
 0x254   : > { %v4889_v55 = vpop.eup %4888  ;;  %4914 = vtanh.f32 %v3014_v8  ;;  %v3219_v52 = vpop.f32.mrf.mxu1  ;;  %3560 = vmatpush1.msra.mxu1 %v4887_v3  ;;  %v3109_v13 = vadd.f32 %v3108_v19, %v6176_v23 }
 0x255   : > { %v4891_v61 = vpop.eup %4890  ;;  %4916 = vtanh.f32 %v3010_v24  ;;  %v6297_v35 = vadd.f32 %v3219_v52, %v3107_v7  ;;  %3561 = vmatprep.subr.mxu1 %v4889_v55  ;;  %v6300_v15 = vpop.f32.mrf.mxu0  ;;  %v6725_v24 = vld [vmem:[#allocation56_spill] sm:$0xff] }
 0x256   : > { %v4893_v50 = vpop.eup %4892  ;;  %4918 = vtanh.f32 %v3008_v17  ;;  %6716 = vst [vmem:[#allocation36_spill] sm:$0xff] %v6300_v15  ;;  %v3221_v60 = vpop.f32.mrf.mxu1  ;;  %3562 = vmatpush1.msra.mxu1 %v4891_v61 }
 0x257   : > { %v4895_v43 = vpop.eup %4894  ;;  %4920 = vtanh.f32 %v3006_v44  ;;  %v6302_v49 = vadd.f32 %v3221_v60, %v3109_v13  ;;  %3563 = vmatprep.subr.mxu1 %v4893_v50  ;;  %v6304_v48 = vpop.f32.mrf.mxu0 }
 0x258   : > { %v4897_v5 = vpop.eup %4896  ;;  %4922 = vtanh.f32 %v3004_v59  ;;  %6717 = vst [vmem:[#allocation52_spill] sm:$0xff] %v6304_v48  ;;  %3564 = vmatpush1.msra.mxu1 %v4895_v43  ;;  %v6330_v44 = vpop.f32.mrf.mxu1 }
 0x259   : > { %v4899_v53 = vpop.eup %4898  ;;  %4924 = vtanh.f32 %v3000_v37  ;;  %3565 = vmatprep.subr.mxu1 %v4897_v5  ;;  %v6306_v38 = vpop.f32.mrf.mxu0  ;;  %6728 = vst [vmem:[#allocation37_spill] sm:$0xff] %v6330_v44 }
 0x25a   : > { %v4901_v12 = vpop.eup %4900  ;;  %4926 = vtanh.f32 %v2998_v41  ;;  %3566 = vmatpush1.msra.mxu1 %v4899_v53  ;;  %v6336_v61 = vpop.f32.mrf.mxu1 }
 0x25b   : > { %v4903_v39 = vpop.eup %4902  ;;  %4928 = vtanh.f32 %v6718_v29  ;;  %3567 = vmatprep.subr.mxu1 %v4901_v12  ;;  %v6310_v51 = vpop.f32.mrf.mxu0  ;;  %6729 = vst [vmem:[#allocation38_spill] sm:$0xff] %v6336_v61  ;;  %v5258_v12 = vmov 0  }
 0x25c   : > { %v4905_v27 = vpop.eup %4904  ;;  %4930 = vtanh.f32 %v6719_v63  ;;  %3568 = vmatpush1.msra.mxu1 %v4903_v39  ;;  %v6342_v60 = vpop.f32.mrf.mxu1  ;;  %4315 = vset.pattern.permute.xlu0 %v5258_v12  ;;  %v6731_v39 = vld [vmem:[#allocation20_spill] sm:$0xff] }
 0x25d   : > { %v4907_v10 = vpop.eup %4906  ;;  %4932 = vtanh.f32 %v6720_v25  ;;  %3569 = vmatprep.subr.mxu1 %v4905_v27  ;;  %v6314_v30 = vpop.f32.mrf.mxu0  ;;  %6730 = vst [vmem:[#allocation53_spill] sm:$0xff] %v6342_v60 }
 0x25e   : > { %v4909_v54 = vpop.eup %4908  ;;  %4934 = vtanh.f32 %v6721_v4  ;;  %3570 = vmatpush1.msra.mxu1 %v4907_v10  ;;  %v6351_v29 = vpop.f32.mrf.mxu1  ;;  %v3701_v10 = vld [vmem:[%s325_s12] sm:$0xff] }
 0x25f   : > { %v4911_v57 = vpop.eup %4910  ;;  %4936 = vtanh.f32 %v6722_v14  ;;  %3571 = vmatprep.subr.mxu1 %v4909_v54  ;;  %v6318_v8 = vpop.f32.mrf.mxu0  ;;  %6732 = vst [vmem:[#allocation39_spill] sm:$0xff] %v6351_v29 }
 0x260   : > { %v4913_v62 = vpop.eup %4912  ;;  %4938 = vtanh.f32 %v6723_v9  ;;  %3572 = vmatpush1.msra.mxu1 %v4911_v57  ;;  %v6360_v25 = vpop.f32.mrf.mxu1 }
 0x261   : > { %v4915_v42 = vpop.eup %4914  ;;  %4940 = vtanh.f32 %v6724_v45  ;;  %3573 = vmatprep.subr.mxu1 %v4913_v62  ;;  %v6322_v11 = vpop.f32.mrf.mxu0  ;;  %6733 = vst [vmem:[#allocation40_spill] sm:$0xff] %v6360_v25 }
 0x262   : > { %v4917_v18 = vpop.eup %4916  ;;  %4942 = vtanh.f32 %v6725_v24  ;;  %3574 = vmatpush1.msra.mxu1 %v4915_v42  ;;  %v6366_v57 = vpop.f32.mrf.mxu1 }
 0x263   : > { %v4919_v20 = vpop.eup %4918  ;;  %4944 = vtanh.f32 %v6726_v26  ;;  %3575 = vmatprep.subr.mxu1 %v4917_v18  ;;  %v6326_v47 = vpop.f32.mrf.mxu0  ;;  %6734 = vst [vmem:[#allocation41_spill] sm:$0xff] %v6366_v57 }
 0x264   : > { %v4921_v16 = vpop.eup %4920  ;;  %4946 = vtanh.f32 %v6727_v0  ;;  %3576 = vmatpush1.msra.mxu1 %v4919_v20  ;;  %v6368_v9 = vpop.f32.mrf.mxu1 }
 0x265   : > { %v4923_v17 = vpop.eup %4922  ;;  %3577 = vmatprep.subr.mxu1 %v4921_v16  ;;  %v6328_v58 = vpop.f32.mrf.mxu0  ;;  %4948 = vrcp.f32 %v3701_v10 }
 0x266   : > { %v4925_v34 = vpop.eup %4924  ;;  %3578 = vmatpush1.msra.mxu1 %v4923_v17  ;;  %v6373_v24 = vpop.f32.mrf.mxu1 }
 0x267   : > { %v4927_v3 = vpop.eup %4926  ;;  %3579 = vmatprep.subr.mxu1 %v4925_v34  ;;  %v6332_v7 = vpop.f32.mrf.mxu0 }
 0x268   : > { %v4929_v22 = vpop.eup %4928  ;;  %3580 = vmatpush1.msra.mxu1 %v4927_v3  ;;  %v6381_v34 = vpop.f32.mrf.mxu1 }
 0x269   : > { %v4931_v55 = vpop.eup %4930  ;;  %3581 = vmatprep.subr.mxu1 %v4929_v22  ;;  %v6334_v59 = vpop.f32.mrf.mxu0 }
 0x26a   : > { %v4933_v40 = vpop.eup %4932  ;;  %3582 = vmatpush1.msra.mxu1 %v4931_v55 }
 0x26b   : > { %v4935_v19 = vpop.eup %4934  ;;  %3583 = vmatprep.subr.mxu1 %v4933_v40  ;;  %v6338_v21 = vpop.f32.mrf.mxu0 }
 0x26c   : > { %v4937_v52 = vpop.eup %4936  ;;  %3584 = vmatpush1.msra.mxu1 %v4935_v19  ;;  %v6389_v40 = vpop.f32.mrf.mxu1 }
 0x26d   : > { %v4939_v37 = vpop.eup %4938  ;;  %3585 = vmatprep.subr.mxu1 %v4937_v52  ;;  %v6340_v50 = vpop.f32.mrf.mxu0 }
 0x26e   : > { %v4941_v13 = vpop.eup %4940  ;;  %3586 = vmatpush1.msra.mxu1 %v4939_v37  ;;  %v6397_v37 = vpop.f32.mrf.mxu1 }
 0x26f   : > { %v4943_v32 = vpop.eup %4942  ;;  %3587 = vmatprep.subr.mxu1 %v4941_v13  ;;  %v6344_v43 = vpop.f32.mrf.mxu0 }
 0x270   : > { %v4945_v41 = vpop.eup %4944  ;;  %3588 = vmatpush1.msra.mxu1 %v4943_v32 }
 0x271   : > { %v4947_v5 = vpop.eup %4946  ;;  %3589 = vmatprep.subr.mxu1 %v4945_v41  ;;  %v6347_v53 = vpop.f32.mrf.mxu0 }
 0x272   : > { %3590 = vmatpush1.msra.mxu1 %v4947_v5  ;;  %v4949_v26 = vpop.eup %4948  ;;  %v6405_v41 = vpop.f32.mrf.mxu1 }
 0x273   : > { %3624 = vmatmul.mubr.f32.vlgmr.msra.gmra.mxu1 %v6731_v39  ;;  %v6353_v27 = vpop.f32.mrf.mxu0  ;;  %3705 = vperm.xlu0 %4315, %v4949_v26  }
 0x275   : > { %v6355_v63 = vpop.f32.mrf.mxu0 }
 0x276   : > { %v3151_v60 = vadd.f32 %v6355_v63, %v6174_v36  ;;  %v3141_v63 = vadd.f32 %v6340_v50, %v6174_v36  ;;  %v3131_v50 = vadd.f32 %v6328_v58, %v6174_v36  ;;  %v3123_v58 = vadd.f32 %v6318_v8, %v6176_v23 }
 0x277   : > { %v6362_v54 = vpop.f32.mrf.mxu0  ;;  %v3117_v8 = vadd.f32 %v6306_v38, %v6174_v36 }
 0x279   : > { %v6364_v4 = vpop.f32.mrf.mxu0 }
 0x27a   : > { %v3157_v44 = vadd.f32 %v6364_v4, %v6174_v36 }
 0x27b   : > { %v3158_v14 = vpop.f32.mrf.mxu0 }
 0x27d   : > { %v3160_v62 = vpop.f32.mrf.mxu0 }
 0x27f   : > { %v3162_v42 = vpop.f32.mrf.mxu0 }
 0x281   : > { %v3312_v45 = vpop.f32.mrf.mxu0 }
 0x282   : > { %v6371_v18 = vadd.f32 %v3312_v45, %v6238_v33 }
 0x283   : > { %v3314_v20 = vpop.f32.mrf.mxu0 }
 0x284   : > { %6735 = vst [vmem:[#allocation42_spill] sm:$0xff] %v6371_v18  ;;  %v6376_v16 = vadd.f32 %v3314_v20, %v6244_v1 }
 0x285   : > { %v3316_v0 = vpop.f32.mrf.mxu0 }
 0x286   : > { %6736 = vst [vmem:[#allocation51_spill] sm:$0xff] %v6376_v16  ;;  %v6379_v17 = vadd.f32 %v3316_v0, %v6251_v46 }
 0x287   : > { %v3318_v3 = vpop.f32.mrf.mxu0 }
 0x288   : > { %6737 = vst [vmem:[#allocation43_spill] sm:$0xff] %v6379_v17  ;;  %v6384_v22 = vadd.f32 %v3318_v3, %v6258_v2 }
 0x289   : > { %v3322_v33 = vpop.f32.mrf.mxu0 }
 0x28a   : > { %6738 = vst [vmem:[#allocation48_spill] sm:$0xff] %v6384_v22  ;;  %v6387_v55 = vadd.f32 %v3322_v33, %v6267_v28 }
 0x28b   : > { %v3324_v19 = vpop.f32.mrf.mxu0 }
 0x28c   : > { %6739 = vst [vmem:[#allocation50_spill] sm:$0xff] %v6387_v55  ;;  %v6392_v1 = vadd.f32 %v3324_v19, %v6276_v56 }
 0x28d   : > { %v3326_v52 = vpop.f32.mrf.mxu0 }
 0x28e   : > { %6740 = vst [vmem:[#allocation44_spill] sm:$0xff] %v6392_v1  ;;  %v6395_v46 = vadd.f32 %v3326_v52, %v6285_v6  ;;  %v6412_v6 = vpop.f32.mrf.mxu1 }
 0x28f   : > { %v3328_v13 = vpop.f32.mrf.mxu0 }
 0x290   : > { %6741 = vst [vmem:[#allocation49_spill] sm:$0xff] %v6395_v46  ;;  %v6400_v2 = vadd.f32 %v3328_v13, %v6292_v31  ;;  %v3255_v31 = vpop.f32.mrf.mxu1 }
 0x291   : > { %v3332_v32 = vpop.f32.mrf.mxu0 }
 0x292   : > { %6742 = vst [vmem:[#allocation45_spill] sm:$0xff] %v6400_v2  ;;  %v6403_v28 = vadd.f32 %v3332_v32, %v6297_v35  ;;  %v3259_v35 = vpop.f32.mrf.mxu1 }
 0x293   : > { %v3334_v5 = vpop.f32.mrf.mxu0 }
 0x294   : > { %6743 = vst [vmem:[#allocation47_spill] sm:$0xff] %v6403_v28  ;;  %v6408_v56 = vadd.f32 %v3334_v5, %v6302_v49  ;;  %v3261_v49 = vpop.f32.mrf.mxu1 }
 0x295   : > { %v6410_v12 = vpop.f32.mrf.mxu0 }
 0x296   : > { %6744 = vst [vmem:[#allocation46_spill] sm:$0xff] %v6408_v56  ;;  %6745 = vst [vmem:[#allocation27_spill] sm:$0xff] %v6410_v12  ;;  %v3263_v52 = vpop.f32.mrf.mxu1  ;;  %v3161_v56 = vadd.f32 %v3160_v62, %v6174_v36  ;;  %v3149_v62 = vadd.f32 %v6353_v27, %v6176_v23  ;;  %v3139_v27 = vadd.f32 %v6338_v21, %v6176_v23 }
 0x297   : > { %v6414_v10 = vpop.f32.mrf.mxu0  ;;  %v3254_v21 = vadd.f32 %v6412_v6, %v3141_v63 }
 0x298   : > { %6746 = vst [vmem:[#allocation21_spill] sm:$0xff] %v6414_v10  ;;  %v3265_v5 = vpop.f32.mrf.mxu1  ;;  %v3159_v10 = vadd.f32 %v3158_v14, %v6176_v23 }
 0x299   : > { %v6416_v45 = vpop.f32.mrf.mxu0 }
 0x29a   : > { %6747 = vst [vmem:[#allocation22_spill] sm:$0xff] %v6416_v45  ;;  %v3269_v16 = vpop.f32.mrf.mxu1  ;;  %v3163_v45 = vadd.f32 %v3162_v42, %v6176_v23  ;;  %v3147_v42 = vadd.f32 %v6347_v53, %v6174_v36 }
 0x29b   : > { %v6418_v20 = vpop.f32.mrf.mxu0  ;;  %v3270_v25 = vadd.f32 %v3269_v16, %v3157_v44  ;;  %v3137_v44 = vadd.f32 %v6334_v59, %v6174_v36  ;;  %v3252_v59 = vadd.f32 %v6405_v41, %v3139_v27 }
 0x29c   : > { %6748 = vst [vmem:[#allocation33_spill] sm:$0xff] %v6418_v20  ;;  %v3271_v55 = vpop.f32.mrf.mxu1  ;;  %v3260_v53 = vadd.f32 %v3259_v35, %v3147_v42 }
 0x29d   : > { %v6420_v26 = vpop.f32.mrf.mxu0  ;;  %v3250_v16 = vadd.f32 %v6397_v37, %v3137_v44 }
 0x29e   : > { %6749 = vst [vmem:[#allocation32_spill] sm:$0xff] %v6420_v26  ;;  %v3273_v2 = vpop.f32.mrf.mxu1  ;;  %v3153_v26 = vadd.f32 %v6362_v54, %v6176_v23 }
 0x29f   : > { %v6422_v0 = vpop.f32.mrf.mxu0 }
 0x2a0   : > { %6750 = vst [vmem:[#allocation35_spill] sm:$0xff] %v6422_v0  ;;  %v3275_v20 = vpop.f32.mrf.mxu1  ;;  %v3274_v0 = vadd.f32 %v3273_v2, %v3161_v56  ;;  %v3266_v54 = vadd.f32 %v3265_v5, %v3153_v26  ;;  %v3264_v2 = vadd.f32 %v3263_v52, %v3151_v60 }
 0x2a1   : > { %v6424_v3 = vpop.f32.mrf.mxu0  ;;  %v3276_v14 = vadd.f32 %v3275_v20, %v3163_v45  ;;  %v6757_v45 = vld [vmem:[#allocation40_spill] sm:$0xff] }
 0x2a2   : > { %6751 = vst [vmem:[#allocation30_spill] sm:$0xff] %v6424_v3  ;;  %v3272_v3 = vadd.f32 %v3271_v55, %v3159_v10  ;;  %v3262_v55 = vadd.f32 %v3261_v49, %v3149_v62 }
 0x2a3   : > { %v6426_v33 = vpop.f32.mrf.mxu0 }
 0x2a4   : > { %6752 = vst [vmem:[#allocation23_spill] sm:$0xff] %v6426_v33  ;;  %v3143_v33 = vadd.f32 %v6344_v43, %v6176_v23 }
 0x2a5   : > { %v6428_v19 = vpop.f32.mrf.mxu0 }
 0x2a7   : > { %v6430_v13 = vpop.f32.mrf.mxu0  ;;  %v6760_v35 = vld [vmem:[#allocation35_spill] sm:$0xff] }
 0x2a9   : > { %v6432_v32 = vpop.f32.mrf.mxu0  ;;  %v6758_v20 = vld [vmem:[#allocation30_spill] sm:$0xff] }
 0x2ab   : > { %v3364_v39 = vpop.f32.mrf.mxu0 }
 0x2ad   : > { %v3366_v18 = vpop.f32.mrf.mxu0 }
 0x2af   : > { %v3368_v17 = vpop.f32.mrf.mxu0 }
 0x2b1   : > { %v3372_v22 = vpop.f32.mrf.mxu0 }
 0x2b2   : > { %v3373_v60 = vadd.f32 %v3372_v22, %v3260_v53 }
 0x2b3   : > { %v3374_v1 = vpop.f32.mrf.mxu0 }
 0x2b4   : > { %v3375_v43 = vadd.f32 %v3374_v1, %v3262_v55  ;;  %v3365_v1 = vadd.f32 %v3364_v39, %v3252_v59  ;;  %v6768_v55 = vld [vmem:[#allocation27_spill] sm:$0xff] }
 0x2b5   : > { %v3376_v46 = vpop.f32.mrf.mxu0 }
 0x2b7   : > { %v3378_v28 = vpop.f32.mrf.mxu0 }
 0x2b8   : > { %v3379_v10 = vadd.f32 %v3378_v28, %v3266_v54  ;;  %v6754_v28 = vld [vmem:[#allocation41_spill] sm:$0xff] }
 0x2b9   : > { %v3382_v12 = vpop.f32.mrf.mxu0  ;;  %v3236_v41 = vadd.f32 %v6754_v28, %v3123_v58  ;;  %v6774_v58 = vld [vmem:[#allocation50_spill] sm:$0xff] }
 0x2ba   : > { %v3383_v56 = vadd.f32 %v3382_v12, %v3270_v25  ;;  %v6755_v12 = vld [vmem:[#allocation23_spill] sm:$0xff] }
 0x2bb   : > { %v3384_v61 = vpop.f32.mrf.mxu0 }
 0x2bc   : > { %v3385_v57 = vadd.f32 %v3384_v61, %v3272_v3  ;;  %v3256_v61 = vadd.f32 %v3255_v31, %v3143_v33  ;;  %v6762_v33 = vld [vmem:[#allocation32_spill] sm:$0xff] }
 0x2bd   : > { %v3386_v29 = vpop.f32.mrf.mxu0 }
 0x2be   : > { %v3387_v4 = vadd.f32 %v3386_v29, %v3274_v0  ;;  %v3377_v29 = vadd.f32 %v3376_v46, %v3264_v2  ;;  %v3369_v25 = vadd.f32 %v3368_v17, %v3256_v61  ;;  %v3244_v17 = vadd.f32 %v6381_v34, %v3131_v50  ;;  %v6753_v34 = vld [vmem:[#allocation52_spill] sm:$0xff]  ;;  %v6767_v2 = vld [vmem:[#allocation21_spill] sm:$0xff] }
 0x2bf   : > { %v3388_v15 = vpop.f32.mrf.mxu0  ;;  %v3363_v46 = vadd.f32 %v6432_v32, %v3250_v16  ;;  %v3349_v0 = vadd.f32 %v6760_v35, %v3236_v41  ;;  %v6773_v16 = vld [vmem:[#allocation44_spill] sm:$0xff] }
 0x2c0   : > { %v3389_v48 = vadd.f32 %v3388_v15, %v3276_v14  ;;  %v3133_v15 = vadd.f32 %v6332_v7, %v6176_v23  ;;  %v3127_v7 = vadd.f32 %v6322_v11, %v6174_v36  ;;  %v3119_v11 = vadd.f32 %v6310_v51, %v6176_v23  ;;  %v6765_v14 = vld [vmem:[#allocation37_spill] sm:$0xff] }
 0x2c2   : > { %4950 = vtanh.f32 %v3389_v48  ;;  %v3129_v48 = vadd.f32 %v6326_v47, %v6176_v23  ;;  %v3246_v22 = vadd.f32 %v6389_v40, %v3133_v15  ;;  %v3121_v47 = vadd.f32 %v6314_v30, %v6174_v36 }
 0x2c3   : > { %4952 = vtanh.f32 %v3387_v4  ;;  %v3240_v39 = vadd.f32 %v6368_v9, %v3127_v7  ;;  %v3357_v30 = vadd.f32 %v6428_v19, %v3244_v17  ;;  %v3113_v40 = vadd.f32 %v6753_v34, %v6176_v23  ;;  %v6759_v9 = vld [vmem:[#allocation39_spill] sm:$0xff]  ;;  %v6761_v23 = vld [vmem:[#allocation53_spill] sm:$0xff]  ;;  %v6766_v4 = vld [vmem:[#allocation22_spill] sm:$0xff] }
 0x2c4   : > { %4954 = vtanh.f32 %v3385_v57  ;;  %v3367_v57 = vadd.f32 %v3366_v18, %v3254_v21  ;;  %v3242_v18 = vadd.f32 %v6373_v24, %v3129_v48  ;;  %v3359_v37 = vadd.f32 %v6430_v13, %v3246_v22  ;;  %v6756_v24 = vld [vmem:[#allocation36_spill] sm:$0xff]  ;;  %v6763_v13 = vld [vmem:[#allocation38_spill] sm:$0xff]  ;;  %v6770_v21 = vld [vmem:[#allocation47_spill] sm:$0xff] }
 0x2c5   : > { %4956 = vtanh.f32 %v3383_v56  ;;  %v3111_v6 = vadd.f32 %v6756_v24, %v6174_v36  ;;  %v3234_v31 = vadd.f32 %v6757_v45, %v3121_v47  ;;  %v3353_v38 = vadd.f32 %v6758_v20, %v3240_v39  ;;  %v6764_v36 = vld [vmem:[#allocation33_spill] sm:$0xff]  ;;  %v6776_v17 = vld [vmem:[#allocation43_spill] sm:$0xff]  ;;  %v6779_v20 = vld [vmem:[#allocation20_spill] sm:$0xff] }
 0x2c6   : > { %4958 = vtanh.f32 %v3379_v10  ;;  %v3355_v51 = vadd.f32 %v6755_v12, %v3242_v18  ;;  %v3232_v26 = vadd.f32 %v6759_v9, %v3119_v11  ;;  %v3230_v49 = vadd.f32 %v6761_v23, %v3117_v8  ;;  %v6771_v48 = vld [vmem:[#allocation45_spill] sm:$0xff]  ;;  %v6777_v11 = vld [vmem:[#allocation51_spill] sm:$0xff] }
 0x2c7   : > { %4960 = vtanh.f32 %v3377_v29  ;;  %v3347_v19 = vadd.f32 %v6762_v33, %v3234_v31  ;;  %v3226_v32 = vadd.f32 %v6763_v13, %v3113_v40  ;;  %v3224_v42 = vadd.f32 %v6765_v14, %v3111_v6 }
 0x2c8   : > { %4962 = vtanh.f32 %v3375_v43  ;;  %v3345_v5 = vadd.f32 %v6764_v36, %v3232_v26  ;;  %v3343_v54 = vadd.f32 %v6766_v4, %v3230_v49  ;;  %v6769_v43 = vld [vmem:[#allocation46_spill] sm:$0xff] }
 0x2c9   : > { %4964 = vtanh.f32 %v3373_v60  ;;  %v3339_v56 = vadd.f32 %v6767_v2, %v3226_v32  ;;  %v3337_v10 = vadd.f32 %v6768_v55, %v3224_v42 }
 0x2ca   : > { %4966 = vtanh.f32 %v3369_v25  ;;  %v6772_v25 = vld [vmem:[#allocation49_spill] sm:$0xff] }
 0x2cb   : > { %4968 = vtanh.f32 %v3367_v57 }
 0x2cc   : > { %4970 = vtanh.f32 %v3365_v1  ;;  %v6775_v1 = vld [vmem:[#allocation48_spill] sm:$0xff] }
 0x2cd   : > { %4972 = vtanh.f32 %v3363_v46 }
 0x2ce   : > { %4974 = vtanh.f32 %v3359_v37  ;;  %v6778_v37 = vld [vmem:[#allocation42_spill] sm:$0xff] }
 0x2cf   : > { %v4951_v3 = vpop.eup %4950  ;;  %4976 = vtanh.f32 %v3357_v30 }
 0x2d0   : > { %v4953_v52 = vpop.eup %4952  ;;  %4978 = vtanh.f32 %v3355_v51  ;;  %3630 = vmatprep.subr.mxu0 %v4951_v3 }
 0x2d1   : > { %v4955_v62 = vpop.eup %4954  ;;  %4980 = vtanh.f32 %v3353_v38  ;;  %3631 = vmatpush1.msra.mxu0 %v4953_v52 }
 0x2d2   : > { %v4957_v63 = vpop.eup %4956  ;;  %4982 = vtanh.f32 %v3349_v0  ;;  %3632 = vmatprep.subr.mxu0 %v4955_v62 }
 0x2d3   : > { %v4959_v27 = vpop.eup %4958  ;;  %4984 = vtanh.f32 %v3347_v19  ;;  %3633 = vmatpush1.msra.mxu0 %v4957_v63 }
 0x2d4   : > { %v4961_v44 = vpop.eup %4960  ;;  %4986 = vtanh.f32 %v3345_v5  ;;  %3634 = vmatprep.subr.mxu0 %v4959_v27 }
 0x2d5   : > { %v4963_v53 = vpop.eup %4962  ;;  %4988 = vtanh.f32 %v3343_v54  ;;  %3635 = vmatpush1.msra.mxu0 %v4961_v44 }
 0x2d6   : > { %v4965_v29 = vpop.eup %4964  ;;  %4990 = vtanh.f32 %v3339_v56  ;;  %3636 = vmatprep.subr.mxu0 %v4963_v53 }
 0x2d7   : > { %v4967_v15 = vpop.eup %4966  ;;  %4992 = vtanh.f32 %v3337_v10  ;;  %3637 = vmatpush1.msra.mxu0 %v4965_v29 }
 0x2d8   : > { %v4969_v61 = vpop.eup %4968  ;;  %4994 = vtanh.f32 %v6769_v43  ;;  %3638 = vmatprep.subr.mxu0 %v4967_v15 }
 0x2d9   : > { %v4971_v50 = vpop.eup %4970  ;;  %4996 = vtanh.f32 %v6770_v21  ;;  %3639 = vmatpush1.msra.mxu0 %v4969_v61 }
 0x2da   : > { %v4973_v60 = vpop.eup %4972  ;;  %4998 = vtanh.f32 %v6771_v48  ;;  %3640 = vmatprep.subr.mxu0 %v4971_v50 }
 0x2db   : > { %v4975_v59 = vpop.eup %4974  ;;  %5000 = vtanh.f32 %v6772_v25  ;;  %3641 = vmatpush1.msra.mxu0 %v4973_v60 }
 0x2dc   : > { %v4977_v7 = vpop.eup %4976  ;;  %5002 = vtanh.f32 %v6773_v16  ;;  %3642 = vmatprep.subr.mxu0 %v4975_v59 }
 0x2dd   : > { %v4979_v57 = vpop.eup %4978  ;;  %5004 = vtanh.f32 %v6774_v58  ;;  %3643 = vmatpush1.msra.mxu0 %v4977_v7 }
 0x2de   : > { %v4981_v22 = vpop.eup %4980  ;;  %5006 = vtanh.f32 %v6775_v1  ;;  %3644 = vmatprep.subr.mxu0 %v4979_v57 }
 0x2df   : > { %v4983_v47 = vpop.eup %4982  ;;  %5008 = vtanh.f32 %v6776_v17  ;;  %3645 = vmatpush1.msra.mxu0 %v4981_v22 }
 0x2e0   : > { %v4985_v46 = vpop.eup %4984  ;;  %5010 = vtanh.f32 %v6777_v11  ;;  %3646 = vmatprep.subr.mxu0 %v4983_v47 }
 0x2e1   : > { %v4987_v18 = vpop.eup %4986  ;;  %5012 = vtanh.f32 %v6778_v37  ;;  %3647 = vmatpush1.msra.mxu0 %v4985_v46 }
 0x2e2   : > { %v4989_v8 = vpop.eup %4988  ;;  %3648 = vmatprep.subr.mxu0 %v4987_v18 }
 0x2e3   : > { %v4991_v39 = vpop.eup %4990  ;;  %3649 = vmatpush1.msra.mxu0 %v4989_v8 }
 0x2e4   : > { %v4993_v30 = vpop.eup %4992  ;;  %3650 = vmatprep.subr.mxu0 %v4991_v39 }
 0x2e5   : > { %v4995_v34 = vpop.eup %4994  ;;  %3651 = vmatpush1.msra.mxu0 %v4993_v30 }
 0x2e6   : > { %v4997_v40 = vpop.eup %4996  ;;  %3652 = vmatprep.subr.mxu0 %v4995_v34 }
 0x2e7   : > { %v4999_v28 = vpop.eup %4998  ;;  %3653 = vmatpush1.msra.mxu0 %v4997_v40 }
 0x2e8   : > { %v5001_v41 = vpop.eup %5000  ;;  %3654 = vmatprep.subr.mxu0 %v4999_v28 }
 0x2e9   : > { %v5003_v12 = vpop.eup %5002  ;;  %3655 = vmatpush1.msra.mxu0 %v5001_v41 }
 0x2ea   : > { %v5005_v51 = vpop.eup %5004  ;;  %3656 = vmatprep.subr.mxu0 %v5003_v12 }
 0x2eb   : > { %v5007_v24 = vpop.eup %5006  ;;  %3657 = vmatpush1.msra.mxu0 %v5005_v51 }
 0x2ec   : > { %v5009_v6 = vpop.eup %5008  ;;  %3658 = vmatprep.subr.mxu0 %v5007_v24 }
 0x2ed   : > { %v5011_v45 = vpop.eup %5010  ;;  %3659 = vmatpush1.msra.mxu0 %v5009_v6 }
 0x2ee   : > { %v5013_v31 = vpop.eup %5012  ;;  %3660 = vmatprep.subr.mxu0 %v5011_v45  ;;  %v3706_v9 = vpop.permute.xlu0 %3705 }
 0x2ef   : > { %3661 = vmatpush1.msra.mxu0 %v5013_v31 }
 0x2f0   : > { %3695 = vmatmul.mubr.f32.vlgmr.msra.gmra.mxu0 %v6779_v20  ;;  %v3554_v38 = vpop.f32.mrf.mxu1 }
 0x2f1   : > { %v3708_v35 = vmul.f32 %v3706_v9, %v3554_v38 }
 0x2f2   : > { %v3556_v26 = vpop.f32.mrf.mxu1 }
 0x2f3   : > { %v3709_v0 = vmul.f32 %v3706_v9, %v3556_v26  ;;  %v3714_v23 = vmul.f32 %v3708_v35, %v3708_v35 }
 0x2f5   : > { %v3715_v49 = vmul.f32 %v3709_v0, %v3709_v0 }
 0x2f7   : > { %v3720_v52 = vadd.f32 %v3715_v49, %v3714_v23 }
 0x333   : > { %v3625_v3 = vpop.f32.mrf.mxu1 }
 0x334   : > { %v3710_v33 = vmul.f32 %v3706_v9, %v3625_v3 }
 0x335   : > { %v3627_v19 = vpop.f32.mrf.mxu1 }
 0x336   : > { %v3716_v13 = vmul.f32 %v3710_v33, %v3710_v33  ;;  %v3711_v32 = vmul.f32 %v3706_v9, %v3627_v19 }
 0x338   : > { %v3721_v36 = vadd.f32 %v3720_v52, %v3716_v13  ;;  %v3717_v5 = vmul.f32 %v3711_v32, %v3711_v32 }
 0x33a   : > { %v3722_v4 = vadd.f32 %v3721_v36, %v3717_v5 }
 0x3b0   : > { %v3696_v62 = vpop.f32.mrf.mxu0 }
 0x3b1   : > { %v3712_v14 = vmul.f32 %v3706_v9, %v3696_v62 }
 0x3b2   : > { %v3698_v42 = vpop.f32.mrf.mxu0 }
 0x3b3   : > { %v3718_v54 = vmul.f32 %v3712_v14, %v3712_v14  ;;  %v3713_v63 = vmul.f32 %v3706_v9, %v3698_v42 }
 0x3b5   : > { %v3719_v2 = vmul.f32 %v3713_v63, %v3713_v63  ;;  %v3723_v56 = vadd.f32 %v3722_v4, %v3718_v54 }
 0x3b7   : > { %v3724_v27 = vadd.f32 %v3723_v56, %v3719_v2 }
 0x3b9   : > { %3725 = vadd.xlane.f32.xlu0 %v3724_v27 }
 0x442   : > { %v3726_v55 = vpop.xlane.xlu0 %3725 }
 0x443   : > { %5014 = vrsqrt.f32 %v3726_v55 }
 0x450   : > { %v5015_v10 = vpop.eup %5014 }
 0x451   : > { %v3728_v44 = vmin.f32 %v5015_v10, 1e+12 }
 0x453   : > { %v3729_v53 = vmul.f32 %v3728_v44, %v3708_v35  ;;  %v3730_v29 = vmul.f32 %v3728_v44, %v3709_v0  ;;  %v3731_v15 = vmul.f32 %v3728_v44, %v3710_v33  ;;  %v3732_v61 = vmul.f32 %v3728_v44, %v3711_v32 }
 0x454   : > { %v3733_v43 = vmul.f32 %v3728_v44, %v3712_v14  ;;  %v3734_v50 = vmul.f32 %v3728_v44, %v3713_v63 }
 0x455   : > { %3735 = vst [vmem:[%s320_s8] sm:$0xff] %v3729_v53  ;;  %3736 = vst [vmem:[%s320_s8 + $0x8] sm:$0xff] %v3730_v29 }
 0x456   : > { %3737 = vst [vmem:[%s320_s8 + $0x10] sm:$0xff] %v3731_v15  ;;  %3738 = vst [vmem:[%s320_s8 + $0x18] sm:$0xff] %v3732_v61 }
 0x457   : > { %3739 = vst [vmem:[%s320_s8 + $0x20] sm:$0xff] %v3733_v43  ;;  %3740 = vst [vmem:[%s320_s8 + $0x28] sm:$0xff] %v3734_v50 }
 0x458   : > { %5186 = shalt.err (!%p5183_p6)
}
 0x459   : > { %s5187_s6 = scalar_lea.hbm %s6515_s11, 768  ;;  %s5191_s24 = scalar_lea.hbm %s6563_s5, 1536 }
 0x45a   : > { %p5188_p7 = scmp.ne.s32.totalorder %s6515_s11, %s5187_s6  ;;  %p5192_p5 = scmp.lt.s32.totalorder %s6515_s11, %s6563_s5 }
 0x45b   : > { %p5193_p12 = scmp.lt.s32.totalorder %s5191_s24, %s5187_s6 }
 0x45c   : > { %p5189_p8 = pnand %p5188_p7, %p6780_p3 }
 0x45d   : > { %p5194_p0 = por %p5193_p12, %p5192_p5 }
 0x45e   : > { %p5190_p11 = pneg %p5189_p8 }
 0x460   : > { %p5195_p10 = pnand %p5194_p0, %p5190_p11 }
 0x462   : > { %5198 = shalt.err (!%p5195_p10)
}
 0x463   : > { %4251 = dma.vmem_to_hbm [thread:$0]  (%p6780_p3), %s6517_s0, 768, %s6515_s11, %s3742_s22  }
 0x464 PF: > { %s3768_s28 = sand.u32 1, %s5237_s18   ;;  %p6781_p2 = scmp.ne.s32.totalorder %s6579_s25, 0 }
 0x465   : > { %p6782_p9 = scmp.ge.s32.totalorder %s5249_s21, 2  ;;  %s3769_s12 = scalar_lea.sflag [#allocation4], %s3768_s28 }
 0x467   : > { %p4268_p13 = pnand %p6782_p9, %p6781_p2 }
 0x469   : > { %p4269_p1 = pneg %p4268_p13 }
 0x46b   : > { %5232 = dma.done.wait (%p4269_p1), %s3769_s12, 768  }
 0x46c   : > { %5234 = vsyncadd (%p4269_p1), %s3769_s12, 4294966528  ;;  %p22_p4 = scmp.ge.s32.totalorder %s5365_s15, 4   ;;  %s6783_s18 = smov %s5241_s19 }
 0x46d   : > { %s6784_s19 = smov %s5245_s20  ;;  %s6785_s20 = smov %s5381_s27 }
 0x46e   : > { %s6786_s21 = smov %s5365_s15  ;;  %24 = sbr.rel (!%p22_p4) target bundleno = 12 (0xc), region = 109 }
 0x473   :  { %3774 = vsyncpa [#allocation3], 1 }
 0x474   :  { %3776 = vsyncpa [#allocation3 + $0x1], 1 }
 0x475   :  { %3777 = vsyncpa [#allocation6], 1 }
 0x476   :  { %3779 = vsyncpa [#allocation6 + $0x1], 1 }
 0x477   :  { %3780 = vsyncpa [#allocation9], 1 }
 0x478   :  { %3781 = vsyncpa [#allocation4], 1 }
 0x479   :  { %3783 = vsyncpa [#allocation4 + $0x1], 1 }

</bundles_post_ra>
